<compile_context>
chip_gen: v5e
topology: v5e:2x2
jax: 0.10.0
libtpu: 0.0.40
codegen_flags: <defaults>
</compile_context>

<pallas_src>
import functools

import jax
import jax.numpy as jnp
from jax.experimental import pallas as pl
from jax.experimental.pallas import tpu as pltpu

GEN_EPS = 1e-7        # GENConv(eps=1e-07) added to relu'd messages
LN_EPS = 1e-5         # torch.nn.LayerNorm default eps
SOFTMAX_EPS = 1e-16   # torch_geometric.utils.softmax denominator eps
NORM_EPS = 1e-12      # F.normalize eps (MessageNorm)
NEG_BIG = -1e30       # initial running max (finite -> no inf-inf NaNs)


def _round_up(a, b):
    return (a + b - 1) // b * b


def _lane_mask(cols, real, dtype=jnp.float32):
    idx = jax.lax.broadcasted_iota(jnp.int32, (1, cols), 1)
    return (idx < real).astype(dtype)


def _masked_layernorm(h, gamma, beta, real):
    """LayerNorm over the first `real` lanes. Pad lanes of h MUST be exactly zero."""
    c = h.shape[-1]
    inv = 1.0 / float(real)
    mu = jnp.sum(h, axis=-1, keepdims=True) * inv
    centered = h - mu
    if real != c:
        centered = centered * _lane_mask(c, real)
    var = jnp.sum(centered * centered, axis=-1, keepdims=True) * inv
    return centered * jax.lax.rsqrt(var + LN_EPS) * gamma + beta


def _layernorm(h, gamma, beta):
    """Plain LayerNorm (host-side reference only)."""
    mu = jnp.mean(h, axis=-1, keepdims=True)
    var = jnp.mean((h - mu) ** 2, axis=-1, keepdims=True)
    return (h - mu) * jax.lax.rsqrt(var + LN_EPS) * gamma + beta


# ---------------------------------------------------------------------------
# Fused kernel: grid = (layer, edge_tile)
#   per edge tile : msg = relu(x[src] + edge_attr) + eps ; online-softmax accumulate
#   at last tile  : softmax normalize, MessageNorm, residual, 2-layer MLP -> x_sc
#   at last layer : LayerNorm -> mean-pool -> Linear -> LayerNorm  (encoder tail)
# ---------------------------------------------------------------------------
def _fused_encoder_kernel(d_real, h_real,
                          ts_ref, x0_ref, ea_ref, src_ref, dst_ref, batch_ref,
                          w1_ref, b1_ref, g1_ref, be1_ref, w2_ref, b2_ref,
                          n1g_ref, n1b_ref, linw_ref, linb_ref, n2g_ref, n2b_ref,
                          local_ref, global_ref,
                          x_sc, xbf_sc, acc_sc, m_sc):
    l = pl.program_id(0)            # layer index      (sequential)
    e = pl.program_id(1)            # edge-tile index  (softmax reduction)
    n_l = pl.num_programs(0)
    n_e = pl.num_programs(1)
    n_pad, d_pad = x_sc.shape
    te = ea_ref.shape[0]
    g_graphs = global_ref.shape[0]

    # one-time init of the resident node features (+ bf16 mirror for the gather)
    @pl.when(jnp.logical_and(l == 0, e == 0))
    def _():
        x_sc[...] = x0_ref[...]
        xbf_sc[...] = x0_ref[...].astype(jnp.bfloat16)

    # per-layer init of the online-softmax accumulators
    @pl.when(e == 0)
    def _():
        acc_sc[...] = jnp.zeros(acc_sc.shape, acc_sc.dtype)
        m_sc[...] = jnp.full(m_sc.shape, NEG_BIG, m_sc.dtype)

    t = ts_ref[l, 0]                # SoftmaxAggregation temperature (learn_t)

    # ---- gather: one-hot built in-kernel from int32 src indices (bf16 MXU) ----
    col = jax.lax.broadcasted_iota(jnp.int32, (te, n_pad), 1)
    src_oh = (src_ref[...] == col).astype(jnp.bfloat16)                  # [TE, N]
    x_src = jnp.dot(src_oh, xbf_sc[...],
                    preferred_element_type=jnp.float32)                  # [TE, D]

    # message: relu(x[src] + edge_attr) + eps, pad lanes forced to exactly 0
    msg = jnp.maximum(x_src + ea_ref[...], 0.0) + GEN_EPS
    if d_real != d_pad:
        msg = msg * _lane_mask(d_pad, d_real)
    z = t * msg

    # ---- scatter: dst one-hot (f32, in-kernel) x f32 [exp | msg*exp] payload ----
    row = jax.lax.broadcasted_iota(jnp.int32, (n_pad, te), 0)
    dst_ohT = (row == dst_ref[...]).astype(jnp.float32)                  # [N, TE]

    m_old = m_sc[...]                                                    # [1, D]
    z_max = jnp.max(z, axis=0, keepdims=True)
    m_new = jnp.maximum(m_old, z_max)
    expz = jnp.exp(z - m_new)                                            # [TE, D]
    payload = jnp.concatenate([expz, msg * expz], axis=-1)               # [TE, 2D] f32
    scat = jnp.dot(dst_ohT, payload,
                   preferred_element_type=jnp.float32)                   # [N, 2D]

    # online-softmax accumulate; only rescale the accumulator when the max moved
    changed = jnp.max(z_max - m_old) > 0.0

    @pl.when(changed)
    def _():
        rescale = jnp.exp(m_old - m_new)
        acc_sc[...] = acc_sc[...] * jnp.concatenate([rescale, rescale], axis=-1) + scat
        m_sc[...] = m_new

    @pl.when(jnp.logical_not(changed))
    def _():
        acc_sc[...] = acc_sc[...] + scat

    # ---- per-layer epilogue: normalize + MessageNorm + residual + MLP ----
    @pl.when(e == n_e - 1)
    def _():
        msg_scale = ts_ref[l, 1]     # MessageNorm scale (learn_msg_scale)
        acc = acc_sc[...]
        denom = acc[:, :d_pad] + SOFTMAX_EPS
        numer = acc[:, d_pad:]
        agg = numer * pl.reciprocal(denom, approx=True)                  # [N, D]

        # MessageNorm: normalize(agg) * ||x||_2 * scale  (pad lanes are 0 -> no mask)
        x = x_sc[...]
        agg_sq = jnp.sum(agg * agg, axis=-1, keepdims=True)
        agg = agg * jax.lax.rsqrt(jnp.maximum(agg_sq, NORM_EPS * NORM_EPS))
        x_l2 = jnp.sqrt(jnp.sum(x * x, axis=-1, keepdims=True))
        agg = agg * (x_l2 * msg_scale)

        # residual + MLP: Linear(D,2D) -> LayerNorm -> ReLU -> Linear(2D,D)
        h = agg + x
        h1 = jnp.dot(h, w1_ref[...], preferred_element_type=jnp.float32) + b1_ref[...]
        h1 = jnp.maximum(_masked_layernorm(h1, g1_ref[...], be1_ref[...], h_real), 0.0)
        y = jnp.dot(h1, w2_ref[...], preferred_element_type=jnp.float32) + b2_ref[...]
        x_sc[...] = y
        xbf_sc[...] = y.astype(jnp.bfloat16)

        # encoder tail after the last layer
        @pl.when(l == n_l - 1)
        def _():
            local = _masked_layernorm(y, n1g_ref[...], n1b_ref[...], d_real)
            local_ref[...] = local

            # mean pool: 0/1 pool matrix + exact counts built in-kernel from batch ids
            g_row = jax.lax.broadcasted_iota(jnp.int32, (g_graphs, n_pad), 0)
            pool = (g_row == batch_ref[...]).astype(jnp.float32)         # [G, N]
            cnt = jnp.sum(pool, axis=-1, keepdims=True)                  # [G, 1]
            gfeat = jnp.dot(pool, local, preferred_element_type=jnp.float32)
            gfeat = gfeat / jnp.maximum(cnt, 1.0)
            gfeat = jnp.dot(gfeat, linw_ref[...],
                            preferred_element_type=jnp.float32) + linb_ref[...]
            global_ref[...] = _masked_layernorm(gfeat, n2g_ref[...], n2b_ref[...], d_real)


# ---------------------------------------------------------------------------
# Host wrapper
# ---------------------------------------------------------------------------
def graph_encoder_forward(node_feature, edge_index, edge_feature, batch,
                          layer_params, tail_params, num_graphs, edge_tile=None):
    N, D = node_feature.shape
    E = edge_feature.shape[0]
    L = len(layer_params)
    G = int(num_graphs)
    H = 2 * D

    # lane-dense padded sizes
    D_pad = max(128, _round_up(D, 128))
    H_pad = max(128, _round_up(H, 128))
    N_pad = _round_up(N, 8)

    # ---- VMEM budget & edge-tile auto-sizing (whole-footprint accounting) ----
    try:
        vmem_cap = int(pltpu.get_tpu_info().vmem_capacity_bytes)
    except Exception:
        vmem_cap = 64 << 20                    # conservative (v7x per-core VMEM)
    vmem_limit = max(32 << 20, min(vmem_cap - (8 << 20), 96 << 20))
    budget = vmem_limit - (8 << 20)

    scratch_bytes = (N_pad * D_pad * 4 + N_pad * D_pad * 2
                     + N_pad * 2 * D_pad * 4 + D_pad * 4)
    const_blocks = (N_pad * D_pad * 4 + N_pad * 4
                    + (D_pad * H_pad + 3 * H_pad + H_pad * D_pad + D_pad) * 4
                    + (D_pad * D_pad + 5 * D_pad) * 4)
    out_blocks = (N_pad * D_pad + G * D_pad) * 4
    fixed = scratch_bytes + 2 * (const_blocks + out_blocks)

    per_edge_row = (2 * (D_pad * 4 + 8)        # double-buffered streamed inputs
                    + N_pad * 6                # in-kernel one-hots (bf16 + f32)
                    + D_pad * 4 * 6)           # msg / exp / payload f32 temporaries

    if edge_tile is None:
        te_fit = (budget - fixed) // per_edge_row
        TE = int(min(te_fit, 8192, _round_up(E, 256)))
        TE = (TE // 256) * 256
        if TE < 128:
            TE = 128
    else:
        TE = int(edge_tile)
    assert TE % 128 == 0
    E_pad = _round_up(E, TE)
    n_et = E_pad // TE

    # ---- padded inputs (pad lanes/rows are exact zeros; pad indices are -1) ----
    def pad2(a, rows, cols):
        a = jnp.asarray(a, jnp.float32)
        return jnp.pad(a, ((0, rows - a.shape[0]), (0, cols - a.shape[1])))

    x0 = pad2(node_feature, N_pad, D_pad)
    ea = pad2(edge_feature, E_pad, D_pad)

    src = jnp.asarray(edge_index[0], jnp.int32)
    dst = jnp.asarray(edge_index[1], jnp.int32)
    src_p = jnp.pad(src, (0, E_pad - E), constant_values=-1).reshape(E_pad, 1)
    dst_p = jnp.pad(dst, (0, E_pad - E), constant_values=-1).reshape(1, E_pad)
    batch_p = jnp.pad(jnp.asarray(batch, jnp.int32), (0, N_pad - N),
                      constant_values=-1).reshape(1, N_pad)

    # stacked, padded per-layer parameters
    ts = jnp.stack([jnp.stack([jnp.asarray(p["t"], jnp.float32).reshape(()),
                               jnp.asarray(p["scale"], jnp.float32).reshape(())])
                    for p in layer_params])                               # [L, 2]
    w1 = jnp.stack([pad2(p["w1"], D_pad, H_pad) for p in layer_params])
    b1 = jnp.stack([pad2(p["b1"], 1, H_pad) for p in layer_params])
    g1 = jnp.stack([pad2(p["ln_g"], 1, H_pad) for p in layer_params])
    be1 = jnp.stack([pad2(p["ln_b"], 1, H_pad) for p in layer_params])
    w2 = jnp.stack([pad2(p["w2"], H_pad, D_pad) for p in layer_params])
    b2 = jnp.stack([pad2(p["b2"], 1, D_pad) for p in layer_params])

    n1g = pad2(tail_params["n1_g"], 1, D_pad)
    n1b = pad2(tail_params["n1_b"], 1, D_pad)
    linw = pad2(tail_params["lin_w"], D_pad, D_pad)
    linb = pad2(tail_params["lin_b"], 1, D_pad)
    n2g = pad2(tail_params["n2_g"], 1, D_pad)
    n2b = pad2(tail_params["n2_b"], 1, D_pad)

    in_specs = [
        pl.BlockSpec(memory_space=pltpu.MemorySpace.SMEM),                 # ts [L, 2]
        pl.BlockSpec((N_pad, D_pad), lambda l, e: (0, 0)),                 # x0
        pl.BlockSpec((TE, D_pad), lambda l, e: (e, 0)),                    # edge_attr tile
        pl.BlockSpec((TE, 1), lambda l, e: (e, 0)),                        # src indices tile
        pl.BlockSpec((1, TE), lambda l, e: (0, e)),                        # dst indices tile
        pl.BlockSpec((1, N_pad), lambda l, e: (0, 0)),                     # batch ids
        pl.BlockSpec((None, D_pad, H_pad), lambda l, e: (l, 0, 0)),        # w1
        pl.BlockSpec((None, 1, H_pad), lambda l, e: (l, 0, 0)),            # b1
        pl.BlockSpec((None, 1, H_pad), lambda l, e: (l, 0, 0)),            # mlp LN gamma
        pl.BlockSpec((None, 1, H_pad), lambda l, e: (l, 0, 0)),            # mlp LN beta
        pl.BlockSpec((None, H_pad, D_pad), lambda l, e: (l, 0, 0)),        # w2
        pl.BlockSpec((None, 1, D_pad), lambda l, e: (l, 0, 0)),            # b2
        pl.BlockSpec((1, D_pad), lambda l, e: (0, 0)),                     # norm1 gamma
        pl.BlockSpec((1, D_pad), lambda l, e: (0, 0)),                     # norm1 beta
        pl.BlockSpec((D_pad, D_pad), lambda l, e: (0, 0)),                 # linear W
        pl.BlockSpec((1, D_pad), lambda l, e: (0, 0)),                     # linear b
        pl.BlockSpec((1, D_pad), lambda l, e: (0, 0)),                     # norm2 gamma
        pl.BlockSpec((1, D_pad), lambda l, e: (0, 0)),                     # norm2 beta
    ]
    out_specs = (pl.BlockSpec((N_pad, D_pad), lambda l, e: (0, 0)),
                 pl.BlockSpec((G, D_pad), lambda l, e: (0, 0)))
    out_shape = (jax.ShapeDtypeStruct((N_pad, D_pad), jnp.float32),
                 jax.ShapeDtypeStruct((G, D_pad), jnp.float32))
    scratch_shapes = [
        pltpu.VMEM((N_pad, D_pad), jnp.float32),       # resident node features (f32)
        pltpu.VMEM((N_pad, D_pad), jnp.bfloat16),      # bf16 mirror for the gather
        pltpu.VMEM((N_pad, 2 * D_pad), jnp.float32),   # fused [denom | numer] accumulator
        pltpu.VMEM((1, D_pad), jnp.float32),           # running per-channel max
    ]

    kernel = functools.partial(_fused_encoder_kernel, D, H)

    local_p, global_p = pl.pallas_call(
        kernel,
        grid=(L, n_et),
        in_specs=in_specs,
        out_specs=out_specs,
        out_shape=out_shape,
        scratch_shapes=scratch_shapes,
        compiler_params=pltpu.CompilerParams(
            dimension_semantics=("arbitrary", "arbitrary"),
            vmem_limit_bytes=int(vmem_limit)),
    )(ts, x0, ea, src_p, dst_p, batch_p,
      w1, b1, g1, be1, w2, b2,
      n1g, n1b, linw, linb, n2g, n2b)

    # strip the lane / row padding on the host (cheap XLA slice)
    return local_p[:N, :D], global_p[:, :D]


# ---------------------------------------------------------------------------
# Parameter init + pure-JAX reference (exact per-destination-max softmax)
# ---------------------------------------------------------------------------
def init_params(key, node_dim, num_layers):
    D = node_dim
    keys = jax.random.split(key, num_layers + 1)
    layer_params = []
    for i in range(num_layers):
        kw1, kw2, kb = jax.random.split(keys[i], 3)
        layer_params.append(dict(
            t=jnp.float32(1.0),                 # SoftmaxAggregation t (init 1.0)
            scale=jnp.float32(1.0),             # MessageNorm scale (init 1.0)
            w1=jax.random.normal(kw1, (D, 2 * D), jnp.float32) / jnp.sqrt(float(D)),
            b1=jnp.zeros((1, 2 * D), jnp.float32),
            ln_g=jnp.ones((1, 2 * D), jnp.float32),
            ln_b=jnp.zeros((1, 2 * D), jnp.float32),
            w2=jax.random.normal(kw2, (2 * D, D), jnp.float32) / jnp.sqrt(float(2 * D)),
            b2=jax.random.normal(kb, (1, D), jnp.float32) * 0.01,
        ))
    kw, kb = jax.random.split(keys[-1], 2)
    tail_params = dict(
        n1_g=jnp.ones((1, D), jnp.float32), n1_b=jnp.zeros((1, D), jnp.float32),
        lin_w=jax.random.normal(kw, (D, D), jnp.float32) / jnp.sqrt(float(D)),
        lin_b=jax.random.normal(kb, (1, D), jnp.float32) * 0.01,
        n2_g=jnp.ones((1, D), jnp.float32), n2_b=jnp.zeros((1, D), jnp.float32),
    )
    return layer_params, tail_params


def _ref_genconv(x, ea, src, dst, p, N):
    msg = jnp.maximum(x[src] + ea, 0.0) + GEN_EPS
    z = p["t"] * msg
    m = jax.ops.segment_max(z, dst, num_segments=N)
    m = jnp.where(jnp.isfinite(m), m, 0.0)
    expz = jnp.exp(z - m[dst])
    denom = jax.ops.segment_sum(expz, dst, num_segments=N) + SOFTMAX_EPS
    numer = jax.ops.segment_sum(msg * expz, dst, num_segments=N)
    agg = numer / denom
    agg = agg / jnp.maximum(jnp.linalg.norm(agg, axis=-1, keepdims=True), NORM_EPS)
    agg = agg * jnp.linalg.norm(x, axis=-1, keepdims=True) * p["scale"]
    h = agg + x
    h1 = jnp.maximum(_layernorm(h @ p["w1"] + p["b1"], p["ln_g"], p["ln_b"]), 0.0)
    return h1 @ p["w2"] + p["b2"]


def _ref_forward(node_feature, edge_index, edge_feature, batch,
                 layer_params, tail_params, num_graphs):
    N = node_feature.shape[0]
    src, dst = edge_index[0], edge_index[1]
    x = node_feature
    for p in layer_params:
        x = _ref_genconv(x, edge_feature, src, dst, p, N)
    local = _layernorm(x, tail_params["n1_g"], tail_params["n1_b"])
    cnt = jax.ops.segment_sum(jnp.ones((N, 1), jnp.float32), batch, num_segments=num_graphs)
    g = jax.ops.segment_sum(local, batch, num_segments=num_graphs) / jnp.maximum(cnt, 1.0)
    g = g @ tail_params["lin_w"] + tail_params["lin_b"]
    return local, _layernorm(g, tail_params["n2_g"], tail_params["n2_b"])


if __name__ == "__main__":
    N, D, E, G, L = 16, 32, 300, 2, 2   # nodes, node_dim, edges, graphs, num_layers

    key = jax.random.PRNGKey(0)
    k = jax.random.split(key, 5)
    node_feature = jax.random.normal(k[0], (N, D), jnp.float32)
    edge_feature = jax.random.normal(k[1], (E, D), jnp.float32)
    src = jax.random.randint(k[2], (E,), 0, N, dtype=jnp.int32)
    dst = jax.random.randint(k[3], (E,), 0, N, dtype=jnp.int32)
    edge_index = jnp.stack([src, dst])
    batch = jnp.concatenate([jnp.zeros(N // 2, jnp.int32),
                             jnp.ones(N - N // 2, jnp.int32)])

    layer_params, tail_params = init_params(k[4], D, L)

    ref_local, ref_global = _ref_forward(node_feature, edge_index, edge_feature, batch,
                                         layer_params, tail_params, G)

    # (1) auto-sized edge tile (single reduction step for this tiny E)
    local_a, global_a = graph_encoder_forward(
        node_feature, edge_index, edge_feature, batch, layer_params, tail_params, G)
    # (2) small explicit tile -> exercises the multi-tile online-softmax path
    local_b, global_b = graph_encoder_forward(
        node_feature, edge_index, edge_feature, batch, layer_params, tail_params, G,
        edge_tile=256)
    jax.block_until_ready((local_a, global_a, local_b, global_b))

    assert local_a.shape == (N, D) and global_a.shape == (G, D)
    assert local_b.shape == (N, D) and global_b.shape == (G, D)
    for lo, gl in ((local_a, global_a), (local_b, global_b)):
        assert bool(jnp.all(jnp.isfinite(lo))) and bool(jnp.all(jnp.isfinite(gl)))
        err_l = float(jnp.max(jnp.abs(lo - ref_local)))
        err_g = float(jnp.max(jnp.abs(gl - ref_global)))
        # loose sanity check vs an exact f32 reference (kernel trades a little precision
        # for speed: bf16 gather + approx reciprocal)
        assert err_l < 0.5 and err_g < 0.5, (err_l, err_g)

    print("KERNEL_OK")
</pallas_src>

<mosaic_0001>
module attributes {stable_mosaic.version = 11 : i64} {
  func.func @_fused_encoder_kernel(%arg0: i32, %arg1: i32, %arg2: memref<2x2xf32, #tpu.memory_space<smem>>, %arg3: memref<16x128xf32, #tpu.memory_space<vmem>>, %arg4: memref<512x128xf32, #tpu.memory_space<vmem>>, %arg5: memref<512x1xi32, #tpu.memory_space<vmem>>, %arg6: memref<1x512xi32, #tpu.memory_space<vmem>>, %arg7: memref<1x16xi32, #tpu.memory_space<vmem>>, %arg8: memref<1x128x128xf32, #tpu.memory_space<vmem>>, %arg9: memref<1x1x128xf32, #tpu.memory_space<vmem>>, %arg10: memref<1x1x128xf32, #tpu.memory_space<vmem>>, %arg11: memref<1x1x128xf32, #tpu.memory_space<vmem>>, %arg12: memref<1x128x128xf32, #tpu.memory_space<vmem>>, %arg13: memref<1x1x128xf32, #tpu.memory_space<vmem>>, %arg14: memref<1x128xf32, #tpu.memory_space<vmem>>, %arg15: memref<1x128xf32, #tpu.memory_space<vmem>>, %arg16: memref<128x128xf32, #tpu.memory_space<vmem>>, %arg17: memref<1x128xf32, #tpu.memory_space<vmem>>, %arg18: memref<1x128xf32, #tpu.memory_space<vmem>>, %arg19: memref<1x128xf32, #tpu.memory_space<vmem>>, %arg20: memref<16x128xf32, #tpu.memory_space<vmem>>, %arg21: memref<2x128xf32, #tpu.memory_space<vmem>>, %arg22: memref<16x128xf32, #tpu.memory_space<vmem>>, %arg23: memref<16x128xbf16, #tpu.memory_space<vmem>>, %arg24: memref<16x256xf32, #tpu.memory_space<vmem>>, %arg25: memref<1x128xf32, #tpu.memory_space<vmem>>) attributes {dimension_semantics = [#tpu.dimension_semantics<arbitrary>, #tpu.dimension_semantics<arbitrary>], iteration_bounds = array<i64: 2, 1>, scalar_prefetch = 0 : i64, scratch_operands = 4 : i64, tpu.core_type = #tpu.core_type<tc>, window_params = [{transform_indices = @transform_0, window_bounds = array<i64: 2, 2>}, {pipeline_mode = #tpu.pipeline_mode<synchronous>, transform_indices = @transform_1, window_bounds = array<i64: 16, 128>}, {transform_indices = @transform_2, window_bounds = array<i64: 512, 128>}, {transform_indices = @transform_3, window_bounds = array<i64: 512, 1>}, {transform_indices = @transform_4, window_bounds = array<i64: 1, 512>}, {pipeline_mode = #tpu.pipeline_mode<synchronous>, transform_indices = @transform_5, window_bounds = array<i64: 1, 16>}, {transform_indices = @transform_6, window_bounds = array<i64: 1, 128, 128>}, {transform_indices = @transform_7, window_bounds = array<i64: 1, 1, 128>}, {transform_indices = @transform_8, window_bounds = array<i64: 1, 1, 128>}, {transform_indices = @transform_9, window_bounds = array<i64: 1, 1, 128>}, {transform_indices = @transform_10, window_bounds = array<i64: 1, 128, 128>}, {transform_indices = @transform_11, window_bounds = array<i64: 1, 1, 128>}, {pipeline_mode = #tpu.pipeline_mode<synchronous>, transform_indices = @transform_12, window_bounds = array<i64: 1, 128>}, {pipeline_mode = #tpu.pipeline_mode<synchronous>, transform_indices = @transform_13, window_bounds = array<i64: 1, 128>}, {pipeline_mode = #tpu.pipeline_mode<synchronous>, transform_indices = @transform_14, window_bounds = array<i64: 128, 128>}, {pipeline_mode = #tpu.pipeline_mode<synchronous>, transform_indices = @transform_15, window_bounds = array<i64: 1, 128>}, {pipeline_mode = #tpu.pipeline_mode<synchronous>, transform_indices = @transform_16, window_bounds = array<i64: 1, 128>}, {pipeline_mode = #tpu.pipeline_mode<synchronous>, transform_indices = @transform_17, window_bounds = array<i64: 1, 128>}, {pipeline_mode = #tpu.pipeline_mode<synchronous>, transform_indices = @transform_18, window_bounds = array<i64: 16, 128>}, {pipeline_mode = #tpu.pipeline_mode<synchronous>, transform_indices = @transform_19, window_bounds = array<i64: 2, 128>}]} {
    %c0_i32 = arith.constant 0 : i32
    %0 = arith.cmpi eq, %arg0, %c0_i32 : i32
    %c0_i32_0 = arith.constant 0 : i32
    %1 = arith.cmpi eq, %arg1, %c0_i32_0 : i32
    %2 = arith.andi %0, %1 : i1
    %3 = arith.extui %2 : i1 to i32
    %c0_i32_1 = arith.constant 0 : i32
    %4 = arith.cmpi ne, %3, %c0_i32_1 : i32
    scf.if %4 {
      %c0_24 = arith.constant 0 : index
      %c0_25 = arith.constant 0 : index
      %64 = vector.load %arg3[%c0_24, %c0_25] : memref<16x128xf32, #tpu.memory_space<vmem>>, vector<16x128xf32>
      %c0_26 = arith.constant 0 : index
      %c0_27 = arith.constant 0 : index
      %65 = vector.load %arg22[%c0_26, %c0_27] : memref<16x128xf32, #tpu.memory_space<vmem>>, vector<16x128xf32>
      tpu.vector_store %arg22[%c0_26, %c0_27], %64 {strides = array<i32>} : memref<16x128xf32, #tpu.memory_space<vmem>>, vector<16x128xf32>,
      %c0_28 = arith.constant 0 : index
      %c0_29 = arith.constant 0 : index
      %66 = vector.load %arg3[%c0_28, %c0_29] : memref<16x128xf32, #tpu.memory_space<vmem>>, vector<16x128xf32>
      %67 = arith.truncf %66 : vector<16x128xf32> to vector<16x128xbf16>
      %c0_30 = arith.constant 0 : index
      %c0_31 = arith.constant 0 : index
      %68 = vector.load %arg23[%c0_30, %c0_31] : memref<16x128xbf16, #tpu.memory_space<vmem>>, vector<16x128xbf16>
      tpu.vector_store %arg23[%c0_30, %c0_31], %67 {strides = array<i32>} : memref<16x128xbf16, #tpu.memory_space<vmem>>, vector<16x128xbf16>,
    } else {
    }
    %c0_i32_2 = arith.constant 0 : i32
    %5 = arith.cmpi eq, %arg1, %c0_i32_2 : i32
    %6 = arith.extui %5 : i1 to i32
    %c0_i32_3 = arith.constant 0 : i32
    %7 = arith.cmpi ne, %6, %c0_i32_3 : i32
    scf.if %7 {
      %cst_24 = arith.constant 0.000000e+00 : f32
      %64 = vector.broadcast %cst_24 : f32 to vector<16x256xf32>
      %c0_25 = arith.constant 0 : index
      %c0_26 = arith.constant 0 : index
      %65 = vector.load %arg24[%c0_25, %c0_26] : memref<16x256xf32, #tpu.memory_space<vmem>>, vector<16x256xf32>
      tpu.vector_store %arg24[%c0_25, %c0_26], %64 {strides = array<i32>} : memref<16x256xf32, #tpu.memory_space<vmem>>, vector<16x256xf32>,
      %cst_27 = arith.constant -1.000000e+30 : f32
      %66 = vector.broadcast %cst_27 : f32 to vector<1x128xf32>
      %c0_28 = arith.constant 0 : index
      %c0_29 = arith.constant 0 : index
      %67 = vector.load %arg25[%c0_28, %c0_29] : memref<1x128xf32, #tpu.memory_space<vmem>>, vector<1x128xf32>
      tpu.vector_store %arg25[%c0_28, %c0_29], %66 {strides = array<i32>} : memref<1x128xf32, #tpu.memory_space<vmem>>, vector<1x128xf32>,
    } else {
    }
    %8 = arith.index_cast %arg0 : i32 to index
    %c0 = arith.constant 0 : index
    %9 = memref.load %arg2[%8, %c0] : memref<2x2xf32, #tpu.memory_space<smem>>
    %10 = tpu.iota {dimensions = array<i32: 1>} : vector<512x16xi32>
    %c0_4 = arith.constant 0 : index
    %c0_5 = arith.constant 0 : index
    %11 = vector.load %arg5[%c0_4, %c0_5] : memref<512x1xi32, #tpu.memory_space<vmem>>, vector<512x1xi32>
    %12 = vector.broadcast %11 : vector<512x1xi32> to vector<512x16xi32>
    %13 = arith.cmpi eq, %12, %10 : vector<512x16xi32>
    %14 = arith.extui %13 : vector<512x16xi1> to vector<512x16xi32>
    %15 = arith.sitofp %14 : vector<512x16xi32> to vector<512x16xf32>
    %16 = arith.truncf %15 : vector<512x16xf32> to vector<512x16xbf16>
    %c0_6 = arith.constant 0 : index
    %c0_7 = arith.constant 0 : index
    %17 = vector.load %arg23[%c0_6, %c0_7] : memref<16x128xbf16, #tpu.memory_space<vmem>>, vector<16x128xbf16>
    %cst = arith.constant dense<0.000000e+00> : vector<512x128xf32>
    %18 = tpu.matmul %16, %17, %cst {dimension_numbers = #tpu.dot_dimension_numbers<[1], [0], [0], [1], [0, 0, 1, 1], [], []>} : vector<512x16xbf16>, vector<16x128xbf16>, vector<512x128xf32> -> vector<512x128xf32>
    %c0_8 = arith.constant 0 : index
    %c0_9 = arith.constant 0 : index
    %19 = vector.load %arg4[%c0_8, %c0_9] : memref<512x128xf32, #tpu.memory_space<vmem>>, vector<512x128xf32>
    %20 = arith.addf %18, %19 : vector<512x128xf32>
    %cst_10 = arith.constant 0.000000e+00 : f32
    %21 = vector.broadcast %cst_10 : f32 to vector<512x128xf32>
    %22 = arith.maximumf %20, %21 : vector<512x128xf32>
    %cst_11 = arith.constant 1.000000e-07 : f32
    %23 = vector.broadcast %cst_11 : f32 to vector<512x128xf32>
    %24 = arith.addf %22, %23 : vector<512x128xf32>
    %25 = tpu.iota {dimensions = array<i32: 1>} : vector<1x128xi32>
    %c32_i32 = arith.constant 32 : i32
    %26 = vector.broadcast %c32_i32 : i32 to vector<1x128xi32>
    %27 = arith.cmpi slt, %25, %26 : vector<1x128xi32>
    %28 = arith.extui %27 : vector<1x128xi1> to vector<1x128xi32>
    %29 = arith.sitofp %28 : vector<1x128xi32> to vector<1x128xf32>
    %30 = vector.broadcast %29 : vector<1x128xf32> to vector<512x128xf32>
    %31 = arith.mulf %24, %30 : vector<512x128xf32>
    %32 = vector.broadcast %9 : f32 to vector<512x128xf32>
    %33 = arith.mulf %32, %31 : vector<512x128xf32>
    %34 = tpu.iota {dimensions = array<i32: 0>} : vector<16x512xi32>
    %c0_12 = arith.constant 0 : index
    %c0_13 = arith.constant 0 : index
    %35 = vector.load %arg6[%c0_12, %c0_13] : memref<1x512xi32, #tpu.memory_space<vmem>>, vector<1x512xi32>
    %36 = vector.broadcast %35 : vector<1x512xi32> to vector<16x512xi32>
    %37 = arith.cmpi eq, %34, %36 : vector<16x512xi32>
    %38 = arith.extui %37 : vector<16x512xi1> to vector<16x512xi32>
    %39 = arith.sitofp %38 : vector<16x512xi32> to vector<16x512xf32>
    %c0_14 = arith.constant 0 : index
    %c0_15 = arith.constant 0 : index
    %40 = vector.load %arg25[%c0_14, %c0_15] : memref<1x128xf32, #tpu.memory_space<vmem>>, vector<1x128xf32>
    %cst_16 = arith.constant dense<0xFF800000> : vector<128xf32>
    %41 = vector.multi_reduction <maximumf>, %33, %cst_16 [0] : vector<512x128xf32> to vector<128xf32>
    %42 = vector.shape_cast %41 : vector<128xf32> to vector<1x128xf32>
    %43 = arith.maximumf %40, %42 : vector<1x128xf32>
    %44 = vector.broadcast %43 : vector<1x128xf32> to vector<512x128xf32>
    %45 = arith.subf %33, %44 : vector<512x128xf32>
    %46 = math.exp %45 : vector<512x128xf32>
    %47 = arith.mulf %31, %46 : vector<512x128xf32>
    %48 = tpu.concatenate %46, %47 in 1 : vector<512x128xf32>, vector<512x128xf32> -> vector<512x256xf32>
    %cst_17 = arith.constant dense<0.000000e+00> : vector<16x256xf32>
    %49 = tpu.matmul %39, %48, %cst_17 {dimension_numbers = #tpu.dot_dimension_numbers<[1], [0], [0], [1], [0, 0, 1, 1], [], []>} : vector<16x512xf32>, vector<512x256xf32>, vector<16x256xf32> -> vector<16x256xf32>
    %50 = arith.subf %42, %40 : vector<1x128xf32>
    %51 = vector.shape_cast %50 : vector<1x128xf32> to vector<1x1x128xf32>
    %cst_18 = arith.constant dense<0xFF800000> : vector<1xf32>
    %52 = vector.multi_reduction <maximumf>, %51, %cst_18 [1, 2] : vector<1x1x128xf32> to vector<1xf32>
    %53 = vector.shape_cast %52 : vector<1xf32> to vector<1x1x1xf32>
    %54 = vector.extract %53[0, 0, 0] : f32 from vector<1x1x1xf32>
    %cst_19 = arith.constant 0.000000e+00 : f32
    %55 = arith.cmpf ogt, %54, %cst_19 : f32
    %56 = arith.extui %55 : i1 to i32
    %c0_i32_20 = arith.constant 0 : i32
    %57 = arith.cmpi ne, %56, %c0_i32_20 : i32
    scf.if %57 {
      %64 = arith.subf %40, %43 : vector<1x128xf32>
      %65 = math.exp %64 : vector<1x128xf32>
      %c0_24 = arith.constant 0 : index
      %c0_25 = arith.constant 0 : index
      %66 = vector.load %arg24[%c0_24, %c0_25] : memref<16x256xf32, #tpu.memory_space<vmem>>, vector<16x256xf32>
      %67 = tpu.concatenate %65, %65 in 1 : vector<1x128xf32>, vector<1x128xf32> -> vector<1x256xf32>
      %68 = vector.broadcast %67 : vector<1x256xf32> to vector<16x256xf32>
      %69 = arith.mulf %66, %68 : vector<16x256xf32>
      %70 = arith.addf %69, %49 : vector<16x256xf32>
      %c0_26 = arith.constant 0 : index
      %c0_27 = arith.constant 0 : index
      %71 = vector.load %arg24[%c0_26, %c0_27] : memref<16x256xf32, #tpu.memory_space<vmem>>, vector<16x256xf32>
      tpu.vector_store %arg24[%c0_26, %c0_27], %70 {strides = array<i32>} : memref<16x256xf32, #tpu.memory_space<vmem>>, vector<16x256xf32>,
      %c0_28 = arith.constant 0 : index
      %c0_29 = arith.constant 0 : index
      %72 = vector.load %arg25[%c0_28, %c0_29] : memref<1x128xf32, #tpu.memory_space<vmem>>, vector<1x128xf32>
      tpu.vector_store %arg25[%c0_28, %c0_29], %43 {strides = array<i32>} : memref<1x128xf32, #tpu.memory_space<vmem>>, vector<1x128xf32>,
    } else {
    }
    %true = arith.constant true
    %58 = arith.xori %55, %true : i1
    %59 = arith.extui %58 : i1 to i32
    %c0_i32_21 = arith.constant 0 : i32
    %60 = arith.cmpi ne, %59, %c0_i32_21 : i32
    scf.if %60 {
      %c0_24 = arith.constant 0 : index
      %c0_25 = arith.constant 0 : index
      %64 = vector.load %arg24[%c0_24, %c0_25] : memref<16x256xf32, #tpu.memory_space<vmem>>, vector<16x256xf32>
      %65 = arith.addf %64, %49 : vector<16x256xf32>
      %c0_26 = arith.constant 0 : index
      %c0_27 = arith.constant 0 : index
      %66 = vector.load %arg24[%c0_26, %c0_27] : memref<16x256xf32, #tpu.memory_space<vmem>>, vector<16x256xf32>
      tpu.vector_store %arg24[%c0_26, %c0_27], %65 {strides = array<i32>} : memref<16x256xf32, #tpu.memory_space<vmem>>, vector<16x256xf32>,
    } else {
    }
    %c0_i32_22 = arith.constant 0 : i32
    %61 = arith.cmpi eq, %arg1, %c0_i32_22 : i32
    %62 = arith.extui %61 : i1 to i32
    %c0_i32_23 = arith.constant 0 : i32
    %63 = arith.cmpi ne, %62, %c0_i32_23 : i32
    scf.if %63 {
      %64 = arith.index_cast %arg0 : i32 to index
      %c1 = arith.constant 1 : index
      %65 = memref.load %arg2[%64, %c1] : memref<2x2xf32, #tpu.memory_space<smem>>
      %c0_24 = arith.constant 0 : index
      %c0_25 = arith.constant 0 : index
      %66 = vector.load %arg24[%c0_24, %c0_25] : memref<16x256xf32, #tpu.memory_space<vmem>>, vector<16x256xf32>
      %67 = vector.extract_strided_slice %66 {offsets = [0, 0], sizes = [16, 128], strides = [1, 1]} : vector<16x256xf32> to vector<16x128xf32>
      %cst_26 = arith.constant 1.000000e-16 : f32
      %68 = vector.broadcast %cst_26 : f32 to vector<16x128xf32>
      %69 = arith.addf %67, %68 : vector<16x128xf32>
      %70 = vector.extract_strided_slice %66 {offsets = [0, 128], sizes = [16, 128], strides = [1, 1]} : vector<16x256xf32> to vector<16x128xf32>
      %71 = tpu.reciprocal %69 {approx = true} : vector<16x128xf32> -> vector<16x128xf32>
      %72 = arith.mulf %70, %71 : vector<16x128xf32>
      %c0_27 = arith.constant 0 : index
      %c0_28 = arith.constant 0 : index
      %73 = vector.load %arg22[%c0_27, %c0_28] : memref<16x128xf32, #tpu.memory_space<vmem>>, vector<16x128xf32>
      %74 = arith.mulf %72, %72 : vector<16x128xf32>
      %cst_29 = arith.constant dense<0.000000e+00> : vector<16xf32>
      %75 = vector.multi_reduction <add>, %74, %cst_29 [1] : vector<16x128xf32> to vector<16xf32>
      %76 = vector.shape_cast %75 : vector<16xf32> to vector<16x1xf32>
      %cst_30 = arith.constant 1.000000e-24 : f32
      %77 = vector.broadcast %cst_30 : f32 to vector<16x1xf32>
      %78 = arith.maximumf %76, %77 : vector<16x1xf32>
      %79 = math.rsqrt %78 : vector<16x1xf32>
      %80 = vector.broadcast %79 : vector<16x1xf32> to vector<16x128xf32>
      %81 = arith.mulf %72, %80 : vector<16x128xf32>
      %82 = arith.mulf %73, %73 : vector<16x128xf32>
      %cst_31 = arith.constant dense<0.000000e+00> : vector<16xf32>
      %83 = vector.multi_reduction <add>, %82, %cst_31 [1] : vector<16x128xf32> to vector<16xf32>
      %84 = vector.shape_cast %83 : vector<16xf32> to vector<16x1xf32>
      %85 = math.sqrt %84 : vector<16x1xf32>
      %86 = vector.broadcast %65 : f32 to vector<16x1xf32>
      %87 = arith.mulf %85, %86 : vector<16x1xf32>
      %88 = vector.broadcast %87 : vector<16x1xf32> to vector<16x128xf32>
      %89 = arith.mulf %81, %88 : vector<16x128xf32>
      %90 = arith.addf %89, %73 : vector<16x128xf32>
      %c0_32 = arith.constant 0 : index
      %c0_33 = arith.constant 0 : index
      %c0_34 = arith.constant 0 : index
      %91 = vector.load %arg8[%c0_32, %c0_33, %c0_34] : memref<1x128x128xf32, #tpu.memory_space<vmem>>, vector<1x128x128xf32>
      %92 = vector.shape_cast %91 : vector<1x128x128xf32> to vector<128x128xf32>
      %cst_35 = arith.constant dense<0.000000e+00> : vector<16x128xf32>
      %93 = tpu.matmul %90, %92, %cst_35 {dimension_numbers = #tpu.dot_dimension_numbers<[1], [0], [0], [1], [0, 0, 1, 1], [], []>} : vector<16x128xf32>, vector<128x128xf32>, vector<16x128xf32> -> vector<16x128xf32>
      %c0_36 = arith.constant 0 : index
      %c0_37 = arith.constant 0 : index
      %c0_38 = arith.constant 0 : index
      %94 = vector.load %arg9[%c0_36, %c0_37, %c0_38] : memref<1x1x128xf32, #tpu.memory_space<vmem>>, vector<1x1x128xf32>
      %95 = vector.shape_cast %94 : vector<1x1x128xf32> to vector<1x128xf32>
      %96 = vector.broadcast %95 : vector<1x128xf32> to vector<16x128xf32>
      %97 = arith.addf %93, %96 : vector<16x128xf32>
      %c0_39 = arith.constant 0 : index
      %c0_40 = arith.constant 0 : index
      %c0_41 = arith.constant 0 : index
      %98 = vector.load %arg10[%c0_39, %c0_40, %c0_41] : memref<1x1x128xf32, #tpu.memory_space<vmem>>, vector<1x1x128xf32>
      %99 = vector.shape_cast %98 : vector<1x1x128xf32> to vector<1x128xf32>
      %c0_42 = arith.constant 0 : index
      %c0_43 = arith.constant 0 : index
      %c0_44 = arith.constant 0 : index
      %100 = vector.load %arg11[%c0_42, %c0_43, %c0_44] : memref<1x1x128xf32, #tpu.memory_space<vmem>>, vector<1x1x128xf32>
      %101 = vector.shape_cast %100 : vector<1x1x128xf32> to vector<1x128xf32>
      %cst_45 = arith.constant dense<0.000000e+00> : vector<16xf32>
      %102 = vector.multi_reduction <add>, %97, %cst_45 [1] : vector<16x128xf32> to vector<16xf32>
      %103 = vector.shape_cast %102 : vector<16xf32> to vector<16x1xf32>
      %cst_46 = arith.constant 1.562500e-02 : f32
      %104 = vector.broadcast %cst_46 : f32 to vector<16x1xf32>
      %105 = arith.mulf %103, %104 : vector<16x1xf32>
      %106 = vector.broadcast %105 : vector<16x1xf32> to vector<16x128xf32>
      %107 = arith.subf %97, %106 : vector<16x128xf32>
      %108 = tpu.iota {dimensions = array<i32: 1>} : vector<1x128xi32>
      %c64_i32 = arith.constant 64 : i32
      %109 = vector.broadcast %c64_i32 : i32 to vector<1x128xi32>
      %110 = arith.cmpi slt, %108, %109 : vector<1x128xi32>
      %111 = arith.extui %110 : vector<1x128xi1> to vector<1x128xi32>
      %112 = arith.sitofp %111 : vector<1x128xi32> to vector<1x128xf32>
      %113 = vector.broadcast %112 : vector<1x128xf32> to vector<16x128xf32>
      %114 = arith.mulf %107, %113 : vector<16x128xf32>
      %115 = arith.mulf %114, %114 : vector<16x128xf32>
      %cst_47 = arith.constant dense<0.000000e+00> : vector<16xf32>
      %116 = vector.multi_reduction <add>, %115, %cst_47 [1] : vector<16x128xf32> to vector<16xf32>
      %117 = vector.shape_cast %116 : vector<16xf32> to vector<16x1xf32>
      %cst_48 = arith.constant 1.562500e-02 : f32
      %118 = vector.broadcast %cst_48 : f32 to vector<16x1xf32>
      %119 = arith.mulf %117, %118 : vector<16x1xf32>
      %cst_49 = arith.constant 9.99999974E-6 : f32
      %120 = vector.broadcast %cst_49 : f32 to vector<16x1xf32>
      %121 = arith.addf %119, %120 : vector<16x1xf32>
      %122 = math.rsqrt %121 : vector<16x1xf32>
      %123 = vector.broadcast %122 : vector<16x1xf32> to vector<16x128xf32>
      %124 = arith.mulf %114, %123 : vector<16x128xf32>
      %125 = vector.broadcast %99 : vector<1x128xf32> to vector<16x128xf32>
      %126 = arith.mulf %124, %125 : vector<16x128xf32>
      %127 = vector.broadcast %101 : vector<1x128xf32> to vector<16x128xf32>
      %128 = arith.addf %126, %127 : vector<16x128xf32>
      %cst_50 = arith.constant 0.000000e+00 : f32
      %129 = vector.broadcast %cst_50 : f32 to vector<16x128xf32>
      %130 = arith.maximumf %128, %129 : vector<16x128xf32>
      %c0_51 = arith.constant 0 : index
      %c0_52 = arith.constant 0 : index
      %c0_53 = arith.constant 0 : index
      %131 = vector.load %arg12[%c0_51, %c0_52, %c0_53] : memref<1x128x128xf32, #tpu.memory_space<vmem>>, vector<1x128x128xf32>
      %132 = vector.shape_cast %131 : vector<1x128x128xf32> to vector<128x128xf32>
      %cst_54 = arith.constant dense<0.000000e+00> : vector<16x128xf32>
      %133 = tpu.matmul %130, %132, %cst_54 {dimension_numbers = #tpu.dot_dimension_numbers<[1], [0], [0], [1], [0, 0, 1, 1], [], []>} : vector<16x128xf32>, vector<128x128xf32>, vector<16x128xf32> -> vector<16x128xf32>
      %c0_55 = arith.constant 0 : index
      %c0_56 = arith.constant 0 : index
      %c0_57 = arith.constant 0 : index
      %134 = vector.load %arg13[%c0_55, %c0_56, %c0_57] : memref<1x1x128xf32, #tpu.memory_space<vmem>>, vector<1x1x128xf32>
      %135 = vector.shape_cast %134 : vector<1x1x128xf32> to vector<1x128xf32>
      %136 = vector.broadcast %135 : vector<1x128xf32> to vector<16x128xf32>
      %137 = arith.addf %133, %136 : vector<16x128xf32>
      %c0_58 = arith.constant 0 : index
      %c0_59 = arith.constant 0 : index
      %138 = vector.load %arg22[%c0_58, %c0_59] : memref<16x128xf32, #tpu.memory_space<vmem>>, vector<16x128xf32>
      tpu.vector_store %arg22[%c0_58, %c0_59], %137 {strides = array<i32>} : memref<16x128xf32, #tpu.memory_space<vmem>>, vector<16x128xf32>,
      %139 = arith.truncf %137 : vector<16x128xf32> to vector<16x128xbf16>
      %c0_60 = arith.constant 0 : index
      %c0_61 = arith.constant 0 : index
      %140 = vector.load %arg23[%c0_60, %c0_61] : memref<16x128xbf16, #tpu.memory_space<vmem>>, vector<16x128xbf16>
      tpu.vector_store %arg23[%c0_60, %c0_61], %139 {strides = array<i32>} : memref<16x128xbf16, #tpu.memory_space<vmem>>, vector<16x128xbf16>,
      %c1_i32 = arith.constant 1 : i32
      %141 = arith.cmpi eq, %arg0, %c1_i32 : i32
      %142 = arith.extui %141 : i1 to i32
      %c0_i32_62 = arith.constant 0 : i32
      %143 = arith.cmpi ne, %142, %c0_i32_62 : i32
      scf.if %143 {
        %c0_63 = arith.constant 0 : index
        %c0_64 = arith.constant 0 : index
        %144 = vector.load %arg14[%c0_63, %c0_64] : memref<1x128xf32, #tpu.memory_space<vmem>>, vector<1x128xf32>
        %c0_65 = arith.constant 0 : index
        %c0_66 = arith.constant 0 : index
        %145 = vector.load %arg15[%c0_65, %c0_66] : memref<1x128xf32, #tpu.memory_space<vmem>>, vector<1x128xf32>
        %cst_67 = arith.constant dense<0.000000e+00> : vector<16xf32>
        %146 = vector.multi_reduction <add>, %137, %cst_67 [1] : vector<16x128xf32> to vector<16xf32>
        %147 = vector.shape_cast %146 : vector<16xf32> to vector<16x1xf32>
        %cst_68 = arith.constant 3.125000e-02 : f32
        %148 = vector.broadcast %cst_68 : f32 to vector<16x1xf32>
        %149 = arith.mulf %147, %148 : vector<16x1xf32>
        %150 = vector.broadcast %149 : vector<16x1xf32> to vector<16x128xf32>
        %151 = arith.subf %137, %150 : vector<16x128xf32>
        %152 = tpu.iota {dimensions = array<i32: 1>} : vector<1x128xi32>
        %c32_i32_69 = arith.constant 32 : i32
        %153 = vector.broadcast %c32_i32_69 : i32 to vector<1x128xi32>
        %154 = arith.cmpi slt, %152, %153 : vector<1x128xi32>
        %155 = arith.extui %154 : vector<1x128xi1> to vector<1x128xi32>
        %156 = arith.sitofp %155 : vector<1x128xi32> to vector<1x128xf32>
        %157 = vector.broadcast %156 : vector<1x128xf32> to vector<16x128xf32>
        %158 = arith.mulf %151, %157 : vector<16x128xf32>
        %159 = arith.mulf %158, %158 : vector<16x128xf32>
        %cst_70 = arith.constant dense<0.000000e+00> : vector<16xf32>
        %160 = vector.multi_reduction <add>, %159, %cst_70 [1] : vector<16x128xf32> to vector<16xf32>
        %161 = vector.shape_cast %160 : vector<16xf32> to vector<16x1xf32>
        %cst_71 = arith.constant 3.125000e-02 : f32
        %162 = vector.broadcast %cst_71 : f32 to vector<16x1xf32>
        %163 = arith.mulf %161, %162 : vector<16x1xf32>
        %cst_72 = arith.constant 9.99999974E-6 : f32
        %164 = vector.broadcast %cst_72 : f32 to vector<16x1xf32>
        %165 = arith.addf %163, %164 : vector<16x1xf32>
        %166 = math.rsqrt %165 : vector<16x1xf32>
        %167 = vector.broadcast %166 : vector<16x1xf32> to vector<16x128xf32>
        %168 = arith.mulf %158, %167 : vector<16x128xf32>
        %169 = vector.broadcast %144 : vector<1x128xf32> to vector<16x128xf32>
        %170 = arith.mulf %168, %169 : vector<16x128xf32>
        %171 = vector.broadcast %145 : vector<1x128xf32> to vector<16x128xf32>
        %172 = arith.addf %170, %171 : vector<16x128xf32>
        %c0_73 = arith.constant 0 : index
        %c0_74 = arith.constant 0 : index
        %173 = vector.load %arg20[%c0_73, %c0_74] : memref<16x128xf32, #tpu.memory_space<vmem>>, vector<16x128xf32>
        tpu.vector_store %arg20[%c0_73, %c0_74], %172 {strides = array<i32>} : memref<16x128xf32, #tpu.memory_space<vmem>>, vector<16x128xf32>,
        %174 = tpu.iota {dimensions = array<i32: 0>} : vector<2x16xi32>
        %c0_75 = arith.constant 0 : index
        %c0_76 = arith.constant 0 : index
        %175 = vector.load %arg7[%c0_75, %c0_76] : memref<1x16xi32, #tpu.memory_space<vmem>>, vector<1x16xi32>
        %176 = vector.broadcast %175 : vector<1x16xi32> to vector<2x16xi32>
        %177 = arith.cmpi eq, %174, %176 : vector<2x16xi32>
        %178 = arith.extui %177 : vector<2x16xi1> to vector<2x16xi32>
        %179 = arith.sitofp %178 : vector<2x16xi32> to vector<2x16xf32>
        %cst_77 = arith.constant dense<0.000000e+00> : vector<2xf32>
        %180 = vector.multi_reduction <add>, %179, %cst_77 [1] : vector<2x16xf32> to vector<2xf32>
        %181 = vector.shape_cast %180 : vector<2xf32> to vector<2x1xf32>
        %cst_78 = arith.constant dense<0.000000e+00> : vector<2x128xf32>
        %182 = tpu.matmul %179, %172, %cst_78 {dimension_numbers = #tpu.dot_dimension_numbers<[1], [0], [0], [1], [0, 0, 1, 1], [], []>} : vector<2x16xf32>, vector<16x128xf32>, vector<2x128xf32> -> vector<2x128xf32>
        %cst_79 = arith.constant 1.000000e+00 : f32
        %183 = vector.broadcast %cst_79 : f32 to vector<2x1xf32>
        %184 = arith.maximumf %181, %183 : vector<2x1xf32>
        %185 = vector.broadcast %184 : vector<2x1xf32> to vector<2x128xf32>
        %186 = arith.divf %182, %185 : vector<2x128xf32>
        %c0_80 = arith.constant 0 : index
        %c0_81 = arith.constant 0 : index
        %187 = vector.load %arg16[%c0_80, %c0_81] : memref<128x128xf32, #tpu.memory_space<vmem>>, vector<128x128xf32>
        %cst_82 = arith.constant dense<0.000000e+00> : vector<2x128xf32>
        %188 = tpu.matmul %186, %187, %cst_82 {dimension_numbers = #tpu.dot_dimension_numbers<[1], [0], [0], [1], [0, 0, 1, 1], [], []>} : vector<2x128xf32>, vector<128x128xf32>, vector<2x128xf32> -> vector<2x128xf32>
        %c0_83 = arith.constant 0 : index
        %c0_84 = arith.constant 0 : index
        %189 = vector.load %arg17[%c0_83, %c0_84] : memref<1x128xf32, #tpu.memory_space<vmem>>, vector<1x128xf32>
        %190 = vector.broadcast %189 : vector<1x128xf32> to vector<2x128xf32>
        %191 = arith.addf %188, %190 : vector<2x128xf32>
        %c0_85 = arith.constant 0 : index
        %c0_86 = arith.constant 0 : index
        %192 = vector.load %arg18[%c0_85, %c0_86] : memref<1x128xf32, #tpu.memory_space<vmem>>, vector<1x128xf32>
        %c0_87 = arith.constant 0 : index
        %c0_88 = arith.constant 0 : index
        %193 = vector.load %arg19[%c0_87, %c0_88] : memref<1x128xf32, #tpu.memory_space<vmem>>, vector<1x128xf32>
        %cst_89 = arith.constant dense<0.000000e+00> : vector<2xf32>
        %194 = vector.multi_reduction <add>, %191, %cst_89 [1] : vector<2x128xf32> to vector<2xf32>
        %195 = vector.shape_cast %194 : vector<2xf32> to vector<2x1xf32>
        %cst_90 = arith.constant 3.125000e-02 : f32
        %196 = vector.broadcast %cst_90 : f32 to vector<2x1xf32>
        %197 = arith.mulf %195, %196 : vector<2x1xf32>
        %198 = vector.broadcast %197 : vector<2x1xf32> to vector<2x128xf32>
        %199 = arith.subf %191, %198 : vector<2x128xf32>
        %200 = tpu.iota {dimensions = array<i32: 1>} : vector<1x128xi32>
        %c32_i32_91 = arith.constant 32 : i32
        %201 = vector.broadcast %c32_i32_91 : i32 to vector<1x128xi32>
        %202 = arith.cmpi slt, %200, %201 : vector<1x128xi32>
        %203 = arith.extui %202 : vector<1x128xi1> to vector<1x128xi32>
        %204 = arith.sitofp %203 : vector<1x128xi32> to vector<1x128xf32>
        %205 = vector.broadcast %204 : vector<1x128xf32> to vector<2x128xf32>
        %206 = arith.mulf %199, %205 : vector<2x128xf32>
        %207 = arith.mulf %206, %206 : vector<2x128xf32>
        %cst_92 = arith.constant dense<0.000000e+00> : vector<2xf32>
        %208 = vector.multi_reduction <add>, %207, %cst_92 [1] : vector<2x128xf32> to vector<2xf32>
        %209 = vector.shape_cast %208 : vector<2xf32> to vector<2x1xf32>
        %cst_93 = arith.constant 3.125000e-02 : f32
        %210 = vector.broadcast %cst_93 : f32 to vector<2x1xf32>
        %211 = arith.mulf %209, %210 : vector<2x1xf32>
        %cst_94 = arith.constant 9.99999974E-6 : f32
        %212 = vector.broadcast %cst_94 : f32 to vector<2x1xf32>
        %213 = arith.addf %211, %212 : vector<2x1xf32>
        %214 = math.rsqrt %213 : vector<2x1xf32>
        %215 = vector.broadcast %214 : vector<2x1xf32> to vector<2x128xf32>
        %216 = arith.mulf %206, %215 : vector<2x128xf32>
        %217 = vector.broadcast %192 : vector<1x128xf32> to vector<2x128xf32>
        %218 = arith.mulf %216, %217 : vector<2x128xf32>
        %219 = vector.broadcast %193 : vector<1x128xf32> to vector<2x128xf32>
        %220 = arith.addf %218, %219 : vector<2x128xf32>
        %c0_95 = arith.constant 0 : index
        %c0_96 = arith.constant 0 : index
        %221 = vector.load %arg21[%c0_95, %c0_96] : memref<2x128xf32, #tpu.memory_space<vmem>>, vector<2x128xf32>
        tpu.vector_store %arg21[%c0_95, %c0_96], %220 {strides = array<i32>} : memref<2x128xf32, #tpu.memory_space<vmem>>, vector<2x128xf32>,
      } else {
      }
    } else {
    }
    return
  }
  func.func @transform_0(%arg0: i32, %arg1: i32) -> (i32, i32) {
    %c0_i32 = arith.constant 0 : i32
    %c0_i32_0 = arith.constant 0 : i32
    %c0_i32_1 = arith.constant 0 : i32
    return %c0_i32, %c0_i32_0 : i32, i32
  }
  func.func @transform_1(%arg0: i32, %arg1: i32) -> (i32, i32) {
    %c0_i32 = arith.constant 0 : i32
    %c0_i32_0 = arith.constant 0 : i32
    %c0_i32_1 = arith.constant 0 : i32
    return %c0_i32, %c0_i32_0 : i32, i32
  }
  func.func @transform_2(%arg0: i32, %arg1: i32) -> (i32, i32) {
    %c0_i32 = arith.constant 0 : i32
    %c0_i32_0 = arith.constant 0 : i32
    return %arg1, %c0_i32 : i32, i32
  }
  func.func @transform_3(%arg0: i32, %arg1: i32) -> (i32, i32) {
    %c0_i32 = arith.constant 0 : i32
    %c0_i32_0 = arith.constant 0 : i32
    return %arg1, %c0_i32 : i32, i32
  }
  func.func @transform_4(%arg0: i32, %arg1: i32) -> (i32, i32) {
    %c0_i32 = arith.constant 0 : i32
    %c0_i32_0 = arith.constant 0 : i32
    return %c0_i32, %arg1 : i32, i32
  }
  func.func @transform_5(%arg0: i32, %arg1: i32) -> (i32, i32) {
    %c0_i32 = arith.constant 0 : i32
    %c0_i32_0 = arith.constant 0 : i32
    %c0_i32_1 = arith.constant 0 : i32
    return %c0_i32, %c0_i32_0 : i32, i32
  }
  func.func @transform_6(%arg0: i32, %arg1: i32) -> (i32, i32, i32) {
    %c0_i32 = arith.constant 0 : i32
    %c0_i32_0 = arith.constant 0 : i32
    %c0_i32_1 = arith.constant 0 : i32
    return %arg0, %c0_i32, %c0_i32_0 : i32, i32, i32
  }
  func.func @transform_7(%arg0: i32, %arg1: i32) -> (i32, i32, i32) {
    %c0_i32 = arith.constant 0 : i32
    %c0_i32_0 = arith.constant 0 : i32
    %c0_i32_1 = arith.constant 0 : i32
    return %arg0, %c0_i32, %c0_i32_0 : i32, i32, i32
  }
  func.func @transform_8(%arg0: i32, %arg1: i32) -> (i32, i32, i32) {
    %c0_i32 = arith.constant 0 : i32
    %c0_i32_0 = arith.constant 0 : i32
    %c0_i32_1 = arith.constant 0 : i32
    return %arg0, %c0_i32, %c0_i32_0 : i32, i32, i32
  }
  func.func @transform_9(%arg0: i32, %arg1: i32) -> (i32, i32, i32) {
    %c0_i32 = arith.constant 0 : i32
    %c0_i32_0 = arith.constant 0 : i32
    %c0_i32_1 = arith.constant 0 : i32
    return %arg0, %c0_i32, %c0_i32_0 : i32, i32, i32
  }
  func.func @transform_10(%arg0: i32, %arg1: i32) -> (i32, i32, i32) {
    %c0_i32 = arith.constant 0 : i32
    %c0_i32_0 = arith.constant 0 : i32
    %c0_i32_1 = arith.constant 0 : i32
    return %arg0, %c0_i32, %c0_i32_0 : i32, i32, i32
  }
  func.func @transform_11(%arg0: i32, %arg1: i32) -> (i32, i32, i32) {
    %c0_i32 = arith.constant 0 : i32
    %c0_i32_0 = arith.constant 0 : i32
    %c0_i32_1 = arith.constant 0 : i32
    return %arg0, %c0_i32, %c0_i32_0 : i32, i32, i32
  }
  func.func @transform_12(%arg0: i32, %arg1: i32) -> (i32, i32) {
    %c0_i32 = arith.constant 0 : i32
    %c0_i32_0 = arith.constant 0 : i32
    %c0_i32_1 = arith.constant 0 : i32
    return %c0_i32, %c0_i32_0 : i32, i32
  }
  func.func @transform_13(%arg0: i32, %arg1: i32) -> (i32, i32) {
    %c0_i32 = arith.constant 0 : i32
    %c0_i32_0 = arith.constant 0 : i32
    %c0_i32_1 = arith.constant 0 : i32
    return %c0_i32, %c0_i32_0 : i32, i32
  }
  func.func @transform_14(%arg0: i32, %arg1: i32) -> (i32, i32) {
    %c0_i32 = arith.constant 0 : i32
    %c0_i32_0 = arith.constant 0 : i32
    %c0_i32_1 = arith.constant 0 : i32
    return %c0_i32, %c0_i32_0 : i32, i32
  }
  func.func @transform_15(%arg0: i32, %arg1: i32) -> (i32, i32) {
    %c0_i32 = arith.constant 0 : i32
    %c0_i32_0 = arith.constant 0 : i32
    %c0_i32_1 = arith.constant 0 : i32
    return %c0_i32, %c0_i32_0 : i32, i32
  }
  func.func @transform_16(%arg0: i32, %arg1: i32) -> (i32, i32) {
    %c0_i32 = arith.constant 0 : i32
    %c0_i32_0 = arith.constant 0 : i32
    %c0_i32_1 = arith.constant 0 : i32
    return %c0_i32, %c0_i32_0 : i32, i32
  }
  func.func @transform_17(%arg0: i32, %arg1: i32) -> (i32, i32) {
    %c0_i32 = arith.constant 0 : i32
    %c0_i32_0 = arith.constant 0 : i32
    %c0_i32_1 = arith.constant 0 : i32
    return %c0_i32, %c0_i32_0 : i32, i32
  }
  func.func @transform_18(%arg0: i32, %arg1: i32) -> (i32, i32) {
    %c0_i32 = arith.constant 0 : i32
    %c0_i32_0 = arith.constant 0 : i32
    %c0_i32_1 = arith.constant 0 : i32
    return %c0_i32, %c0_i32_0 : i32, i32
  }
  func.func @transform_19(%arg0: i32, %arg1: i32) -> (i32, i32) {
    %c0_i32 = arith.constant 0 : i32
    %c0_i32_0 = arith.constant 0 : i32
    %c0_i32_1 = arith.constant 0 : i32
    return %c0_i32, %c0_i32_0 : i32, i32
  }
}

</mosaic_0001>

<bundles_post_ra>
// kernel: tpu_custom_call.1
= control target key start
LH: loop header
LB: loop body
LE: loop exit
PB: predicated region body
PF: predicated region fallthrough
CT: control target
= control target key end

     0   :  { %s6224_s0 = inlined_call_operand.hbm [shape: f32[2,2], index: 0, kind: input, shape index: {}]   ;;  %s6225_s1 = inlined_call_operand.hbm [shape: f32[16,128], index: 1, kind: input, shape index: {}]   ;;  %s6226_s2 = inlined_call_operand.vmem [shape: f32[512,128], index: 2, kind: input, shape index: {}]   ;;  %s6227_s3 = inlined_call_operand.vmem [shape: s32[512,1], index: 3, kind: input, shape index: {}]   ;;  %s6228_s4 = inlined_call_operand.vmem [shape: s32[1,512], index: 4, kind: input, shape index: {}]   ;;  %s6229_s5 = inlined_call_operand.vmem [shape: s32[1,16], index: 5, kind: input, shape index: {}]   ;;  %s6230_s6 = inlined_call_operand.hbm [shape: f32[2,128,128], index: 6, kind: input, shape index: {}]   ;;  %s6231_s7 = inlined_call_operand.vmem [shape: f32[2,1,128], index: 7, kind: input, shape index: {}]   ;;  %s6232_s8 = inlined_call_operand.vmem [shape: f32[2,1,128], index: 8, kind: input, shape index: {}]   ;;  %s6233_s9 = inlined_call_operand.hbm [shape: f32[2,1,128], index: 9, kind: input, shape index: {}]   ;;  %s6234_s10 = inlined_call_operand.hbm [shape: f32[2,128,128], index: 10, kind: input, shape index: {}]   ;;  %s6235_s11 = inlined_call_operand.hbm [shape: f32[2,1,128], index: 11, kind: input, shape index: {}]   ;;  %s6236_s12 = inlined_call_operand.vmem [shape: f32[1,128], index: 12, kind: input, shape index: {}]   ;;  %s6237_s13 = inlined_call_operand.vmem [shape: f32[1,128], index: 13, kind: input, shape index: {}]   ;;  %s6238_s14 = inlined_call_operand.hbm [shape: f32[128,128], index: 14, kind: input, shape index: {}]   ;;  %s6239_s15 = inlined_call_operand.vmem [shape: f32[1,128], index: 15, kind: input, shape index: {}]   ;;  %s6240_s16 = inlined_call_operand.vmem [shape: f32[1,128], index: 16, kind: input, shape index: {}]   ;;  %s6241_s17 = inlined_call_operand.vmem [shape: f32[1,128], index: 17, kind: input, shape index: {}]   ;;  %s6242_s18 = inlined_call_operand.hbm [shape: f32[16,128], index: 18, kind: output, shape index: {0}]   ;;  %s6243_s19 = inlined_call_operand.hbm [shape: f32[2,128], index: 19, kind: output, shape index: {1}]  }
   0x1   :  { %6343 = sst [smem:[#allocation115_spill]] %s6224_s0 }
   0x2   :  { %6344 = sst [smem:[#allocation116_spill]] %s6225_s1 }
   0x3   :  { %6345 = sst [smem:[#allocation117_spill]] %s6226_s2 }
   0x4   :  { %6346 = sst [smem:[#allocation118_spill]] %s6227_s3 }
   0x5   :  { %6347 = sst [smem:[#allocation119_spill]] %s6229_s5 }
   0x6   :  { %6348 = sst [smem:[#allocation120_spill]] %s6230_s6 }
   0x7   :  { %6349 = sst [smem:[#allocation121_spill]] %s6234_s10 }
   0x8   :  { %6350 = sst [smem:[#allocation122_spill]] %s6236_s12 }
   0x9   :  { %6351 = sst [smem:[#allocation123_spill]] %s6237_s13 }
   0xa   :  { %6352 = sst [smem:[#allocation124_spill]] %s6238_s14 }
   0xb   :  { %6353 = sst [smem:[#allocation125_spill]] %s6239_s15 }
   0xc   :  { %6354 = sst [smem:[#allocation126_spill]] %s6240_s16 }
   0xd   :  { %6355 = sst [smem:[#allocation127_spill]] %s6241_s17 }
   0xe   :  { %6356 = sst [smem:[#allocation128_spill]] %s6242_s18 }
   0xf   :  { %6357 = sst [smem:[#allocation129_spill]] %s6243_s19 }
  0x10   :  { %25 = vsyncpa [#allocation9], 0 }
  0x11   :  { %26 = vsyncpa [#allocation7], 0 }
  0x12   :  { %27 = vsyncpa [#allocation12], 0 }
  0x13   :  { %29 = vsyncpa [#allocation12 + $0x1], 0 }
  0x14   :  { %30 = vsyncpa [#allocation15], 0 }
  0x15   :  { %32 = vsyncpa [#allocation15 + $0x1], 0 }
  0x16   :  { %33 = vsyncpa [#allocation18], 0 }
  0x17   :  { %34 = vsyncpa [#allocation8], 0 }
  0x18   :  { %35 = vsyncpa [#allocation21], 0  ;;  %s4142_s0 = smov 0   ;;  %s4144_s30 = smov 0  }
  0x19   :  { %s4146_s20 = smov 0   ;;  %s4148_s21 = smov 0  }
  0x1a   :  { %s4150_s1 = smov 0   ;;  %s4152_s22 = smov 0  }
  0x1b LB: > { %6358 = sst [smem:[#allocation29_spill]] %s4014_s20  ;;  %s53_s2 = sadd.s32 1, %s4022_s1  ;;  %s4026_s22 = sphi %s4152_s22, %s41_s22   ;;  %s4022_s1 = sphi %s4150_s1, %s6580_s1   ;;  %s4018_s21 = sphi %s4148_s21, %s6579_s21   ;;  %s4014_s20 = sphi %s4146_s20, %s6575_s20   ;;  %s4010_s30 = sphi %s4144_s30, %s6578_s30   ;;  %s4006_s0 = sphi %s4142_s0, %s6577_s0  }
  0x1c   : > { %6359 = sst [smem:[#allocation30_spill]] %s4026_s22  ;;  %s201_s23 = sadd.s32 1, %s4014_s20 }
  0x1d   : > { %p55_p0 = scmp.ge.s32.totalorder %s53_s2, 2  ;;  %p208_p1 = scmp.ne.s32.totalorder %s4014_s20, %s4010_s30 }
  0x1e   : > { %p209_p2 = scmp.eq.s32.totalorder %s4026_s22, 0  ;;  %p3464_p5 = scmp.lt.s32.totalorder %s4026_s22, 2 }
  0x1f   : > { %s6582_s2 = smov (%p55_p0, %s53_s2), 0  ;;  %s618_s3 = sand.u32 1, %s4026_s22  }
  0x20   : > { %6360 = sst [smem:[#allocation31_spill]] %s6582_s2  ;;  %p4179_p3 = por %p209_p2, %p208_p1 }
  0x21   : > { %s198_s25 = ssub.s32 %s4022_s1, %s6582_s2  ;;  %s4188_s26 = sand.u32 1, %s4014_s20  }
  0x22   : > { %p199_p4 = scmp.eq.s32.totalorder %s198_s25, 0  ;;  %s3242_s28 = sshll.u32 %s4188_s26, 7 }
  0x23   : > { %s3391_s29 = sshll.u32 %s4022_s1, 7  ;;  %s6363_s6 = sld [smem:[#allocation120_spill]] }
  0x24   : > { %s4191_s27 = scalar_select %p199_p4, %s4014_s20, %s201_s23  }
  0x25   : > { %s622_s16 = scalar_lea.vmem [#allocation11], %s3242_s28  ;;  %p4200_p6 = pnand %p3464_p5, %p4179_p3 }
  0x26   : > { %6362 = sst [smem:[#allocation32_spill]] %s4191_s27  ;;  %s630_s15 = sshll.u32 %s622_s16, 4  ;;  %s631_s15 = int_to_ptr.vmem [resolvable:$true] %s630_s15 }
  0x27   : > { %s6365_s10 = sld [smem:[#allocation121_spill]]  ;;  %s4207_s16 = scalar_lea.sflag [#allocation12], %s618_s3 }
  0x28   : > { %s6249_s19 = smov 8   ;;  %s4215_s2 = scalar_lea.sflag [#allocation15], %s618_s3 }
  0x29   : > { %s627_s17 = scalar_lea.hbm %s6363_s6, %s3391_s29  ;;  %s673_s6 = scalar_lea.vmem [#allocation14], %s3242_s28 }
  0x2a   : > { %s628_s13 = sshll.u32 %s627_s17, 4  ;;  %s6247_s17 = smov 128   ;;  %s629_s13 = int_to_ptr.hbm [resolvable:$true] %s628_s13 }
  0x2b   : > { %3451 = dma.hbm_to_vmem [thread:$0]  (!%p4200_p6), %s629_s13, 2048, %s631_s15, %s4207_s16, %s6247_s17, %s6247_s17, %s6249_s19  }
  0x2c   : > { %s681_s27 = sshll.u32 %s673_s6, 4  ;;  %p214_p7 = scmp.ne.s32.totalorder %s4010_s30, %s4006_s0  ;;  %s682_s27 = int_to_ptr.vmem [resolvable:$true] %s681_s27 }
  0x2d   : > { %s678_s18 = scalar_lea.hbm %s6365_s10, %s3391_s29  ;;  %s4224_s29 = sadd.s32 4294967295, %s4026_s22  }
  0x2e   : > { %s679_s24 = sshll.u32 %s678_s18, 4  ;;  %p215_p8 = scmp.eq.s32.totalorder %s4224_s29, 0  ;;  %s680_s24 = int_to_ptr.hbm [resolvable:$true] %s679_s24 }
  0x2f   : > { %3457 = dma.hbm_to_vmem [thread:$0]  (!%p4200_p6), %s680_s24, 2048, %s682_s27, %s4215_s2, %s6247_s17, %s6247_s17, %s6249_s19  }
  0x30   : > { %p3234_p9 = scmp.ge.s32.totalorder %s4026_s22, 1  ;;  %p523_p10 = scmp.lt.s32.totalorder %s4026_s22, 3 }
  0x31   : > { %p4233_p11 = por %p215_p8, %p214_p7  ;;  %s6367_s3 = sld [smem:[#allocation115_spill]] }
  0x32   : > { %p4240_p12 = pnand %p3234_p9, %p523_p10  ;;  %s6369_s18 = sld [smem:[#allocation116_spill]] }
  0x33   : > { %s6370_s14 = sld [smem:[#allocation124_spill]]  ;;  %s4030_s15 = smov [#allocation10]  }
  0x34   : > { %p3438_p13 = pneg %p4240_p12  ;;  %s4031_s23 = smov [#allocation6]  }
  0x35   : > { %s6371_s0 = smov 8   ;;  %s4032_s10 = smov [#allocation17]  }
  0x36   : > { %p3439_p0 = pnand %p3438_p13, %p215_p8  ;;  %s595_s17 = sshll.u32 %s4032_s10, 4  ;;  %s596_s17 = int_to_ptr.vmem [resolvable:$true] %s595_s17 }
  0x37   : > { %s535_s28 = sshll.u32 %s6367_s3, 4  ;;  %s546_s3 = sshll.u32 %s4030_s15, 4  ;;  %s536_s28 = int_to_ptr.hbm [resolvable:$true] %s535_s28  ;;  %s547_s3 = int_to_ptr.vmem [resolvable:$true] %s546_s3 }
  0x38   : > { %s544_s24 = sshll.u32 %s6369_s18, 4  ;;  %s6372_s18 = smov 128   ;;  %s545_s24 = int_to_ptr.hbm [resolvable:$true] %s544_s24 }
  0x39   : > { %s593_s13 = sshll.u32 %s6370_s14, 4  ;;  %s658_s15 = scalar_lea.hbm %s6233_s9, %s4022_s1  ;;  %s594_s13 = int_to_ptr.hbm [resolvable:$true] %s593_s13 }
  0x3a   : > { %3441 = dma.hbm_to_smem (!%p3439_p0), %s536_s28, 32, %s4031_s23, [#allocation9]  }
  0x3b   : > { %3444 = dma.hbm_to_vmem [thread:$0]  (!%p3439_p0), %s545_s24, 256, %s547_s3, [#allocation7], %s6372_s18, %s6372_s18, %s6371_s0  }
  0x3c   : > { %3447 = dma.hbm_to_vmem [thread:$0]  (!%p3439_p0), %s594_s13, 2048, %s596_s17, [#allocation18], %s6372_s18, %s6372_s18, %s6371_s0  }
  0x3d   : > { %s660_s20 = sshll.u32 %s658_s15, 4  ;;  %s655_s22 = scalar_lea.vmem [#allocation13], %s4188_s26  ;;  %s661_s20 = int_to_ptr.hbm [resolvable:$true] %s660_s20 }
  0x3e   : > { %s662_s28 = sshll.u32 %s655_s22, 4  ;;  %s697_s3 = scalar_lea.hbm %s6235_s11, %s4022_s1  ;;  %s663_s28 = int_to_ptr.vmem [resolvable:$true] %s662_s28 }
  0x3f   : > { %3454 = dma.hbm_to_vmem [thread:$0]  (!%p4200_p6), %s661_s20, 16, %s663_s28, %s4207_s16  }
  0x40   : > { %s699_s23 = sshll.u32 %s697_s3, 4  ;;  %s694_s12 = scalar_lea.vmem [#allocation16], %s4188_s26  ;;  %s700_s23 = int_to_ptr.hbm [resolvable:$true] %s699_s23 }
  0x41   : > { %s701_s5 = sshll.u32 %s694_s12, 4  ;;  %710 = sbr.rel (%p4240_p12) target bundleno = 2402 (0x962), region = 92  ;;  %s702_s5 = int_to_ptr.vmem [resolvable:$true] %s701_s5 }
  0x42   : > { %3460 = dma.hbm_to_vmem [thread:$0]  (!%p4200_p6), %s700_s23, 16, %s702_s5, %s4215_s2  }
  0x46   : > { %3977 = dma.done.wait (%p215_p8), [#allocation9], 32  }
  0x47   : > { %3979 = vsyncadd (%p215_p8), [#allocation9], 4294967264 }
  0x48   : > { %3981 = dma.done.wait (%p215_p8), [#allocation7], 256  }
  0x49   : > { %3983 = vsyncadd (%p215_p8), [#allocation7], 4294967040  ;;  %s722_s12 = sand.u32 1, %s4224_s29   ;;  %s4288_s5 = sand.u32 1, %s4010_s30  }
  0x4a   : > { %s3251_s14 = sshll.u32 %s4288_s5, 7  ;;  %s723_s20 = scalar_lea.sflag [#allocation12], %s722_s12 }
  0x4b   : > { %s4291_s22 = scalar_lea.vmem [#allocation11], %s3251_s14 }
  0x4c   : > { %3985 = dma.done.wait (%p4233_p11), %s723_s20, 2064  }
  0x4d   : > { %3987 = vsyncadd (%p4233_p11), %s723_s20, 4294965232  ;;  %s735_s26 = scalar_lea.vmem [#allocation13], %s4288_s5  ;;  %s742_s25 = scalar_lea.sflag [#allocation15], %s722_s12 }
  0x4e   : > { %s4298_s16 = scalar_lea.vmem [#allocation14], %s3251_s14 }
  0x4f   : > { %3989 = dma.done.wait (%p4233_p11), %s742_s25, 2064  }
  0x50   : > { %3991 = vsyncadd (%p4233_p11), %s742_s25, 4294965232  ;;  %s754_s2 = scalar_lea.vmem [#allocation16], %s4288_s5 }
  0x51   : > { %3993 = dma.done.wait (%p215_p8), [#allocation18], 2048  }
  0x52   : > { %3995 = vsyncadd (%p215_p8), [#allocation18], 4294965248 }
  0x53   : > { %765 = sfence }
  0x54   : > { %p861_p1 = scmp.lt.s32.totalorder %s4018_s21, 1  ;;  %p868_p2 = scmp.eq.s32.totalorder %s4018_s21, 0 }
  0x55   : > { %v874_v0 = vld [vmem:[#allocation10] sm:$0xff] (%p868_p2)  ;;  %v875_v1 = vld [vmem:[#allocation10 + $0x8] sm:$0xff] (%p868_p2) }
  0x56   : > { %s4312_s27 = scalar_select %p861_p1, %s4018_s21, 1  ;;  %876 = vst [vmem:[#allocation2] sm:$0xff] (%p868_p2), %v874_v0  ;;  %v3398_v2 = vpack.c.bf16 (%p868_p2), %v875_v1, %v874_v0 }
  0x57   : > { %873 = sbr.rel (!%p868_p2) target bundleno = 92 (0x5c), region = 124  ;;  %877 = vst [vmem:[#allocation2 + $0x8] sm:$0xff] (%p868_p2), %v875_v1 }
  0x58   : > { %s863_s0 = scalar_lea.vmem %s6231_s7, %s4312_s27  ;;  %s866_s19 = scalar_lea.vmem %s6232_s8, %s4312_s27  ;;  %3399 = vst [vmem:[#allocation3] sm:$0xff] (%p868_p2), %v3398_v2  }
  0x5c PF: > { %s6373_s24 = sld [smem:[#allocation118_spill]]  ;;  %v4033_v6 = vmov 0   ;;  %v6253_v28 = vmov 0.0   ;;  %v6254_v54 = vlaneseq  ;;  %vm1448_vm2 = vcmask 130048   ;;  %s3255_s20 = sshll.u32 %s4018_s21, 7 }
  0x5d   : > { %3536 = vset.pattern.permute.xlu2 %v4033_v6  ;;  %3535 = vset.pattern.permute.xlu1 %v4033_v6  ;;  %887 = vst [vmem:[#allocation4 + $0x8] sm:$0xff] %v6253_v28  ;;  %s6375_s15 = sld [smem:[#allocation117_spill]] }
  0x5e   : > { %3534 = vset.pattern.permute.xlu0 %v4033_v6  ;;  %888 = vst [vmem:[#allocation4 + $0x10] sm:$0xff] %v6253_v28  ;;  %v4471_v59 = vand.u32 127, %v6254_v54  ;;  %s893_s25 = sld [smem:[#allocation6 + %s3255_s20]] }
  0x5f   : > { %889 = vst [vmem:[#allocation4] sm:$0xff] %v6253_v28  ;;  %v3394_v42 = vld [vmem:[#allocation3] sm:$0xff] }
  0x60   : > { %890 = vst [vmem:[#allocation4 + $0x18] sm:$0xff] %v6253_v28  ;;  %1552 = vmatpush.bf16.msra.mxu0 %v3394_v42  ;;  %3406 = vmatpush.bf16.msra.mxu2 %v3394_v42 }
  0x61   : > { %3407 = vmatpush.bf16.msra.mxu3 %v3394_v42  ;;  %3405 = vmatpush.bf16.msra.mxu1 %v3394_v42  ;;  %6374 = vst [vmem:[#allocation33_spill] sm:$0xff] %v4471_v59 }
  0x62   : > { %v900_v3 = vld [vmem:[%s6373_s24 + $0x20] sm:$0xff]  ;;  %v898_v4 = vld [vmem:[%s6373_s24 + $0x10] sm:$0xff]  ;;  %v901_v7 = vld [vmem:[%s6373_s24 + $0x28] sm:$0xff] }
  0x63   : > { %v896_v5 = vld [vmem:[%s6373_s24] sm:$0xff]  ;;  %973 = vperm.xlu2 %3536, %v900_v3   ;;  %967 = vperm.xlu1 %3535, %v898_v4   ;;  %v899_v8 = vld [vmem:[%s6373_s24 + $0x18] sm:$0xff]  ;;  %v897_v9 = vld [vmem:[%s6373_s24 + $0x8] sm:$0xff] }
  0x64   : > { %961 = vperm.xlu0 %3534, %v896_v5   ;;  %v904_v10 = vld [vmem:[%s6373_s24 + $0x40] sm:$0xff]  ;;  %v903_v11 = vld [vmem:[%s6373_s24 + $0x38] sm:$0xff]  ;;  %v902_v12 = vld [vmem:[%s6373_s24 + $0x30] sm:$0xff] }
  0x65   : > { %v907_v13 = vld [vmem:[%s6373_s24 + $0x58] sm:$0xff]  ;;  %v906_v14 = vld [vmem:[%s6373_s24 + $0x50] sm:$0xff]  ;;  %v905_v15 = vld [vmem:[%s6373_s24 + $0x48] sm:$0xff] }
  0x66   : > { %v928_v16 = vld [vmem:[%s6373_s24 + $0x100] sm:$0xff]  ;;  %v909_v17 = vld [vmem:[%s6373_s24 + $0x68] sm:$0xff]  ;;  %v930_v22 = vld [vmem:[%s6373_s24 + $0x110] sm:$0xff] }
  0x67   : > { %v908_v18 = vld [vmem:[%s6373_s24 + $0x60] sm:$0xff]  ;;  %v945_v19 = vld [vmem:[%s6373_s24 + $0x188] sm:$0xff]  ;;  %v911_v23 = vld [vmem:[%s6373_s24 + $0x78] sm:$0xff] }
  0x68   : > { %v944_v20 = vld [vmem:[%s6373_s24 + $0x180] sm:$0xff]  ;;  %v929_v21 = vld [vmem:[%s6373_s24 + $0x108] sm:$0xff]  ;;  %v910_v24 = vld [vmem:[%s6373_s24 + $0x70] sm:$0xff] }
  0x69   : > { %v947_v25 = vld [vmem:[%s6373_s24 + $0x198] sm:$0xff]  ;;  %v946_v26 = vld [vmem:[%s6373_s24 + $0x190] sm:$0xff]  ;;  %v932_v29 = vld [vmem:[%s6373_s24 + $0x120] sm:$0xff] }
  0x6a   : > { %v931_v27 = vld [vmem:[%s6373_s24 + $0x118] sm:$0xff]  ;;  %v913_v30 = vld [vmem:[%s6373_s24 + $0x88] sm:$0xff]  ;;  %v912_v31 = vld [vmem:[%s6373_s24 + $0x80] sm:$0xff] }
  0x6b   : > { %976 = vperm.xlu2 %3536, %v901_v7   ;;  %970 = vperm.xlu1 %3535, %v899_v8   ;;  %v949_v32 = vld [vmem:[%s6373_s24 + $0x1a8] sm:$0xff]  ;;  %v948_v33 = vld [vmem:[%s6373_s24 + $0x1a0] sm:$0xff]  ;;  %v934_v35 = vld [vmem:[%s6373_s24 + $0x130] sm:$0xff] }
  0x6c   : > { %964 = vperm.xlu0 %3534, %v897_v9   ;;  %v933_v34 = vld [vmem:[%s6373_s24 + $0x128] sm:$0xff]  ;;  %v915_v36 = vld [vmem:[%s6373_s24 + $0x98] sm:$0xff]  ;;  %v914_v37 = vld [vmem:[%s6373_s24 + $0x90] sm:$0xff] }
  0x6d   : > { %v951_v38 = vld [vmem:[%s6373_s24 + $0x1b8] sm:$0xff]  ;;  %v950_v39 = vld [vmem:[%s6373_s24 + $0x1b0] sm:$0xff]  ;;  %v936_v43 = vld [vmem:[%s6373_s24 + $0x140] sm:$0xff] }
  0x6e   : > { %v935_v40 = vld [vmem:[%s6373_s24 + $0x138] sm:$0xff]  ;;  %v917_v44 = vld [vmem:[%s6373_s24 + $0xa8] sm:$0xff]  ;;  %v916_v45 = vld [vmem:[%s6373_s24 + $0xa0] sm:$0xff] }
  0x6f   : > { %v953_v47 = vld [vmem:[%s6373_s24 + $0x1c8] sm:$0xff]  ;;  %v952_v48 = vld [vmem:[%s6373_s24 + $0x1c0] sm:$0xff]  ;;  %v938_v51 = vld [vmem:[%s6373_s24 + $0x150] sm:$0xff] }
  0x70   : > { %v937_v49 = vld [vmem:[%s6373_s24 + $0x148] sm:$0xff]  ;;  %v919_v52 = vld [vmem:[%s6373_s24 + $0xb8] sm:$0xff]  ;;  %v918_v53 = vld [vmem:[%s6373_s24 + $0xb0] sm:$0xff] }
  0x71   : > { %v955_v58 = vld [vmem:[%s6373_s24 + $0x1d8] sm:$0xff]  ;;  %v954_v60 = vld [vmem:[%s6373_s24 + $0x1d0] sm:$0xff]  ;;  %v924_v3 = vld [vmem:[%s6373_s24 + $0xe0] sm:$0xff] }
  0x72   : > { %v939_v61 = vld [vmem:[%s6373_s24 + $0x158] sm:$0xff]  ;;  %v921_v5 = vld [vmem:[%s6373_s24 + $0xc8] sm:$0xff]  ;;  %v920_v6 = vld [vmem:[%s6373_s24 + $0xc0] sm:$0xff] }
  0x73   : > { %985 = vperm.xlu2 %3536, %v904_v10   ;;  %982 = vperm.xlu1 %3535, %v903_v11   ;;  %v941_v10 = vld [vmem:[%s6373_s24 + $0x168] sm:$0xff]  ;;  %v940_v11 = vld [vmem:[%s6373_s24 + $0x160] sm:$0xff] }
  0x74   : > { %979 = vperm.xlu0 %3534, %v902_v12   ;;  %v925_v12 = vld [vmem:[%s6373_s24 + $0xe8] sm:$0xff] }
  0x7b   : > { %994 = vperm.xlu2 %3536, %v907_v13   ;;  %991 = vperm.xlu1 %3535, %v906_v14  }
  0x7c   : > { %988 = vperm.xlu0 %3534, %v905_v15  }
  0x83   : > { %1057 = vperm.xlu2 %3536, %v928_v16   ;;  %1000 = vperm.xlu1 %3535, %v909_v17  }
  0x84   : > { %997 = vperm.xlu0 %3534, %v908_v18  }
  0x8b   : > { %1108 = vperm.xlu2 %3536, %v945_v19   ;;  %1105 = vperm.xlu1 %3535, %v944_v20   ;;  %v922_v20 = vld [vmem:[%s6373_s24 + $0xd0] sm:$0xff] }
  0x8c   : > { %1060 = vperm.xlu0 %3534, %v929_v21  }
  0x93   : > { %1063 = vperm.xlu2 %3536, %v930_v22   ;;  %1006 = vperm.xlu1 %3535, %v911_v23   ;;  %v957_v23 = vld [vmem:[%s6373_s24 + $0x1e8] sm:$0xff] }
  0x94   : > { %1003 = vperm.xlu0 %3534, %v910_v24   ;;  %v956_v24 = vld [vmem:[%s6373_s24 + $0x1e0] sm:$0xff] }
  0x9b   : > { %1114 = vperm.xlu2 %3536, %v947_v25   ;;  %1111 = vperm.xlu1 %3535, %v946_v26  }
  0x9c   : > { %1066 = vperm.xlu0 %3534, %v931_v27  }
  0xa3   : > { %1069 = vperm.xlu2 %3536, %v932_v29   ;;  %1012 = vperm.xlu1 %3535, %v913_v30  }
  0xa4   : > { %1009 = vperm.xlu0 %3534, %v912_v31   ;;  %v927_v31 = vld [vmem:[%s6373_s24 + $0xf8] sm:$0xff] }
  0xab   : > { %1120 = vperm.xlu2 %3536, %v949_v32   ;;  %1117 = vperm.xlu1 %3535, %v948_v33   ;;  %v926_v33 = vld [vmem:[%s6373_s24 + $0xf0] sm:$0xff] }
  0xac   : > { %1072 = vperm.xlu0 %3534, %v933_v34   ;;  %v923_v34 = vld [vmem:[%s6373_s24 + $0xd8] sm:$0xff] }
  0xb3   : > { %1075 = vperm.xlu2 %3536, %v934_v35   ;;  %1018 = vperm.xlu1 %3535, %v915_v36  }
  0xb4   : > { %1015 = vperm.xlu0 %3534, %v914_v37  }
  0xbb   : > { %1126 = vperm.xlu2 %3536, %v951_v38   ;;  %1123 = vperm.xlu1 %3535, %v950_v39  }
  0xbc   : > { %1078 = vperm.xlu0 %3534, %v935_v40  }
  0xbd   : > { %v4434_v41 = vpop.permute.xlu2 %973 }
  0xbe   : > { %vm1156_vm9 = vcmp.eq.s32.totalorder %v4434_v41, %v4471_v59 }
  0xbf   : > { %v3260_v36 = vsel %vm1156_vm9, 1.0, %v6253_v28 }
  0xc3   : > { %1081 = vperm.xlu2 %3536, %v936_v43   ;;  %1024 = vperm.xlu1 %3535, %v917_v44  }
  0xc4   : > { %1021 = vperm.xlu0 %3534, %v916_v45  }
  0xc5   : > { %v4445_v46 = vpop.permute.xlu2 %976 }
  0xc6   : > { %vm1157_vm10 = vcmp.eq.s32.totalorder %v4445_v46, %v4471_v59 }
  0xc7   : > { %v3261_v37 = vsel %vm1157_vm10, 1.0, %v6253_v28 }
  0xc8   : > { %v1346_v44 = vpack.c.bf16 %v3261_v37, %v3260_v36 }
  0xcb   : > { %1132 = vperm.xlu2 %3536, %v953_v47   ;;  %1129 = vperm.xlu1 %3535, %v952_v48   ;;  %v958_v47 = vld [vmem:[%s6373_s24 + $0x1f0] sm:$0xff]  ;;  %v943_v48 = vld [vmem:[%s6373_s24 + $0x178] sm:$0xff] }
  0xcc   : > { %1084 = vperm.xlu0 %3534, %v937_v49   ;;  %v942_v49 = vld [vmem:[%s6373_s24 + $0x170] sm:$0xff] }
  0xcd   : > { %v4456_v50 = vpop.permute.xlu2 %985 }
  0xce   : > { %vm1160_vm10 = vcmp.eq.s32.totalorder %v4456_v50, %v4471_v59 }
  0xd3   : > { %1087 = vperm.xlu2 %3536, %v938_v51   ;;  %1030 = vperm.xlu1 %3535, %v919_v52  }
  0xd4   : > { %1027 = vperm.xlu0 %3534, %v918_v53  }
  0xd5   : > { %v995_v55 = vpop.permute.xlu2 %994  ;;  %v968_v56 = vpop.permute.xlu1 %967 }
  0xd6   : > { %v962_v57 = vpop.permute.xlu0 %961  ;;  %vm1163_vm3 = vcmp.eq.s32.totalorder %v995_v55, %v4471_v59  ;;  %vm1154_vm4 = vcmp.eq.s32.totalorder %v968_v56, %v4471_v59 }
  0xd7   : > { %vm1152_vm0 = vcmp.eq.s32.totalorder %v962_v57, %v4471_v59  ;;  %v4514_v14 = vsel %vm1163_vm3, 1.0, %v6253_v28  ;;  %v3258_v15 = vsel %vm1154_vm4, 1.0, %v6253_v28 }
  0xd8   : > { %v3256_v1 = vsel %vm1152_vm0, 1.0, %v6253_v28 }
  0xdb   : > { %1138 = vperm.xlu2 %3536, %v955_v58   ;;  %1135 = vperm.xlu1 %3535, %v954_v60   ;;  %v959_v58 = vld [vmem:[%s6373_s24 + $0x1f8] sm:$0xff] }
  0xdc   : > { %1090 = vperm.xlu0 %3534, %v939_v61  }
  0xdd   : > { %v4480_v62 = vpop.permute.xlu2 %1057  ;;  %v971_v63 = vpop.permute.xlu1 %970 }
  0xde   : > { %v965_v0 = vpop.permute.xlu0 %964  ;;  %vm1155_vm5 = vcmp.eq.s32.totalorder %v971_v63, %v4471_v59  ;;  %vm1184_vm11 = vcmp.eq.s32.totalorder %v4480_v62, %v4471_v59 }
  0xdf   : > { %vm1153_vm1 = vcmp.eq.s32.totalorder %v965_v0, %v4471_v59  ;;  %v3259_v16 = vsel %vm1155_vm5, 1.0, %v6253_v28  ;;  %v3288_v40 = vsel %vm1184_vm11, 1.0, %v6253_v28 }
  0xe0   : > { %v3257_v2 = vsel %vm1153_vm1, 1.0, %v6253_v28  ;;  %v1345_v21 = vpack.c.bf16 %v3259_v16, %v3258_v15  ;;  %v3264_v15 = vsel %vm1160_vm10, 1.0, %v6253_v28 }
  0xe1   : > { %v1344_v4 = vpack.c.bf16 %v3257_v2, %v3256_v1 }
  0xe3   : > { %3324 = vmatmul.msk.bf16.vlgmr.msra.gmra.mxu0 %vm1448_vm2, %v1344_v4  ;;  %1045 = vperm.xlu2 %3536, %v924_v3  }
  0xe4   : > { %1036 = vperm.xlu1 %3535, %v921_v5   ;;  %1033 = vperm.xlu0 %3534, %v920_v6  }
  0xe5   : > { %v1109_v7 = vpop.permute.xlu2 %1108  ;;  %v4495_v8 = vpop.permute.xlu1 %982 }
  0xe6   : > { %v4497_v9 = vpop.permute.xlu0 %979  ;;  %vm1201_vm12 = vcmp.eq.s32.totalorder %v1109_v7, %v4471_v59  ;;  %vm1159_vm1 = vcmp.eq.s32.totalorder %v4495_v8, %v4471_v59 }
  0xe7   : > { %v3305_v41 = vsel %vm1201_vm12, 1.0, %v6253_v28  ;;  %vm1158_vm3 = vcmp.eq.s32.totalorder %v4497_v9, %v4471_v59  ;;  %v3263_v60 = vsel %vm1159_vm1, 1.0, %v6253_v28 }
  0xe8   : > { %v3262_v61 = vsel %vm1158_vm3, 1.0, %v6253_v28 }
  0xe9   : > { %v1347_v5 = vpack.c.bf16 %v3263_v60, %v3262_v61 }
  0xeb   : > { %1096 = vperm.xlu2 %3536, %v941_v10  }
  0xec   : > { %1093 = vperm.xlu1 %3535, %v940_v11   ;;  %1048 = vperm.xlu0 %3534, %v925_v12  }
  0xed   : > { %v4511_v13 = vpop.permute.xlu2 %1063  ;;  %v992_v17 = vpop.permute.xlu1 %991 }
  0xee   : > { %v4518_v18 = vpop.permute.xlu0 %988  ;;  %vm1162_vm6 = vcmp.eq.s32.totalorder %v992_v17, %v4471_v59  ;;  %vm1186_vm4 = vcmp.eq.s32.totalorder %v4511_v13, %v4471_v59 }
  0xef   : > { %v4522_v19 = vsel %vm1162_vm6, 1.0, %v6253_v28  ;;  %v3290_v1 = vsel %vm1186_vm4, 1.0, %v6253_v28  ;;  %vm1161_vm11 = vcmp.eq.s32.totalorder %v4518_v18, %v4471_v59 }
  0xf0   : > { %v1349_v22 = vpack.c.bf16 %v4514_v14, %v4522_v19  ;;  %v3265_v16 = vsel %vm1161_vm11, 1.0, %v6253_v28 }
  0xf3   : > { %3325 = vmatmul.msk.bf16.gmra.mxu0 %vm1448_vm2, %v1345_v21  ;;  %1039 = vperm.xlu2 %3536, %v922_v20  }
  0xf4   : > { %1144 = vperm.xlu1 %3535, %v957_v23   ;;  %1141 = vperm.xlu0 %3534, %v956_v24   ;;  %v1348_v24 = vpack.c.bf16 %v3265_v16, %v3264_v15 }
  0xf5   : > { %v4536_v25 = vpop.permute.xlu2 %1114  ;;  %v1001_v26 = vpop.permute.xlu1 %1000 }
  0xf6   : > { %v998_v27 = vpop.permute.xlu0 %997  ;;  %vm1165_vm7 = vcmp.eq.s32.totalorder %v1001_v26, %v4471_v59  ;;  %vm1203_vm5 = vcmp.eq.s32.totalorder %v4536_v25, %v4471_v59 }
  0xf7   : > { %vm1164_vm8 = vcmp.eq.s32.totalorder %v998_v27, %v4471_v59  ;;  %v4541_v29 = vsel %vm1165_vm7, 1.0, %v6253_v28  ;;  %v3307_v2 = vsel %vm1203_vm5, 1.0, %v6253_v28 }
  0xf8   : > { %v4544_v30 = vsel %vm1164_vm8, 1.0, %v6253_v28 }
  0xf9   : > { %v1350_v32 = vpack.c.bf16 %v4541_v29, %v4544_v30 }
  0xfb   : > { %1054 = vperm.xlu2 %3536, %v927_v31  }
  0xfc   : > { %1051 = vperm.xlu1 %3535, %v926_v33   ;;  %1042 = vperm.xlu0 %3534, %v923_v34  }
  0xfd   : > { %v4564_v35 = vpop.permute.xlu2 %1069  ;;  %v1106_v38 = vpop.permute.xlu1 %1105 }
  0xfe   : > { %v1061_v39 = vpop.permute.xlu0 %1060  ;;  %vm1200_vm13 = vcmp.eq.s32.totalorder %v1106_v38, %v4471_v59  ;;  %vm1188_vm12 = vcmp.eq.s32.totalorder %v4564_v35, %v4471_v59 }
  0xff   : > { %vm1185_vm14 = vcmp.eq.s32.totalorder %v1061_v39, %v4471_v59  ;;  %v3304_v42 = vsel %vm1200_vm13, 1.0, %v6253_v28  ;;  %v3292_v50 = vsel %vm1188_vm12, 1.0, %v6253_v28 }
 0x100   : > { %v3289_v43 = vsel %vm1185_vm14, 1.0, %v6253_v28  ;;  %v1368_v45 = vpack.c.bf16 %v3305_v41, %v3304_v42 }
 0x101   : > { %v1360_v46 = vpack.c.bf16 %v3289_v43, %v3288_v40 }
 0x102   : > { %3348 = vmatmul.msk.bf16.vlgmr.msra.gmra.mxu3 %vm1448_vm2, %v1368_v45 }
 0x103   : > { %3326 = vmatmul.msk.bf16.gmra.mxu0 %vm1448_vm2, %v1346_v44  ;;  %3340 = vmatmul.msk.bf16.vlgmr.msra.gmra.mxu2 %vm1448_vm2, %v1360_v46 }
 0x104   : > { %1147 = vperm.xlu2 %3536, %v958_v47   ;;  %1102 = vperm.xlu1 %3535, %v943_v48  }
 0x105   : > { %1099 = vperm.xlu0 %3534, %v942_v49   ;;  %v1121_v51 = vpop.permute.xlu2 %1120  ;;  %v1007_v52 = vpop.permute.xlu1 %1006 }
 0x106   : > { %v1004_v53 = vpop.permute.xlu0 %1003  ;;  %vm1167_vm15 = vcmp.eq.s32.totalorder %v1007_v52, %v4471_v59  ;;  %vm1205_vm13 = vcmp.eq.s32.totalorder %v1121_v51, %v4471_v59 }
 0x107   : > { %vm1166_vm0 = vcmp.eq.s32.totalorder %v1004_v53, %v4471_v59  ;;  %v4589_v55 = vsel %vm1167_vm15, 1.0, %v6253_v28  ;;  %v3309_v21 = vsel %vm1205_vm13, 1.0, %v6253_v28 }
 0x108   : > { %v4592_v56 = vsel %vm1166_vm0, 1.0, %v6253_v28 }
 0x109   : > { %v1351_v57 = vpack.c.bf16 %v4589_v55, %v4592_v56 }
 0x10d   : > { %1150 = vperm.xlu0 %3534, %v959_v58   ;;  %v1112_v62 = vpop.permute.xlu1 %1111  ;;  %v1076_v0 = vpop.permute.xlu2 %1075 }
 0x10e   : > { %v1067_v63 = vpop.permute.xlu0 %1066  ;;  %vm1202_vm6 = vcmp.eq.s32.totalorder %v1112_v62, %v4471_v59  ;;  %vm1190_vm3 = vcmp.eq.s32.totalorder %v1076_v0, %v4471_v59 }
 0x10f   : > { %vm1187_vm7 = vcmp.eq.s32.totalorder %v1067_v63, %v4471_v59  ;;  %v3306_v3 = vsel %vm1202_vm6, 1.0, %v6253_v28  ;;  %v3294_v40 = vsel %vm1190_vm3, 1.0, %v6253_v28 }
 0x110   : > { %v3291_v4 = vsel %vm1187_vm7, 1.0, %v6253_v28  ;;  %v1369_v6 = vpack.c.bf16 %v3307_v2, %v3306_v3 }
 0x111   : > { %v1361_v7 = vpack.c.bf16 %v3291_v4, %v3290_v1 }
 0x112   : > { %3349 = vmatmul.msk.bf16.gmra.mxu3 %vm1448_vm2, %v1369_v6 }
 0x113   : > { %3327 = vmatmul.msk.bf16.gmra.mxu0 %vm1448_vm2, %v1347_v5  ;;  %3341 = vmatmul.msk.bf16.gmra.mxu2 %vm1448_vm2, %v1361_v7 }
 0x115   : > { %v1013_v8 = vpop.permute.xlu1 %1012  ;;  %v1127_v12 = vpop.permute.xlu2 %1126 }
 0x116   : > { %v1010_v9 = vpop.permute.xlu0 %1009  ;;  %vm1169_vm8 = vcmp.eq.s32.totalorder %v1013_v8, %v4471_v59  ;;  %vm1207_vm4 = vcmp.eq.s32.totalorder %v1127_v12, %v4471_v59 }
 0x117   : > { %vm1168_vm9 = vcmp.eq.s32.totalorder %v1010_v9, %v4471_v59  ;;  %v4621_v10 = vsel %vm1169_vm8, 1.0, %v6253_v28  ;;  %v3311_v41 = vsel %vm1207_vm4, 1.0, %v6253_v28 }
 0x118   : > { %v4624_v11 = vsel %vm1168_vm9, 1.0, %v6253_v28 }
 0x119   : > { %v1352_v13 = vpack.c.bf16 %v4621_v10, %v4624_v11 }
 0x11d   : > { %v1118_v17 = vpop.permute.xlu1 %1117  ;;  %v1082_v27 = vpop.permute.xlu2 %1081 }
 0x11e   : > { %v1073_v20 = vpop.permute.xlu0 %1072  ;;  %vm1204_vm14 = vcmp.eq.s32.totalorder %v1118_v17, %v4471_v59  ;;  %vm1192_vm9 = vcmp.eq.s32.totalorder %v1082_v27, %v4471_v59 }
 0x11f   : > { %vm1189_vm15 = vcmp.eq.s32.totalorder %v1073_v20, %v4471_v59  ;;  %v3308_v18 = vsel %vm1204_vm14, 1.0, %v6253_v28  ;;  %v3296_v52 = vsel %vm1192_vm9, 1.0, %v6253_v28 }
 0x120   : > { %v3293_v23 = vsel %vm1189_vm15, 1.0, %v6253_v28  ;;  %v1370_v25 = vpack.c.bf16 %v3309_v21, %v3308_v18 }
 0x121   : > { %v1362_v26 = vpack.c.bf16 %v3293_v23, %v3292_v50 }
 0x122   : > { %3350 = vmatmul.msk.bf16.gmra.mxu3 %vm1448_vm2, %v1370_v25 }
 0x123   : > { %3328 = vmatmul.msk.bf16.gmra.mxu0 %vm1448_vm2, %v1348_v24  ;;  %3342 = vmatmul.msk.bf16.gmra.mxu2 %vm1448_vm2, %v1362_v26 }
 0x125   : > { %v1019_v31 = vpop.permute.xlu1 %1018  ;;  %v1133_v37 = vpop.permute.xlu2 %1132 }
 0x126   : > { %v1016_v33 = vpop.permute.xlu0 %1015  ;;  %vm1171_vm0 = vcmp.eq.s32.totalorder %v1019_v31, %v4471_v59  ;;  %vm1209_vm10 = vcmp.eq.s32.totalorder %v1133_v37, %v4471_v59 }
 0x127   : > { %vm1170_vm1 = vcmp.eq.s32.totalorder %v1016_v33, %v4471_v59  ;;  %v4649_v34 = vsel %vm1171_vm0, 1.0, %v6253_v28  ;;  %v3313_v53 = vsel %vm1209_vm10, 1.0, %v6253_v28 }
 0x128   : > { %v4652_v35 = vsel %vm1170_vm1, 1.0, %v6253_v28 }
 0x129   : > { %v1353_v36 = vpack.c.bf16 %v4649_v34, %v4652_v35  ;;  %v1381_v34 = vld [vmem:[%s6375_s15 + $0x18] sm:$0xff] }
 0x12d   : > { %v1124_v38 = vpop.permute.xlu1 %1123  ;;  %v1088_v48 = vpop.permute.xlu2 %1087 }
 0x12e   : > { %v1079_v39 = vpop.permute.xlu0 %1078  ;;  %vm1206_vm5 = vcmp.eq.s32.totalorder %v1124_v38, %v4471_v59  ;;  %vm1194_vm15 = vcmp.eq.s32.totalorder %v1088_v48, %v4471_v59  ;;  %v1379_v48 = vld [vmem:[%s6375_s15 + $0x8] sm:$0xff] }
 0x12f   : > { %vm1191_vm6 = vcmp.eq.s32.totalorder %v1079_v39, %v4471_v59  ;;  %v3310_v42 = vsel %vm1206_vm5, 1.0, %v6253_v28  ;;  %v3298_v5 = vsel %vm1194_vm15, 1.0, %v6253_v28 }
 0x130   : > { %v3295_v43 = vsel %vm1191_vm6, 1.0, %v6253_v28  ;;  %v1371_v44 = vpack.c.bf16 %v3311_v41, %v3310_v42 }
 0x131   : > { %v1363_v45 = vpack.c.bf16 %v3295_v43, %v3294_v40 }
 0x132   : > { %3351 = vmatmul.msk.bf16.gmra.mxu3 %vm1448_vm2, %v1371_v44 }
 0x133   : > { %3329 = vmatmul.msk.bf16.gmra.mxu0 %vm1448_vm2, %v1349_v22  ;;  %3343 = vmatmul.msk.bf16.gmra.mxu2 %vm1448_vm2, %v1363_v45 }
 0x135   : > { %v1025_v46 = vpop.permute.xlu1 %1024  ;;  %v1139_v61 = vpop.permute.xlu2 %1138 }
 0x136   : > { %v1022_v47 = vpop.permute.xlu0 %1021  ;;  %vm1173_vm7 = vcmp.eq.s32.totalorder %v1025_v46, %v4471_v59  ;;  %vm1211_vm0 = vcmp.eq.s32.totalorder %v1139_v61, %v4471_v59  ;;  %v1380_v46 = vld [vmem:[%s6375_s15 + $0x10] sm:$0xff] }
 0x137   : > { %vm1172_vm8 = vcmp.eq.s32.totalorder %v1022_v47, %v4471_v59  ;;  %v4673_v49 = vsel %vm1173_vm7, 1.0, %v6253_v28  ;;  %v3315_v6 = vsel %vm1211_vm0, 1.0, %v6253_v28  ;;  %v1378_v47 = vld [vmem:[%s6375_s15] sm:$0xff]  ;;  %vm1842_vm0 = vcmp.lt.s32.totalorder %v4471_v59, 32 }
 0x138   : > { %v4676_v51 = vsel %vm1172_vm8, 1.0, %v6253_v28 }
 0x139   : > { %v1354_v14 = vpack.c.bf16 %v4673_v49, %v4676_v51  ;;  %v1426_v51 = vld [vmem:[%s6375_s15 + $0x180] sm:$0xff] }
 0x13d   : > { %v1130_v19 = vpop.permute.xlu1 %1129  ;;  %v1046_v30 = vpop.permute.xlu2 %1045 }
 0x13e   : > { %v1085_v22 = vpop.permute.xlu0 %1084  ;;  %vm1208_vm11 = vcmp.eq.s32.totalorder %v1130_v19, %v4471_v59  ;;  %vm1180_vm7 = vcmp.eq.s32.totalorder %v1046_v30, %v4471_v59 }
 0x13f   : > { %vm1193_vm12 = vcmp.eq.s32.totalorder %v1085_v22, %v4471_v59  ;;  %v3312_v58 = vsel %vm1208_vm11, 1.0, %v6253_v28  ;;  %v3284_v25 = vsel %vm1180_vm7, 1.0, %v6253_v28 }
 0x140   : > { %v3297_v60 = vsel %vm1193_vm12, 1.0, %v6253_v28  ;;  %v1372_v62 = vpack.c.bf16 %v3313_v53, %v3312_v58 }
 0x141   : > { %v1364_v63 = vpack.c.bf16 %v3297_v60, %v3296_v52 }
 0x142   : > { %3352 = vmatmul.msk.bf16.gmra.mxu3 %vm1448_vm2, %v1372_v62 }
 0x143   : > { %3330 = vmatmul.msk.bf16.gmra.mxu0 %vm1448_vm2, %v1350_v32  ;;  %3344 = vmatmul.msk.bf16.gmra.mxu2 %vm1448_vm2, %v1364_v63 }
 0x145   : > { %v1031_v0 = vpop.permute.xlu1 %1030  ;;  %v1097_v15 = vpop.permute.xlu2 %1096 }
 0x146   : > { %v1028_v1 = vpop.permute.xlu0 %1027  ;;  %vm1175_vm13 = vcmp.eq.s32.totalorder %v1031_v0, %v4471_v59  ;;  %vm1197_vm6 = vcmp.eq.s32.totalorder %v1097_v15, %v4471_v59 }
 0x147   : > { %vm1174_vm14 = vcmp.eq.s32.totalorder %v1028_v1, %v4471_v59  ;;  %v4697_v2 = vsel %vm1175_vm13, 1.0, %v6253_v28  ;;  %v3301_v21 = vsel %vm1197_vm6, 1.0, %v6253_v28  ;;  %vm2521_vm6 = vcmask 1040384  }
 0x148   : > { %v4700_v3 = vsel %vm1174_vm14, 1.0, %v6253_v28 }
 0x149   : > { %v1355_v29 = vpack.c.bf16 %v4697_v2, %v4700_v3 }
 0x14d   : > { %v1136_v32 = vpop.permute.xlu1 %1135  ;;  %v4732_v18 = vpop.permute.xlu2 %1039 }
 0x14e   : > { %v1091_v4 = vpop.permute.xlu0 %1090  ;;  %vm1210_vm1 = vcmp.eq.s32.totalorder %v1136_v32, %v4471_v59 }
 0x14f   : > { %vm1195_vm3 = vcmp.eq.s32.totalorder %v1091_v4, %v4471_v59  ;;  %v3314_v7 = vsel %vm1210_vm1, 1.0, %v6253_v28  ;;  %v1382_v4 = vld [vmem:[%s6375_s15 + $0x20] sm:$0xff] }
 0x150   : > { %v3299_v8 = vsel %vm1195_vm3, 1.0, %v6253_v28  ;;  %v1373_v9 = vpack.c.bf16 %v3315_v6, %v3314_v7 }
 0x151   : > { %v1365_v12 = vpack.c.bf16 %v3299_v8, %v3298_v5  ;;  %v4786_v8 = vsel %vm1842_vm0, 1.0, %v6253_v28 }
 0x152   : > { %3353 = vmatmul.msk.bf16.gmra.mxu3 %vm1448_vm2, %v1373_v9  ;;  %6376 = vst [vmem:[#allocation34_spill] sm:$0xff] %v4786_v8 }
 0x153   : > { %3331 = vmatmul.msk.bf16.gmra.mxu0 %vm1448_vm2, %v1351_v57  ;;  %3345 = vmatmul.msk.bf16.gmra.mxu2 %vm1448_vm2, %v1365_v12 }
 0x155   : > { %v1055_v41 = vpop.permute.xlu2 %1054 }
 0x156   : > { %v1037_v16 = vpop.permute.xlu1 %1036  ;;  %v1034_v17 = vpop.permute.xlu0 %1033  ;;  %vm1183_vm12 = vcmp.eq.s32.totalorder %v1055_v41, %v4471_v59 }
 0x157   : > { %vm1177_vm4 = vcmp.eq.s32.totalorder %v1037_v16, %v4471_v59  ;;  %vm1176_vm5 = vcmp.eq.s32.totalorder %v1034_v17, %v4471_v59 }
 0x158   : > { %v4721_v20 = vsel %vm1177_vm4, 1.0, %v6253_v28  ;;  %v4724_v50 = vsel %vm1176_vm5, 1.0, %v6253_v28  ;;  %vm1178_vm5 = vcmp.eq.s32.totalorder %v4732_v18, %v4471_v59 }
 0x159   : > { %v1356_v55 = vpack.c.bf16 %v4721_v20, %v4724_v50 }
 0x15e   : > { %v1094_v56 = vpop.permute.xlu1 %1093  ;;  %v1049_v57 = vpop.permute.xlu0 %1048 }
 0x15f   : > { %vm1196_vm8 = vcmp.eq.s32.totalorder %v1094_v56, %v4471_v59  ;;  %vm1181_vm9 = vcmp.eq.s32.totalorder %v1049_v57, %v4471_v59  ;;  %v1148_v63 = vpop.permute.xlu2 %1147 }
 0x160   : > { %v3300_v23 = vsel %vm1196_vm8, 1.0, %v6253_v28  ;;  %v1554_v24 = vpop.f32.mrf.mxu0  ;;  %v3285_v27 = vsel %vm1181_vm9, 1.0, %v6253_v28  ;;  %vm1214_vm1 = vcmp.eq.s32.totalorder %v1148_v63, %v4471_v59  ;;  %v1384_v63 = vld [vmem:[%s6375_s15 + $0x30] sm:$0xff] }
 0x161   : > { %v1366_v26 = vpack.c.bf16 %v3301_v21, %v3300_v23  ;;  %v1358_v31 = vpack.c.bf16 %v3285_v27, %v3284_v25  ;;  %v1555_v22 = vadd.f32 %v1554_v24, %v1378_v47  ;;  %v3318_v15 = vsel %vm1214_vm1, 1.0, %v6253_v28 }
 0x162   : > { %v4808_v27 = vstv %s893_s25 }
 0x163   : > { %3332 = vmatmul.msk.bf16.gmra.mxu0 %vm1448_vm2, %v1352_v13  ;;  %3346 = vmatmul.msk.bf16.gmra.mxu2 %vm1448_vm2, %v1366_v26  ;;  %v3287_v13 = vsel %vm1183_vm12, 1.0, %v6253_v28  ;;  %v1714_v1 = vmax.f32 %v1555_v22, 0.0  ;;  %v1410_v26 = vld [vmem:[%s6375_s15 + $0x100] sm:$0xff]  ;;  %v1411_v22 = vld [vmem:[%s6375_s15 + $0x108] sm:$0xff] }
 0x164   : > { %3338 = vmatmul.msk.bf16.vlgmr.msra.gmra.mxu1 %vm1448_vm2, %v1358_v31 }
 0x165   : > { %v1778_v7 = vadd.f32 1e-07, %v1714_v1 }
 0x166   : > { %v1145_v33 = vpop.permute.xlu1 %1144  ;;  %v1142_v37 = vpop.permute.xlu0 %1141 }
 0x167   : > { %vm1213_vm10 = vcmp.eq.s32.totalorder %v1145_v33, %v4471_v59  ;;  %vm1212_vm11 = vcmp.eq.s32.totalorder %v1142_v37, %v4471_v59  ;;  %v4799_v24 = vmul.f32 %v4786_v8, %v1778_v7  ;;  %v1383_v33 = vld [vmem:[%s6375_s15 + $0x28] sm:$0xff] }
 0x168   : > { %v3317_v38 = vsel %vm1213_vm10, 1.0, %v6253_v28  ;;  %v1556_v39 = vpop.f32.mrf.mxu0  ;;  %v3316_v40 = vsel %vm1212_vm11, 1.0, %v6253_v28 }
 0x169   : > { %v1374_v42 = vpack.c.bf16 %v3317_v38, %v3316_v40  ;;  %v1557_v52 = vadd.f32 %v1556_v39, %v1379_v48  ;;  %6378 = vst [vmem:[#allocation36_spill] sm:$0xff] %v4799_v24  ;;  %v4828_v41 = vmul.f32 %v4808_v27, %v4799_v24 }
 0x16b   : > { %3354 = vmatmul.msk.bf16.gmra.mxu3 %vm1448_vm2, %v1374_v42  ;;  %v1715_v30 = vmax.f32 %v1557_v52, 0.0 }
 0x16d   : > { %v1779_v9 = vadd.f32 1e-07, %v1715_v30 }
 0x16e   : > { %v1052_v10 = vpop.permute.xlu1 %1051  ;;  %v4751_v11 = vpop.permute.xlu0 %1042 }
 0x16f   : > { %vm1182_vm13 = vcmp.eq.s32.totalorder %v1052_v10, %v4471_v59  ;;  %v4802_v25 = vmul.f32 %v4786_v8, %v1779_v9  ;;  %vm1179_vm4 = vcmp.eq.s32.totalorder %v4751_v11, %v4471_v59 }
 0x170   : > { %v3286_v43 = vsel %vm1182_vm13, 1.0, %v6253_v28  ;;  %v1559_v44 = vpop.f32.mrf.mxu0 }
 0x171   : > { %v1359_v45 = vpack.c.bf16 %v3287_v13, %v3286_v43  ;;  %v1560_v35 = vadd.f32 %v1559_v44, %v1380_v46  ;;  %6379 = vst [vmem:[#allocation37_spill] sm:$0xff] %v4802_v25  ;;  %v4832_v42 = vmul.f32 %v4808_v27, %v4802_v25 }
 0x173   : > { %3333 = vmatmul.msk.bf16.gmra.mxu0 %vm1448_vm2, %v1353_v36  ;;  %v1716_v0 = vmax.f32 %v1560_v35, 0.0 }
 0x174   : > { %3339 = vmatmul.msk.bf16.gmra.mxu1 %vm1448_vm2, %v1359_v45 }
 0x175   : > { %v1780_v5 = vadd.f32 1e-07, %v1716_v0 }
 0x176   : > { %v1103_v36 = vpop.permute.xlu1 %1102 }
 0x177   : > { %v1100_v19 = vpop.permute.xlu0 %1099  ;;  %vm1199_vm14 = vcmp.eq.s32.totalorder %v1103_v36, %v4471_v59  ;;  %v4792_v21 = vmul.f32 %v4786_v8, %v1780_v5 }
 0x178   : > { %vm1198_vm15 = vcmp.eq.s32.totalorder %v1100_v19, %v4471_v59  ;;  %v1561_v53 = vpop.f32.mrf.mxu0  ;;  %v3303_v58 = vsel %vm1199_vm14, 1.0, %v6253_v28 }
 0x179   : > { %v3302_v60 = vsel %vm1198_vm15, 1.0, %v6253_v28  ;;  %v1562_v61 = vadd.f32 %v1561_v53, %v1381_v34  ;;  %6377 = vst [vmem:[#allocation35_spill] sm:$0xff] %v4792_v21  ;;  %v4821_v37 = vmul.f32 %v4808_v27, %v4792_v21 }
 0x17a   : > { %v1367_v62 = vpack.c.bf16 %v3303_v58, %v3302_v60  ;;  %v1427_v60 = vld [vmem:[%s6375_s15 + $0x188] sm:$0xff] }
 0x17b   : > { %v1717_v32 = vmax.f32 %v1562_v61, 0.0  ;;  %v2008_v48 = vmax.f32 %v4832_v42, %v4821_v37 }
 0x17c   : > { %3347 = vmatmul.msk.bf16.gmra.mxu2 %vm1448_vm2, %v1367_v62 }
 0x17d   : > { %v1781_v16 = vadd.f32 1e-07, %v1717_v32 }
 0x17f   : > { %v1151_v6 = vpop.permute.xlu0 %1150  ;;  %v4811_v31 = vmul.f32 %v4786_v8, %v1781_v16 }
 0x180   : > { %vm1215_vm3 = vcmp.eq.s32.totalorder %v1151_v6, %v4471_v59  ;;  %v1564_v12 = vpop.f32.mrf.mxu0 }
 0x181   : > { %v3319_v17 = vsel %vm1215_vm3, 1.0, %v6253_v28  ;;  %v1565_v56 = vadd.f32 %v1564_v12, %v1382_v4  ;;  %6380 = vst [vmem:[#allocation38_spill] sm:$0xff] %v4811_v31  ;;  %v4836_v43 = vmul.f32 %v4808_v27, %v4811_v31 }
 0x182   : > { %v1375_v57 = vpack.c.bf16 %v3319_v17, %v3318_v15 }
 0x183   : > { %v1718_v23 = vmax.f32 %v1565_v56, 0.0  ;;  %3334 = vmatmul.msk.bf16.gmra.mxu0 %vm1448_vm2, %v1354_v14  ;;  %v2009_v52 = vmax.f32 %v4836_v43, %v2008_v48 }
 0x184   : > { %3355 = vmatmul.msk.bf16.gmra.mxu3 %vm1448_vm2, %v1375_v57 }
 0x185   : > { %v1782_v49 = vadd.f32 1e-07, %v1718_v23  ;;  %v1674_v40 = vpop.f32.mrf.mxu3 }
 0x186   : > { %v1634_v14 = vpop.f32.mrf.mxu2  ;;  %v1675_v10 = vadd.f32 %v1674_v40, %v1426_v51 }
 0x187   : > { %v4824_v38 = vmul.f32 %v4786_v8, %v1782_v49  ;;  %v1635_v39 = vadd.f32 %v1634_v14, %v1410_v26  ;;  %v1412_v26 = vld [vmem:[%s6375_s15 + $0x110] sm:$0xff] }
 0x188   : > { %v1566_v13 = vpop.f32.mrf.mxu0  ;;  %v1762_v47 = vmax.f32 %v1675_v10, 0.0 }
 0x189   : > { %6381 = vst [vmem:[#allocation39_spill] sm:$0xff] %v4824_v38  ;;  %v4840_v44 = vmul.f32 %v4808_v27, %v4824_v38  ;;  %v1746_v45 = vmax.f32 %v1635_v39, 0.0  ;;  %v1567_v46 = vadd.f32 %v1566_v13, %v1383_v33  ;;  %v1428_v33 = vld [vmem:[%s6375_s15 + $0x190] sm:$0xff] }
 0x18a   : > { %v1826_v19 = vadd.f32 1e-07, %v1762_v47 }
 0x18b   : > { %v2007_v34 = vmax.f32 %v4828_v41, %v4840_v44  ;;  %v1810_v35 = vadd.f32 1e-07, %v1746_v45  ;;  %v1719_v36 = vmax.f32 %v1567_v46, 0.0 }
 0x18c   : > { %v4857_v61 = vmul.f32 %v4786_v8, %v1826_v19 }
 0x18d   : > { %v4851_v53 = vmul.f32 %v4786_v8, %v1810_v35  ;;  %v1783_v58 = vadd.f32 1e-07, %v1719_v36  ;;  %v2010_v0 = vmax.f32 %v2007_v34, %v2009_v52  ;;  %v1676_v32 = vpop.f32.mrf.mxu3 }
 0x18e   : > { %6383 = vst [vmem:[#allocation41_spill] sm:$0xff] %v4857_v61  ;;  %v1636_v62 = vpop.f32.mrf.mxu2  ;;  %v1677_v5 = vadd.f32 %v1676_v32, %v1427_v60  ;;  %v4872_v9 = vmul.f32 %v4808_v27, %v4857_v61  ;;  %v1429_v32 = vld [vmem:[%s6375_s15 + $0x198] sm:$0xff] }
 0x18f   : > { %6382 = vst [vmem:[#allocation40_spill] sm:$0xff] %v4851_v53  ;;  %v4864_v1 = vmul.f32 %v4808_v27, %v4851_v53  ;;  %v1637_v30 = vadd.f32 %v1636_v62, %v1411_v22  ;;  %v4867_v4 = vmul.f32 %v4786_v8, %v1783_v58  ;;  %v1413_v62 = vld [vmem:[%s6375_s15 + $0x118] sm:$0xff] }
 0x190   : > { %v1569_v6 = vpop.f32.mrf.mxu0  ;;  %6385 = vst [vmem:[#allocation43_spill] sm:$0xff] %v4872_v9  ;;  %v1763_v16 = vmax.f32 %v1677_v5, 0.0 }
 0x191   : > { %6384 = vst [vmem:[#allocation42_spill] sm:$0xff] %v4867_v4  ;;  %v2011_v7 = vmax.f32 %v4864_v1, %v2010_v0  ;;  %v1747_v12 = vmax.f32 %v1637_v30, 0.0  ;;  %v1570_v15 = vadd.f32 %v1569_v6, %v1384_v63  ;;  %v4884_v49 = vmul.f32 %v4808_v27, %v4867_v4 }
 0x192   : > { %v1827_v23 = vadd.f32 1e-07, %v1763_v16 }
 0x193   : > { %v2012_v17 = vmax.f32 %v4872_v9, %v2011_v7  ;;  %v1811_v56 = vadd.f32 1e-07, %v1747_v12  ;;  %v1720_v57 = vmax.f32 %v1570_v15, 0.0  ;;  %3335 = vmatmul.msk.bf16.gmra.mxu0 %vm1448_vm2, %v1355_v29  ;;  %v1385_v29 = vld [vmem:[%s6375_s15 + $0x38] sm:$0xff]  ;;  %v1386_v7 = vld [vmem:[%s6375_s15 + $0x40] sm:$0xff] }
 0x194   : > { %v4893_v2 = vmul.f32 %v4786_v8, %v1827_v23 }
 0x195   : > { %v4887_v51 = vmul.f32 %v4786_v8, %v1811_v56  ;;  %v1784_v14 = vadd.f32 1e-07, %v1720_v57  ;;  %v2013_v39 = vmax.f32 %v4884_v49, %v2012_v17  ;;  %v1679_v13 = vpop.f32.mrf.mxu3 }
 0x196   : > { %6387 = vst [vmem:[#allocation45_spill] sm:$0xff] %v4893_v2  ;;  %v1639_v3 = vpop.f32.mrf.mxu2  ;;  %v1680_v46 = vadd.f32 %v1679_v13, %v1428_v33  ;;  %v4909_v34 = vmul.f32 %v4808_v27, %v4893_v2 }
 0x197   : > { %6386 = vst [vmem:[#allocation44_spill] sm:$0xff] %v4887_v51  ;;  %v4901_v40 = vmul.f32 %v4808_v27, %v4887_v51  ;;  %v1640_v10 = vadd.f32 %v1639_v3, %v1412_v26  ;;  %v4904_v45 = vmul.f32 %v4786_v8, %v1784_v14 }
 0x198   : > { %v1571_v47 = vpop.f32.mrf.mxu0  ;;  %6389 = vst [vmem:[#allocation47_spill] sm:$0xff] %v4909_v34  ;;  %v1764_v19 = vmax.f32 %v1680_v46, 0.0 }
 0x199   : > { %6388 = vst [vmem:[#allocation46_spill] sm:$0xff] %v4904_v45  ;;  %v2014_v48 = vmax.f32 %v4901_v40, %v2013_v39  ;;  %v1748_v35 = vmax.f32 %v1640_v10, 0.0  ;;  %v1572_v36 = vadd.f32 %v1571_v47, %v1385_v29  ;;  %v4917_v63 = vmul.f32 %v4808_v27, %v4904_v45  ;;  %v1414_v47 = vld [vmem:[%s6375_s15 + $0x120] sm:$0xff] }
 0x19a   : > { %v1828_v60 = vadd.f32 1e-07, %v1764_v19  ;;  %v1430_v19 = vld [vmem:[%s6375_s15 + $0x1a0] sm:$0xff] }
 0x19b   : > { %v2015_v22 = vmax.f32 %v4909_v34, %v2014_v48  ;;  %v1812_v52 = vadd.f32 1e-07, %v1748_v35  ;;  %v1721_v58 = vmax.f32 %v1572_v36, 0.0 }
 0x19c   : > { %v4926_v5 = vmul.f32 %v4786_v8, %v1828_v60 }
 0x19d   : > { %v4920_v0 = vmul.f32 %v4786_v8, %v1812_v52  ;;  %v1785_v30 = vadd.f32 1e-07, %v1721_v58  ;;  %v2016_v12 = vmax.f32 %v4917_v63, %v2015_v22  ;;  %v1681_v17 = vpop.f32.mrf.mxu3 }
 0x19e   : > { %6391 = vst [vmem:[#allocation49_spill] sm:$0xff] %v4926_v5  ;;  %v1641_v6 = vpop.f32.mrf.mxu2  ;;  %v1682_v57 = vadd.f32 %v1681_v17, %v1429_v32  ;;  %v4942_v14 = vmul.f32 %v4808_v27, %v4926_v5 }
 0x19f   : > { %6390 = vst [vmem:[#allocation48_spill] sm:$0xff] %v4920_v0  ;;  %v4934_v15 = vmul.f32 %v4808_v27, %v4920_v0  ;;  %v1642_v16 = vadd.f32 %v1641_v6, %v1413_v62  ;;  %v4937_v56 = vmul.f32 %v4786_v8, %v1785_v30 }
 0x1a0   : > { %v1574_v23 = vpop.f32.mrf.mxu0  ;;  %6393 = vst [vmem:[#allocation51_spill] sm:$0xff] %v4942_v14  ;;  %v1765_v29 = vmax.f32 %v1682_v57, 0.0 }
 0x1a1   : > { %6392 = vst [vmem:[#allocation50_spill] sm:$0xff] %v4937_v56  ;;  %v2017_v26 = vmax.f32 %v4934_v15, %v2016_v12  ;;  %v1749_v33 = vmax.f32 %v1642_v16, 0.0  ;;  %v1575_v3 = vadd.f32 %v1574_v23, %v1386_v7  ;;  %v4954_v48 = vmul.f32 %v4808_v27, %v4937_v56  ;;  %v1395_v56 = vld [vmem:[%s6375_s15 + $0x88] sm:$0xff] }
 0x1a2   : > { %v1829_v46 = vadd.f32 1e-07, %v1765_v29  ;;  %v3283_v29 = vsel %vm1179_vm4, 1.0, %v6253_v28 }
 0x1a3   : > { %v2018_v39 = vmax.f32 %v4942_v14, %v2017_v26  ;;  %v1813_v10 = vadd.f32 1e-07, %v1749_v33  ;;  %v1722_v13 = vmax.f32 %v1575_v3, 0.0  ;;  %3336 = vmatmul.msk.bf16.gmra.mxu0 %vm1448_vm2, %v1356_v55  ;;  %v1387_v55 = vld [vmem:[%s6375_s15 + $0x48] sm:$0xff] }
 0x1a4   : > { %v4963_v20 = vmul.f32 %v4786_v8, %v1829_v46  ;;  %v1415_v3 = vld [vmem:[%s6375_s15 + $0x128] sm:$0xff] }
 0x1a5   : > { %v4957_v35 = vmul.f32 %v4786_v8, %v1813_v10  ;;  %v1786_v36 = vadd.f32 1e-07, %v1722_v13  ;;  %v2019_v22 = vmax.f32 %v4954_v48, %v2018_v39  ;;  %v1684_v60 = vpop.f32.mrf.mxu3  ;;  %v1431_v13 = vld [vmem:[%s6375_s15 + $0x1a8] sm:$0xff] }
 0x1a6   : > { %6395 = vst [vmem:[#allocation53_spill] sm:$0xff] %v4963_v20  ;;  %v1644_v50 = vpop.f32.mrf.mxu2  ;;  %v1685_v30 = vadd.f32 %v1684_v60, %v1430_v19  ;;  %v4979_v7 = vmul.f32 %v4808_v27, %v4963_v20 }
 0x1a7   : > { %6394 = vst [vmem:[#allocation52_spill] sm:$0xff] %v4957_v35  ;;  %v4971_v52 = vmul.f32 %v4808_v27, %v4957_v35  ;;  %v1645_v58 = vadd.f32 %v1644_v50, %v1414_v47  ;;  %v4974_v62 = vmul.f32 %v4786_v8, %v1786_v36  ;;  %v1388_v47 = vld [vmem:[%s6375_s15 + $0x50] sm:$0xff]  ;;  %v3282_v36 = vsel %vm1178_vm5, 1.0, %v6253_v28 }
 0x1a8   : > { %v1576_v32 = vpop.f32.mrf.mxu0  ;;  %6397 = vst [vmem:[#allocation55_spill] sm:$0xff] %v4979_v7  ;;  %v1766_v17 = vmax.f32 %v1685_v30, 0.0 }
 0x1a9   : > { %6396 = vst [vmem:[#allocation54_spill] sm:$0xff] %v4974_v62  ;;  %v2020_v6 = vmax.f32 %v4971_v52, %v2019_v22  ;;  %v1750_v12 = vmax.f32 %v1645_v58, 0.0  ;;  %v1577_v16 = vadd.f32 %v1576_v32, %v1387_v55  ;;  %v4992_v39 = vmul.f32 %v4808_v27, %v4974_v62 }
 0x1aa   : > { %v1830_v33 = vadd.f32 1e-07, %v1766_v17  ;;  %v1357_v58 = vpack.c.bf16 %v3283_v29, %v3282_v36  ;;  %v1416_v29 = vld [vmem:[%s6375_s15 + $0x130] sm:$0xff] }
 0x1ab   : > { %v2021_v57 = vmax.f32 %v4979_v7, %v2020_v6  ;;  %v1814_v23 = vadd.f32 1e-07, %v1750_v12  ;;  %v1723_v26 = vmax.f32 %v1577_v16, 0.0 }
 0x1ac   : > { %v5001_v18 = vmul.f32 %v4786_v8, %v1830_v33 }
 0x1ad   : > { %v4995_v11 = vmul.f32 %v4786_v8, %v1814_v23  ;;  %v1787_v10 = vadd.f32 1e-07, %v1723_v26  ;;  %v2022_v19 = vmax.f32 %v4992_v39, %v2021_v57  ;;  %v1686_v22 = vpop.f32.mrf.mxu3 }
 0x1ae   : > { %6399 = vst [vmem:[#allocation57_spill] sm:$0xff] %v5001_v18  ;;  %v1646_v46 = vpop.f32.mrf.mxu2  ;;  %v1687_v30 = vadd.f32 %v1686_v22, %v1431_v13  ;;  %v5018_v12 = vmul.f32 %v4808_v27, %v5001_v18 }
 0x1af   : > { %6398 = vst [vmem:[#allocation56_spill] sm:$0xff] %v4995_v11  ;;  %v5010_v50 = vmul.f32 %v4808_v27, %v4995_v11  ;;  %v1647_v55 = vadd.f32 %v1646_v46, %v1415_v3  ;;  %v5013_v60 = vmul.f32 %v4786_v8, %v1787_v10 }
 0x1b0   : > { %v1579_v32 = vpop.f32.mrf.mxu0  ;;  %6401 = vst [vmem:[#allocation59_spill] sm:$0xff] %v5018_v12  ;;  %v1767_v57 = vmax.f32 %v1687_v30, 0.0 }
 0x1b1   : > { %6400 = vst [vmem:[#allocation58_spill] sm:$0xff] %v5013_v60  ;;  %v2023_v6 = vmax.f32 %v5010_v50, %v2022_v19  ;;  %v1751_v16 = vmax.f32 %v1647_v55, 0.0  ;;  %v1580_v17 = vadd.f32 %v1579_v32, %v1388_v47  ;;  %v5027_v10 = vmul.f32 %v4808_v27, %v5013_v60  ;;  %v1432_v47 = vld [vmem:[%s6375_s15 + $0x1b0] sm:$0xff]  ;;  %v1389_v55 = vld [vmem:[%s6375_s15 + $0x58] sm:$0xff] }
 0x1b2   : > { %v1831_v3 = vadd.f32 1e-07, %v1767_v57 }
 0x1b3   : > { %v2024_v23 = vmax.f32 %v5018_v12, %v2023_v6  ;;  %v1815_v26 = vadd.f32 1e-07, %v1751_v16  ;;  %v1724_v33 = vmax.f32 %v1580_v17, 0.0  ;;  %3337 = vmatmul.msk.bf16.gmra.mxu0 %vm1448_vm2, %v1357_v58 }
 0x1b4   : > { %v5036_v36 = vmul.f32 %v4786_v8, %v1831_v3 }
 0x1b5   : > { %v5030_v13 = vmul.f32 %v4786_v8, %v1815_v26  ;;  %v1788_v46 = vadd.f32 1e-07, %v1724_v33  ;;  %v2025_v22 = vmax.f32 %v5027_v10, %v2024_v23  ;;  %v1689_v32 = vpop.f32.mrf.mxu3 }
 0x1b6   : > { %6403 = vst [vmem:[#allocation61_spill] sm:$0xff] %v5036_v36  ;;  %v1649_v19 = vpop.f32.mrf.mxu2  ;;  %v1690_v16 = vadd.f32 %v1689_v32, %v1432_v47  ;;  %v5052_v26 = vmul.f32 %v4808_v27, %v5036_v36 }
 0x1b7   : > { %6402 = vst [vmem:[#allocation60_spill] sm:$0xff] %v5030_v13  ;;  %v5044_v58 = vmul.f32 %v4808_v27, %v5030_v13  ;;  %v1650_v30 = vadd.f32 %v1649_v19, %v1416_v29  ;;  %v5047_v6 = vmul.f32 %v4786_v8, %v1788_v46  ;;  %v1417_v46 = vld [vmem:[%s6375_s15 + $0x138] sm:$0xff] }
 0x1b8   : > { %v1581_v17 = vpop.f32.mrf.mxu0  ;;  %6405 = vst [vmem:[#allocation63_spill] sm:$0xff] %v5052_v26  ;;  %v1768_v23 = vmax.f32 %v1690_v16, 0.0  ;;  %v1390_v16 = vld [vmem:[%s6375_s15 + $0x60] sm:$0xff] }
 0x1b9   : > { %6404 = vst [vmem:[#allocation62_spill] sm:$0xff] %v5047_v6  ;;  %v2026_v57 = vmax.f32 %v5044_v58, %v2025_v22  ;;  %v1752_v33 = vmax.f32 %v1650_v30, 0.0  ;;  %v1582_v3 = vadd.f32 %v1581_v17, %v1389_v55  ;;  %v5060_v47 = vmul.f32 %v4808_v27, %v5047_v6  ;;  %v1433_v55 = vld [vmem:[%s6375_s15 + $0x1b8] sm:$0xff] }
 0x1ba   : > { %v1832_v29 = vadd.f32 1e-07, %v1768_v23 }
 0x1bb   : > { %v2027_v28 = vmax.f32 %v5052_v26, %v2026_v57  ;;  %v1816_v54 = vadd.f32 1e-07, %v1752_v33  ;;  %v1725_v59 = vmax.f32 %v1582_v3, 0.0 }
 0x1bc   : > { %v5069_v30 = vmul.f32 %v4786_v8, %v1832_v29 }
 0x1bd   : > { %v5063_v19 = vmul.f32 %v4786_v8, %v1816_v54  ;;  %v1789_v22 = vadd.f32 1e-07, %v1725_v59  ;;  %v2031_v17 = vmax.f32 %v2027_v28, %v5060_v47  ;;  %v1691_v59 = vpop.f32.mrf.mxu3 }
 0x1be   : > { %6407 = vst [vmem:[#allocation65_spill] sm:$0xff] %v5069_v30  ;;  %v1651_v32 = vpop.f32.mrf.mxu2  ;;  %v1692_v3 = vadd.f32 %v1691_v59, %v1433_v55  ;;  %v5085_v61 = vmul.f32 %v4808_v27, %v5069_v30 }
 0x1bf   : > { %6406 = vst [vmem:[#allocation64_spill] sm:$0xff] %v5063_v19  ;;  %v5077_v57 = vmul.f32 %v4808_v27, %v5063_v19  ;;  %v1652_v54 = vadd.f32 %v1651_v32, %v1417_v46  ;;  %v5080_v33 = vmul.f32 %v4786_v8, %v1789_v22  ;;  %v1418_v22 = vld [vmem:[%s6375_s15 + $0x140] sm:$0xff] }
 0x1c0   : > { %v1584_v23 = vpop.f32.mrf.mxu0  ;;  %6409 = vst [vmem:[#allocation67_spill] sm:$0xff] %v5085_v61  ;;  %v1769_v28 = vmax.f32 %v1692_v3, 0.0 }
 0x1c1   : > { %6408 = vst [vmem:[#allocation66_spill] sm:$0xff] %v5080_v33  ;;  %v2035_v29 = vmax.f32 %v2031_v17, %v5077_v57  ;;  %v1753_v53 = vmax.f32 %v1652_v54, 0.0  ;;  %v1585_v2 = vadd.f32 %v1584_v23, %v1390_v16  ;;  %v5093_v55 = vmul.f32 %v4808_v27, %v5080_v33  ;;  %v1434_v16 = vld [vmem:[%s6375_s15 + $0x1c0] sm:$0xff]  ;;  %v1391_v54 = vld [vmem:[%s6375_s15 + $0x68] sm:$0xff] }
 0x1c2   : > { %v1833_v46 = vadd.f32 1e-07, %v1769_v28 }
 0x1c3   : > { %v2039_v51 = vmax.f32 %v2035_v29, %v5085_v61  ;;  %v1817_v5 = vadd.f32 1e-07, %v1753_v53  ;;  %v1726_v0 = vmax.f32 %v1585_v2, 0.0  ;;  %v1398_v61 = vld [vmem:[%s6375_s15 + $0xa0] sm:$0xff] }
 0x1c4   : > { %v5102_v17 = vmul.f32 %v4786_v8, %v1833_v46 }
 0x1c5   : > { %v5096_v32 = vmul.f32 %v4786_v8, %v1817_v5  ;;  %v1790_v53 = vadd.f32 1e-07, %v1726_v0  ;;  %v2043_v59 = vmax.f32 %v2039_v51, %v5093_v55  ;;  %v1694_v23 = vpop.f32.mrf.mxu3 }
 0x1c6   : > { %6411 = vst [vmem:[#allocation69_spill] sm:$0xff] %v5102_v17  ;;  %v1654_v2 = vpop.f32.mrf.mxu2  ;;  %v1695_v29 = vadd.f32 %v1694_v23, %v1434_v16  ;;  %v5115_v0 = vmul.f32 %v4808_v27, %v5102_v17  ;;  %v1419_v16 = vld [vmem:[%s6375_s15 + $0x148] sm:$0xff] }
 0x1c7   : > { %6410 = vst [vmem:[#allocation68_spill] sm:$0xff] %v5096_v32  ;;  %v5110_v3 = vmul.f32 %v4808_v27, %v5096_v32  ;;  %v1655_v5 = vadd.f32 %v1654_v2, %v1418_v22  ;;  %v5118_v18 = vmul.f32 %v4786_v8, %v1790_v53 }
 0x1c8   : > { %v1586_v28 = vpop.f32.mrf.mxu0  ;;  %6412 = vst [vmem:[#allocation70_spill] sm:$0xff] %v5115_v0  ;;  %v1770_v51 = vmax.f32 %v1695_v29, 0.0 }
 0x1c9   : > { %v2047_v20 = vmax.f32 %v2043_v59, %v5110_v3  ;;  %v1754_v46 = vmax.f32 %v1655_v5, 0.0  ;;  %v1587_v35 = vadd.f32 %v1586_v28, %v1391_v54  ;;  %6413 = vst [vmem:[#allocation71_spill] sm:$0xff] %v5118_v18  ;;  %v1435_v54 = vld [vmem:[%s6375_s15 + $0x1c8] sm:$0xff]  ;;  %v5132_v53 = vmul.f32 %v4808_v27, %v5118_v18 }
 0x1ca   : > { %v1834_v13 = vadd.f32 1e-07, %v1770_v51 }
 0x1cb   : > { %v1818_v11 = vadd.f32 1e-07, %v1754_v46  ;;  %v2051_v36 = vmax.f32 %v2047_v20, %v5115_v0  ;;  %v1727_v22 = vmax.f32 %v1587_v35, 0.0 }
 0x1cc   : > { %v5143_v29 = vmul.f32 %v4786_v8, %v1834_v13  ;;  %v1420_v13 = vld [vmem:[%s6375_s15 + $0x150] sm:$0xff] }
 0x1cd   : > { %v5125_v2 = vmul.f32 %v4786_v8, %v1818_v11  ;;  %v1696_v5 = vpop.f32.mrf.mxu3  ;;  %v1392_v11 = vld [vmem:[%s6375_s15 + $0x70] sm:$0xff]  ;;  %v2028_v23 = vmax.f32 %v5132_v53, %v2051_v36  ;;  %v1791_v28 = vadd.f32 1e-07, %v1727_v22 }
 0x1ce   : > { %v1656_v59 = vpop.f32.mrf.mxu2  ;;  %6415 = vst [vmem:[#allocation73_spill] sm:$0xff] %v5143_v29  ;;  %v1697_v46 = vadd.f32 %v1696_v5, %v1435_v54  ;;  %v1436_v22 = vld [vmem:[%s6375_s15 + $0x1d0] sm:$0xff] }
 0x1cf   : > { %6414 = vst [vmem:[#allocation72_spill] sm:$0xff] %v5125_v2  ;;  %v5136_v20 = vmul.f32 %v4808_v27, %v5125_v2  ;;  %v1657_v35 = vadd.f32 %v1656_v59, %v1419_v16  ;;  %v5148_v16 = vmul.f32 %v4808_v27, %v5143_v29  ;;  %v5151_v59 = vmul.f32 %v4786_v8, %v1791_v28 }
 0x1d0   : > { %v1589_v51 = vpop.f32.mrf.mxu0  ;;  %v1771_v17 = vmax.f32 %v1697_v46, 0.0 }
 0x1d1   : > { %v1755_v30 = vmax.f32 %v1657_v35, 0.0  ;;  %v2032_v19 = vmax.f32 %v2028_v23, %v5136_v20  ;;  %v1590_v32 = vadd.f32 %v1589_v51, %v1392_v11  ;;  %6416 = vst [vmem:[#allocation74_spill] sm:$0xff] %v5148_v16  ;;  %v5165_v28 = vmul.f32 %v4808_v27, %v5151_v59 }
 0x1d2   : > { %6417 = vst [vmem:[#allocation75_spill] sm:$0xff] %v5151_v59  ;;  %v1835_v54 = vadd.f32 1e-07, %v1771_v17 }
 0x1d3   : > { %v1819_v2 = vadd.f32 1e-07, %v1755_v30  ;;  %v2036_v30 = vmax.f32 %v2032_v19, %v5148_v16  ;;  %v1728_v35 = vmax.f32 %v1590_v32, 0.0  ;;  %v1393_v19 = vld [vmem:[%s6375_s15 + $0x78] sm:$0xff] }
 0x1d4   : > { %v5176_v17 = vmul.f32 %v4786_v8, %v1835_v54 }
 0x1d5   : > { %v5157_v36 = vmul.f32 %v4786_v8, %v1819_v2  ;;  %v1699_v23 = vpop.f32.mrf.mxu3  ;;  %v2040_v32 = vmax.f32 %v2036_v30, %v5165_v28 }
 0x1d6   : > { %v1659_v5 = vpop.f32.mrf.mxu2  ;;  %v1700_v2 = vadd.f32 %v1699_v23, %v1436_v22  ;;  %6419 = vst [vmem:[#allocation77_spill] sm:$0xff] %v5176_v17  ;;  %v1421_v22 = vld [vmem:[%s6375_s15 + $0x158] sm:$0xff] }
 0x1d7   : > { %6418 = vst [vmem:[#allocation76_spill] sm:$0xff] %v5157_v36  ;;  %v1660_v11 = vadd.f32 %v1659_v5, %v1420_v13  ;;  %v5169_v46 = vmul.f32 %v4808_v27, %v5157_v36  ;;  %v1792_v13 = vadd.f32 1e-07, %v1728_v35  ;;  %v1437_v35 = vld [vmem:[%s6375_s15 + $0x1d8] sm:$0xff] }
 0x1d8   : > { %v1591_v51 = vpop.f32.mrf.mxu0  ;;  %v1772_v25 = vmax.f32 %v1700_v2, 0.0 }
 0x1d9   : > { %v1756_v29 = vmax.f32 %v1660_v11, 0.0  ;;  %v2044_v24 = vmax.f32 %v2040_v32, %v5169_v46  ;;  %v1592_v21 = vadd.f32 %v1591_v51, %v1393_v19  ;;  %v5184_v11 = vmul.f32 %v4808_v27, %v5176_v17 }
 0x1da   : > { %v5187_v23 = vmul.f32 %v4786_v8, %v1792_v13  ;;  %v1836_v19 = vadd.f32 1e-07, %v1772_v25 }
 0x1db   : > { %v1820_v5 = vadd.f32 1e-07, %v1756_v29  ;;  %6420 = vst [vmem:[#allocation78_spill] sm:$0xff] %v5184_v11  ;;  %v2048_v51 = vmax.f32 %v2044_v24, %v5184_v11  ;;  %v1729_v32 = vmax.f32 %v1592_v21, 0.0 }
 0x1dc   : > { %6421 = vst [vmem:[#allocation79_spill] sm:$0xff] %v5187_v23  ;;  %v5198_v13 = vmul.f32 %v4808_v27, %v5187_v23  ;;  %v5209_v24 = vmul.f32 %v4786_v8, %v1836_v19 }
 0x1dd   : > { %v5190_v30 = vmul.f32 %v4786_v8, %v1820_v5  ;;  %v1701_v2 = vpop.f32.mrf.mxu3  ;;  %v1793_v21 = vadd.f32 1e-07, %v1729_v32 }
 0x1de   : > { %v1661_v54 = vpop.f32.mrf.mxu2  ;;  %v2052_v31 = vmax.f32 %v2048_v51, %v5198_v13  ;;  %6423 = vst [vmem:[#allocation81_spill] sm:$0xff] %v5209_v24 }
 0x1df   : > { %6422 = vst [vmem:[#allocation80_spill] sm:$0xff] %v5190_v30  ;;  %v1662_v29 = vadd.f32 %v1661_v54, %v1421_v22  ;;  %v5202_v5 = vmul.f32 %v4808_v27, %v5190_v30  ;;  %v1702_v22 = vadd.f32 %v1701_v2, %v1437_v35  ;;  %v1394_v54 = vld [vmem:[%s6375_s15 + $0x80] sm:$0xff]  ;;  %v5217_v2 = vmul.f32 %v4808_v27, %v5209_v24 }
 0x1e0   : > { %v1594_v36 = vpop.f32.mrf.mxu0  ;;  %v1406_v30 = vld [vmem:[%s6375_s15 + $0xe0] sm:$0xff]  ;;  %v5220_v51 = vmul.f32 %v4786_v8, %v1793_v21 }
 0x1e1   : > { %v1757_v17 = vmax.f32 %v1662_v29, 0.0  ;;  %v2029_v29 = vmax.f32 %v5202_v5, %v2052_v31  ;;  %v1773_v38 = vmax.f32 %v1702_v22, 0.0  ;;  %v1595_v4 = vadd.f32 %v1594_v36, %v1394_v54  ;;  %v1624_v35 = vpop.f32.mrf.mxu1  ;;  %6424 = vst [vmem:[#allocation82_spill] sm:$0xff] %v5217_v2  ;;  %v1422_v31 = vld [vmem:[%s6375_s15 + $0x160] sm:$0xff] }
 0x1e2   : > { %6425 = vst [vmem:[#allocation83_spill] sm:$0xff] %v5220_v51  ;;  %v1625_v45 = vadd.f32 %v1624_v35, %v1406_v30  ;;  %v5231_v24 = vmul.f32 %v4808_v27, %v5220_v51 }
 0x1e3   : > { %v1821_v25 = vadd.f32 1e-07, %v1757_v17  ;;  %v2033_v32 = vmax.f32 %v2029_v29, %v5217_v2  ;;  %v1837_v22 = vadd.f32 1e-07, %v1773_v38  ;;  %v1730_v54 = vmax.f32 %v1595_v4, 0.0 }
 0x1e4   : > { %v1742_v4 = vmax.f32 %v1625_v45, 0.0 }
 0x1e5   : > { %v5223_v19 = vmul.f32 %v4786_v8, %v1821_v25  ;;  %v2037_v9 = vmax.f32 %v2033_v32, %v5231_v24  ;;  %v5242_v29 = vmul.f32 %v4786_v8, %v1837_v22  ;;  %v1794_v38 = vadd.f32 1e-07, %v1730_v54  ;;  %v1407_v32 = vld [vmem:[%s6375_s15 + $0xe8] sm:$0xff] }
 0x1e6   : > { %v1664_v36 = vpop.f32.mrf.mxu2 }
 0x1e7   : > { %6426 = vst [vmem:[#allocation84_spill] sm:$0xff] %v5223_v19  ;;  %v5235_v21 = vmul.f32 %v4808_v27, %v5223_v19  ;;  %v1665_v25 = vadd.f32 %v1664_v36, %v1422_v31  ;;  %v5247_v19 = vmul.f32 %v4808_v27, %v5242_v29  ;;  %v5250_v31 = vmul.f32 %v4786_v8, %v1794_v38 }
 0x1e8   : > { %v1596_v17 = vpop.f32.mrf.mxu0  ;;  %6427 = vst [vmem:[#allocation85_spill] sm:$0xff] %v5242_v29  ;;  %v1806_v36 = vadd.f32 1e-07, %v1742_v4 }
 0x1e9   : > { %v2041_v30 = vmax.f32 %v2037_v9, %v5235_v21  ;;  %v1758_v35 = vmax.f32 %v1665_v25, 0.0  ;;  %v1597_v62 = vadd.f32 %v1596_v17, %v1395_v56  ;;  %6428 = vst [vmem:[#allocation86_spill] sm:$0xff] %v5247_v19  ;;  %v1626_v22 = vpop.f32.mrf.mxu1  ;;  %v1423_v9 = vld [vmem:[%s6375_s15 + $0x168] sm:$0xff]  ;;  %v5261_v25 = vmul.f32 %v4808_v27, %v5250_v31 }
 0x1ea   : > { %6429 = vst [vmem:[#allocation87_spill] sm:$0xff] %v5250_v31  ;;  %v5264_v38 = vmul.f32 %v4786_v8, %v1806_v36  ;;  %v1627_v4 = vadd.f32 %v1626_v22, %v1407_v32 }
 0x1eb   : > { %v2045_v56 = vmax.f32 %v2041_v30, %v5247_v19  ;;  %v1822_v17 = vadd.f32 1e-07, %v1758_v35  ;;  %v1731_v54 = vmax.f32 %v1597_v62, 0.0  ;;  %v1438_v62 = vld [vmem:[%s6375_s15 + $0x1e0] sm:$0xff]  ;;  %v1403_v19 = vld [vmem:[%s6375_s15 + $0xc8] sm:$0xff] }
 0x1ec   : > { %6430 = vst [vmem:[#allocation88_spill] sm:$0xff] %v5264_v38  ;;  %v5275_v35 = vmul.f32 %v4808_v27, %v5264_v38  ;;  %v1743_v36 = vmax.f32 %v1627_v4, 0.0  ;;  %v1397_v38 = vld [vmem:[%s6375_s15 + $0x98] sm:$0xff] }
 0x1ed   : > { %v2049_v60 = vmax.f32 %v2045_v56, %v5261_v25  ;;  %v5268_v14 = vmul.f32 %v4786_v8, %v1822_v17  ;;  %v1795_v6 = vadd.f32 1e-07, %v1731_v54  ;;  %v1396_v56 = vld [vmem:[%s6375_s15 + $0x90] sm:$0xff] }
 0x1ee   : > { %v1666_v45 = vpop.f32.mrf.mxu2  ;;  %v1704_v30 = vpop.f32.mrf.mxu3  ;;  %v1807_v17 = vadd.f32 1e-07, %v1743_v36 }
 0x1ef   : > { %v1667_v29 = vadd.f32 %v1666_v45, %v1423_v9  ;;  %6431 = vst [vmem:[#allocation89_spill] sm:$0xff] %v5268_v14  ;;  %v2053_v32 = vmax.f32 %v2049_v60, %v5275_v35  ;;  %v5280_v22 = vmul.f32 %v4808_v27, %v5268_v14  ;;  %v5283_v9 = vmul.f32 %v4786_v8, %v1795_v6  ;;  %v1408_v6 = vld [vmem:[%s6375_s15 + $0xf0] sm:$0xff] }
 0x1f0   : > { %v1599_v34 = vpop.f32.mrf.mxu0  ;;  %v1705_v45 = vadd.f32 %v1704_v30, %v1438_v62  ;;  %v5297_v30 = vmul.f32 %v4786_v8, %v1807_v17 }
 0x1f1   : > { %v1759_v31 = vmax.f32 %v1667_v29, 0.0  ;;  %6432 = vst [vmem:[#allocation90_spill] sm:$0xff] %v5283_v9  ;;  %v2030_v33 = vmax.f32 %v5280_v22, %v2053_v32  ;;  %v5291_v29 = vmul.f32 %v4808_v27, %v5283_v9  ;;  %v1600_v4 = vadd.f32 %v1599_v34, %v1396_v56  ;;  %v1629_v62 = vpop.f32.mrf.mxu1 }
 0x1f2   : > { %v1774_v60 = vmax.f32 %v1705_v45, 0.0  ;;  %6433 = vst [vmem:[#allocation91_spill] sm:$0xff] %v5297_v30  ;;  %v1630_v9 = vadd.f32 %v1629_v62, %v1408_v6  ;;  %v5308_v12 = vmul.f32 %v4808_v27, %v5297_v30 }
 0x1f3   : > { %v1823_v54 = vadd.f32 1e-07, %v1759_v31  ;;  %v1439_v31 = vld [vmem:[%s6375_s15 + $0x1e8] sm:$0xff]  ;;  %v2034_v45 = vmax.f32 %v2030_v33, %v5291_v29  ;;  %v1732_v56 = vmax.f32 %v1600_v4, 0.0 }
 0x1f4   : > { %v1838_v34 = vadd.f32 1e-07, %v1774_v60  ;;  %v1744_v4 = vmax.f32 %v1630_v9, 0.0 }
 0x1f5   : > { %v5300_v36 = vmul.f32 %v4786_v8, %v1823_v54  ;;  %v2038_v18 = vmax.f32 %v2034_v45, %v5308_v12  ;;  %v1796_v60 = vadd.f32 1e-07, %v1732_v56  ;;  %v1409_v45 = vld [vmem:[%s6375_s15 + $0xf8] sm:$0xff] }
 0x1f6   : > { %v1706_v32 = vpop.f32.mrf.mxu3  ;;  %v5319_v33 = vmul.f32 %v4786_v8, %v1838_v34 }
 0x1f7   : > { %6434 = vst [vmem:[#allocation92_spill] sm:$0xff] %v5300_v36  ;;  %v5312_v17 = vmul.f32 %v4808_v27, %v5300_v36  ;;  %v1707_v54 = vadd.f32 %v1706_v32, %v1439_v31  ;;  %v5327_v32 = vmul.f32 %v4786_v8, %v1796_v60  ;;  %v1808_v36 = vadd.f32 1e-07, %v1744_v4 }
 0x1f8   : > { %v1601_v7 = vpop.f32.mrf.mxu0  ;;  %6435 = vst [vmem:[#allocation93_spill] sm:$0xff] %v5319_v33  ;;  %v5324_v31 = vmul.f32 %v4808_v27, %v5319_v33 }
 0x1f9   : > { %v2042_v62 = vmax.f32 %v2038_v18, %v5312_v17  ;;  %v1775_v26 = vmax.f32 %v1707_v54, 0.0  ;;  %v1602_v30 = vadd.f32 %v1601_v7, %v1397_v38  ;;  %6437 = vst [vmem:[#allocation95_spill] sm:$0xff] %v5327_v32  ;;  %v1631_v34 = vpop.f32.mrf.mxu1  ;;  %v1424_v18 = vld [vmem:[%s6375_s15 + $0x170] sm:$0xff]  ;;  %v5338_v56 = vmul.f32 %v4808_v27, %v5327_v32 }
 0x1fa   : > { %6436 = vst [vmem:[#allocation94_spill] sm:$0xff] %v5324_v31  ;;  %v5341_v54 = vmul.f32 %v4786_v8, %v1808_v36  ;;  %v1632_v60 = vadd.f32 %v1631_v34, %v1409_v45 }
 0x1fb   : > { %v2046_v7 = vmax.f32 %v2042_v62, %v5324_v31  ;;  %v1839_v38 = vadd.f32 1e-07, %v1775_v26  ;;  %v1733_v9 = vmax.f32 %v1602_v30, 0.0 }
 0x1fc   : > { %6438 = vst [vmem:[#allocation96_spill] sm:$0xff] %v5341_v54  ;;  %v5352_v30 = vmul.f32 %v4808_v27, %v5341_v54  ;;  %v1745_v32 = vmax.f32 %v1632_v60, 0.0 }
 0x1fd   : > { %v2050_v23 = vmax.f32 %v2046_v7, %v5338_v56  ;;  %v5348_v62 = vmul.f32 %v4786_v8, %v1839_v38  ;;  %v1797_v26 = vadd.f32 1e-07, %v1733_v9 }
 0x1fe   : > { %v1809_v54 = vadd.f32 1e-07, %v1745_v32 }
 0x1ff   : > { %v1669_v59 = vpop.f32.mrf.mxu2  ;;  %6439 = vst [vmem:[#allocation97_spill] sm:$0xff] %v5348_v62  ;;  %v5360_v7 = vmul.f32 %v4808_v27, %v5348_v62  ;;  %v5363_v38 = vmul.f32 %v4786_v8, %v1797_v26 }
 0x200   : > { %v1604_v14 = vpop.f32.mrf.mxu0  ;;  %v1670_v4 = vadd.f32 %v1669_v59, %v1424_v18  ;;  %v1425_v59 = vld [vmem:[%s6375_s15 + $0x178] sm:$0xff]  ;;  %v2054_v18 = vmax.f32 %v2050_v23, %v5352_v30  ;;  %v1440_v23 = vld [vmem:[%s6375_s15 + $0x1f0] sm:$0xff]  ;;  %v5374_v16 = vmul.f32 %v4786_v8, %v1809_v54 }
 0x201   : > { %v1605_v0 = vadd.f32 %v1604_v14, %v1398_v61  ;;  %6440 = vst [vmem:[#allocation98_spill] sm:$0xff] %v5360_v7  ;;  %v5368_v51 = vmul.f32 %v4808_v27, %v5363_v38 }
 0x202   : > { %v1760_v36 = vmax.f32 %v1670_v4, 0.0  ;;  %6441 = vst [vmem:[#allocation99_spill] sm:$0xff] %v5363_v38  ;;  %v2055_v14 = vmax.f32 %v5360_v7, %v2054_v18  ;;  %v5388_v54 = vmul.f32 %v4808_v27, %v5374_v16 }
 0x203   : > { %v1734_v4 = vmax.f32 %v1605_v0, 0.0  ;;  %6442 = vst [vmem:[#allocation100_spill] sm:$0xff] %v5374_v16 }
 0x204   : > { %v1824_v60 = vadd.f32 1e-07, %v1760_v36  ;;  %v1399_v36 = vld [vmem:[%s6375_s15 + $0xa8] sm:$0xff] }
 0x205   : > { %v1798_v32 = vadd.f32 1e-07, %v1734_v4 }
 0x206   : > { %v5377_v26 = vmul.f32 %v4786_v8, %v1824_v60 }
 0x207   : > { %v1671_v45 = vpop.f32.mrf.mxu2  ;;  %v1709_v34 = vpop.f32.mrf.mxu3 }
 0x208   : > { %v1606_v6 = vpop.f32.mrf.mxu0  ;;  %v1672_v9 = vadd.f32 %v1671_v45, %v1425_v59  ;;  %6443 = vst [vmem:[#allocation101_spill] sm:$0xff] %v5377_v26  ;;  %v1710_v0 = vadd.f32 %v1709_v34, %v1440_v23  ;;  %v2056_v59 = vmax.f32 %v5368_v51, %v2055_v14  ;;  %v1441_v45 = vld [vmem:[%s6375_s15 + $0x1f8] sm:$0xff]  ;;  %v5392_v60 = vmul.f32 %v4808_v27, %v5377_v26 }
 0x209   : > { %v5395_v34 = vmul.f32 %v4786_v8, %v1798_v32  ;;  %v1607_v4 = vadd.f32 %v1606_v6, %v1399_v36  ;;  %v1401_v6 = vld [vmem:[%s6375_s15 + $0xb8] sm:$0xff] }
 0x20a   : > { %v1761_v62 = vmax.f32 %v1672_v9, 0.0  ;;  %v1776_v14 = vmax.f32 %v1710_v0, 0.0  ;;  %v2057_v11 = vmax.f32 %v5388_v54, %v2056_v59  ;;  %v4035_v0 = vmov -1e+30  }
 0x20b   : > { %6444 = vst [vmem:[#allocation102_spill] sm:$0xff] %v5395_v34  ;;  %v5407_v26 = vmul.f32 %v4808_v27, %v5395_v34  ;;  %v1735_v32 = vmax.f32 %v1607_v4, 0.0 }
 0x20c   : > { %v1825_v9 = vadd.f32 1e-07, %v1761_v62  ;;  %v1400_v62 = vld [vmem:[%s6375_s15 + $0xb0] sm:$0xff]  ;;  %v2058_v2 = vmax.f32 %v5392_v60, %v2057_v11  ;;  %891 = vst [vmem:[#allocation5] sm:$0x1] %v4035_v0 }
 0x20d   : > { %v1840_v36 = vadd.f32 1e-07, %v1776_v14  ;;  %v1799_v34 = vadd.f32 1e-07, %v1735_v32 }
 0x20e   : > { %v5402_v16 = vmul.f32 %v4786_v8, %v1825_v9  ;;  %v2059_v4 = vmax.f32 %v5407_v26, %v2058_v2 }
 0x20f   : > { %v1711_v18 = vpop.f32.mrf.mxu3 }
 0x210   : > { %v1609_v33 = vpop.f32.mrf.mxu0  ;;  %v1712_v38 = vadd.f32 %v1711_v18, %v1441_v45  ;;  %6445 = vst [vmem:[#allocation103_spill] sm:$0xff] %v5402_v16  ;;  %v1402_v18 = vld [vmem:[%s6375_s15 + $0xc0] sm:$0xff]  ;;  %v5417_v11 = vmul.f32 %v4808_v27, %v5402_v16 }
 0x211   : > { %v1610_v45 = vadd.f32 %v1609_v33, %v1400_v62 }
 0x212   : > { %v1777_v59 = vmax.f32 %v1712_v38, 0.0  ;;  %v5424_v38 = vmul.f32 %v4786_v8, %v1840_v36  ;;  %v2060_v31 = vmax.f32 %v5417_v11, %v2059_v4 }
 0x213   : > { %v1736_v14 = vmax.f32 %v1610_v45, 0.0 }
 0x214   : > { %6446 = vst [vmem:[#allocation104_spill] sm:$0xff] %v5424_v38  ;;  %v1841_v33 = vadd.f32 1e-07, %v1777_v59  ;;  %v5432_v2 = vmul.f32 %v4808_v27, %v5424_v38 }
 0x216   : > { %6448 = vst [vmem:[#allocation106_spill] sm:$0xff] %v5432_v2  ;;  %v5435_v32 = vmul.f32 %v4786_v8, %v1841_v33  ;;  %v2061_v59 = vmax.f32 %v5432_v2, %v2060_v31  ;;  %v5502_v2 = vld [vmem:[#allocation5] sm:$0x1] }
 0x217   : > { %6455 = vst [vmem:[#allocation113_spill] sm:$0xff] %v5502_v2 }
 0x218   : > { %v1611_v61 = vpop.f32.mrf.mxu0  ;;  %6449 = vst [vmem:[#allocation107_spill] sm:$0xff] %v5435_v32 }
 0x219   : > { %v1612_v9 = vadd.f32 %v1611_v61, %v1401_v6  ;;  %v5428_v61 = vmul.f32 %v4786_v8, %v1799_v34  ;;  %v1800_v6 = vadd.f32 1e-07, %v1736_v14 }
 0x21b   : > { %v1737_v7 = vmax.f32 %v1612_v9, 0.0  ;;  %6447 = vst [vmem:[#allocation105_spill] sm:$0xff] %v5428_v61  ;;  %v5443_v34 = vmul.f32 %v4808_v27, %v5428_v61  ;;  %v5447_v9 = vmul.f32 %v4808_v27, %v5435_v32  ;;  %v5450_v4 = vmul.f32 %v4786_v8, %v1800_v6 }
 0x21d   : > { %v1801_v45 = vadd.f32 1e-07, %v1737_v7  ;;  %6450 = vst [vmem:[#allocation108_spill] sm:$0xff] %v5450_v4  ;;  %v2062_v14 = vmax.f32 %v5443_v34, %v2061_v59  ;;  %v5459_v38 = vmul.f32 %v4808_v27, %v5450_v4 }
 0x21f   : > { %v5454_v31 = vmul.f32 %v4786_v8, %v1801_v45 }
 0x220   : > { %v1614_v23 = vpop.f32.mrf.mxu0 }
 0x221   : > { %v1615_v62 = vadd.f32 %v1614_v23, %v1402_v18  ;;  %v1404_v23 = vld [vmem:[%s6375_s15 + $0xd0] sm:$0xff]  ;;  %6451 = vst [vmem:[#allocation109_spill] sm:$0xff] %v5454_v31 }
 0x223   : > { %v1738_v36 = vmax.f32 %v1615_v62, 0.0  ;;  %v2063_v62 = vmax.f32 %v5447_v9, %v2062_v14 }
 0x228   : > { %v1616_v0 = vpop.f32.mrf.mxu0 }
 0x229   : > { %v1617_v16 = vadd.f32 %v1616_v0, %v1403_v19  ;;  %v1802_v0 = vadd.f32 1e-07, %v1738_v36  ;;  %v1405_v36 = vld [vmem:[%s6375_s15 + $0xd8] sm:$0xff] }
 0x22b   : > { %v1739_v19 = vmax.f32 %v1617_v16, 0.0  ;;  %v5462_v32 = vmul.f32 %v4786_v8, %v1802_v0 }
 0x22d   : > { %v1803_v16 = vadd.f32 1e-07, %v1739_v19  ;;  %6452 = vst [vmem:[#allocation110_spill] sm:$0xff] %v5462_v32  ;;  %v2064_v19 = vmax.f32 %v5459_v38, %v2063_v62 }
 0x22f   : > { %v5472_v59 = vmul.f32 %v4786_v8, %v1803_v16 }
 0x230   : > { %v1619_v18 = vpop.f32.mrf.mxu0 }
 0x231   : > { %v1620_v33 = vadd.f32 %v1619_v18, %v1404_v23  ;;  %v5469_v23 = vmul.f32 %v4808_v27, %v5454_v31  ;;  %6453 = vst [vmem:[#allocation111_spill] sm:$0xff] %v5472_v59  ;;  %v5477_v18 = vmul.f32 %v4808_v27, %v5462_v32 }
 0x233   : > { %v1740_v7 = vmax.f32 %v1620_v33, 0.0  ;;  %v2065_v14 = vmax.f32 %v5469_v23, %v2064_v19 }
 0x235   : > { %v1804_v6 = vadd.f32 1e-07, %v1740_v7  ;;  %v5485_v7 = vmul.f32 %v4808_v27, %v5472_v59  ;;  %v2066_v16 = vmax.f32 %v5477_v18, %v2065_v14 }
 0x237   : > { %v5480_v0 = vmul.f32 %v4786_v8, %v1804_v6  ;;  %v2067_v31 = vmax.f32 %v5485_v7, %v2066_v16 }
 0x238   : > { %v1621_v45 = vpop.f32.mrf.mxu0 }
 0x239   : > { %6454 = vst [vmem:[#allocation112_spill] sm:$0xff] %v5480_v0  ;;  %v1622_v33 = vadd.f32 %v1621_v45, %v1405_v36  ;;  %v5490_v62 = vmul.f32 %v4808_v27, %v5480_v0 }
 0x23b   : > { %v1741_v61 = vmax.f32 %v1622_v33, 0.0  ;;  %v2068_v36 = vmax.f32 %v5490_v62, %v2067_v31 }
 0x23d   : > { %v1805_v4 = vadd.f32 1e-07, %v1741_v61 }
 0x23f   : > { %v5494_v6 = vmul.f32 %v4786_v8, %v1805_v4 }
 0x241   : > { %v5499_v45 = vmul.f32 %v4808_v27, %v5494_v6 }
 0x243   : > { %v2069_v19 = vmax.f32 %v5499_v45, %v2068_v36 }
 0x245   : > { %v2070_v33 = vrot.slane %v2069_v19, 4 }
 0x247   : > { %v2071_v14 = vmax.f32 %v2069_v19, %v2070_v33 }
 0x249   : > { %v2072_v32 = vrot.slane %v2071_v14, 2 }
 0x24b   : > { %v2073_v59 = vmax.f32 %v2071_v14, %v2072_v32 }
 0x24d   : > { %v2074_v0 = vrot.slane %v2073_v59, 1 }
 0x24f   : > { %v2075_v61 = vmax.f32 %v2073_v59, %v2074_v0 }
 0x251   : > { %v2520_v4 = vsub.f32 %v2075_v61, %v5502_v2  ;;  %v5506_v16 = vmax.f32 %v5502_v2, %v2075_v61  ;;  %v6470_v2 = vld [vmem:[#allocation100_spill] sm:$0xff] }
 0x253   : > { %6456 = vst [vmem:[#allocation114_spill] sm:$0xff] %v5506_v16  ;;  %v2522_v31 = vsel %vm2521_vm6, %v2520_v4, -inf  ;;  %v5509_v27 = vperm.slane %v5506_v16, 0 }
 0x254   : > { %2523 = vmax.xlane.f32.xlu1 %v2522_v31 }
 0x255   : > { %v2095_v36 = vsub.f32 %v5231_v24, %v5509_v27  ;;  %v2111_v32 = vsub.f32 %v5388_v54, %v5509_v27  ;;  %v2127_v59 = vsub.f32 %v5417_v11, %v5509_v27  ;;  %v2143_v24 = vsub.f32 %v5447_v9, %v5509_v27 }
 0x256   : > { %v2094_v54 = vsub.f32 %v5198_v13, %v5509_v27  ;;  %v2110_v11 = vsub.f32 %v5352_v30, %v5509_v27  ;;  %v2126_v31 = vsub.f32 %v5392_v60, %v5509_v27  ;;  %v2125_v9 = vsub.f32 %v5312_v17, %v5509_v27 }
 0x257   : > { %v2174_v0 = vmul.f32 1.442695, %v2095_v36  ;;  %v2206_v19 = vmul.f32 1.442695, %v2111_v32  ;;  %v2238_v33 = vmul.f32 1.442695, %v2127_v59  ;;  %v2093_v32 = vsub.f32 %v5165_v28, %v5509_v27 }
 0x258   : > { %v2270_v36 = vmul.f32 1.442695, %v2143_v24  ;;  %v2172_v59 = vmul.f32 1.442695, %v2094_v54  ;;  %v2092_v13 = vsub.f32 %v5132_v53, %v5509_v27  ;;  %v2108_v60 = vsub.f32 %v5275_v35, %v5509_v27 }
 0x259   : > { %3537 = vpow2.f32 %v2174_v0  ;;  %v2109_v0 = vsub.f32 %v5308_v12, %v5509_v27  ;;  %v2170_v30 = vmul.f32 1.442695, %v2093_v32  ;;  %v2124_v28 = vsub.f32 %v5280_v22, %v5509_v27 }
 0x25a   : > { %3539 = vpow2.f32 %v2206_v19  ;;  %v2204_v19 = vmul.f32 1.442695, %v2110_v11  ;;  %v2234_v12 = vmul.f32 1.442695, %v2125_v9  ;;  %v2091_v54 = vsub.f32 %v5093_v55, %v5509_v27 }
 0x25b   : > { %3541 = vpow2.f32 %v2238_v33  ;;  %v2236_v33 = vmul.f32 1.442695, %v2126_v31  ;;  %v2202_v24 = vmul.f32 1.442695, %v2109_v0  ;;  %v2168_v17 = vmul.f32 1.442695, %v2092_v13 }
 0x25c   : > { %3543 = vpow2.f32 %v2270_v36  ;;  %v2107_v53 = vsub.f32 %v5499_v45, %v5509_v27  ;;  %v2200_v11 = vmul.f32 1.442695, %v2108_v60  ;;  %v2123_v35 = vsub.f32 %v5235_v21, %v5509_v27 }
 0x25d   : > { %3545 = vpow2.f32 %v2172_v59  ;;  %v2232_v31 = vmul.f32 1.442695, %v2124_v28  ;;  %v2090_v22 = vsub.f32 %v5060_v47, %v5509_v27  ;;  %v2166_v32 = vmul.f32 1.442695, %v2091_v54 }
 0x25e   : > { %3547 = vpow2.f32 %v2204_v19  ;;  %v2106_v55 = vsub.f32 %v5490_v62, %v5509_v27  ;;  %v2198_v45 = vmul.f32 1.442695, %v2107_v53  ;;  %v2122_v0 = vsub.f32 %v5202_v5, %v5509_v27 }
 0x25f   : > { %v5517_v14 = vpop.eup %3537  ;;  %3549 = vpow2.f32 %v2236_v33  ;;  %v2230_v47 = vmul.f32 1.442695, %v2123_v35  ;;  %v2089_v19 = vsub.f32 %v5027_v10, %v5509_v27  ;;  %v2164_v62 = vmul.f32 1.442695, %v2090_v22 }
 0x260   : > { %v5519_v61 = vpop.eup %3539  ;;  %2336 = vmatpush.msrb.mxu1 %v5517_v14  ;;  %3551 = vpow2.f32 %v2170_v30  ;;  %v2105_v33 = vsub.f32 %v5485_v7, %v5509_v27  ;;  %v2196_v5 = vmul.f32 1.442695, %v2106_v55  ;;  %v2121_v30 = vsub.f32 %v5169_v46, %v5509_v27 }
 0x261   : > { %v5522_v4 = vpop.eup %3541  ;;  %2359 = vmatpush.msrb.mxu2 %v5519_v61  ;;  %3553 = vpow2.f32 %v2202_v24  ;;  %v2228_v10 = vmul.f32 1.442695, %v2122_v0  ;;  %v2088_v24 = vsub.f32 %v4992_v39, %v5509_v27  ;;  %v2162_v7 = vmul.f32 1.442695, %v2089_v19 }
 0x262   : > { %2382 = vmatpush.msrb.mxu3 %v5522_v4  ;;  %v5554_v36 = vpop.eup %3543  ;;  %3555 = vpow2.f32 %v2234_v12  ;;  %v2104_v12 = vsub.f32 %v5477_v18, %v5509_v27  ;;  %v2194_v46 = vmul.f32 1.442695, %v2105_v33  ;;  %v2226_v39 = vmul.f32 1.442695, %v2121_v30 }
 0x263   : > { %v5558_v59 = vpop.eup %3545  ;;  %3557 = vpow2.f32 %v2168_v17  ;;  %v2120_v17 = vsub.f32 %v5136_v20, %v5509_v27  ;;  %v2160_v18 = vmul.f32 1.442695, %v2088_v24  ;;  %v2303_v16 = vmul.f32 %v5519_v61, %v6470_v2  ;;  %v6472_v2 = vld [vmem:[#allocation79_spill] sm:$0xff] }
 0x264   : > { %v5562_v21 = vpop.eup %3547  ;;  %2337 = vmatpush.msrb.mxu1 %v5558_v59  ;;  %3559 = vpow2.f32 %v2200_v11  ;;  %v2087_v11 = vsub.f32 %v4954_v48, %v5509_v27  ;;  %v2192_v20 = vmul.f32 1.442695, %v2104_v12  ;;  %v2286_v61 = vmul.f32 %v5558_v59, %v6472_v2 }
 0x265   : > { %v5567_v9 = vpop.eup %3549  ;;  %2360 = vmatpush.msrb.mxu2 %v5562_v21  ;;  %3561 = vpow2.f32 %v2232_v31  ;;  %v2103_v31 = vsub.f32 %v5469_v23, %v5509_v27  ;;  %v2224_v48 = vmul.f32 1.442695, %v2120_v17 }
 0x266   : > { %v5572_v13 = vpop.eup %3551  ;;  %2383 = vmatpush.msrb.mxu3 %v5567_v9  ;;  %3563 = vpow2.f32 %v2166_v32  ;;  %v2119_v32 = vsub.f32 %v5110_v3, %v5509_v27  ;;  %v2158_v23 = vmul.f32 1.442695, %v2087_v11 }
 0x267   : > { %v5577_v60 = vpop.eup %3553  ;;  %2338 = vmatpush.msrb.mxu1 %v5572_v13  ;;  %3565 = vpow2.f32 %v2198_v45  ;;  %v2086_v45 = vsub.f32 %v4917_v63, %v5509_v27  ;;  %v2190_v3 = vmul.f32 1.442695, %v2103_v31 }
 0x268   : > { %v5582_v28 = vpop.eup %3555  ;;  %2361 = vmatpush.msrb.mxu2 %v5577_v60  ;;  %3567 = vpow2.f32 %v2230_v47  ;;  %v2102_v47 = vsub.f32 %v5459_v38, %v5509_v27  ;;  %v2222_v63 = vmul.f32 1.442695, %v2119_v32 }
 0x269   : > { %v5587_v54 = vpop.eup %3557  ;;  %2384 = vmatpush.msrb.mxu3 %v5582_v28  ;;  %3569 = vpow2.f32 %v2164_v62  ;;  %v2118_v62 = vsub.f32 %v5077_v57, %v5509_v27  ;;  %v2156_v38 = vmul.f32 1.442695, %v2086_v45 }
 0x26a   : > { %v5592_v53 = vpop.eup %3559  ;;  %2339 = vmatpush.msrb.mxu1 %v5587_v54  ;;  %3571 = vpow2.f32 %v2196_v5  ;;  %v2085_v5 = vsub.f32 %v4884_v49, %v5509_v27  ;;  %v2188_v57 = vmul.f32 1.442695, %v2102_v47 }
 0x26b   : > { %v5597_v35 = vpop.eup %3561  ;;  %2362 = vmatpush.msrb.mxu2 %v5592_v53  ;;  %3573 = vpow2.f32 %v2228_v10  ;;  %v2101_v10 = vsub.f32 %v5443_v34, %v5509_v27  ;;  %v2220_v49 = vmul.f32 1.442695, %v2118_v62 }
 0x26c   : > { %v5602_v22 = vpop.eup %3563  ;;  %2385 = vmatpush.msrb.mxu3 %v5597_v35  ;;  %3575 = vpow2.f32 %v2162_v7  ;;  %v2117_v7 = vsub.f32 %v5044_v58, %v5509_v27  ;;  %v2154_v34 = vmul.f32 1.442695, %v2085_v5 }
 0x26d   : > { %v5607_v55 = vpop.eup %3565  ;;  %2340 = vmatpush.msrb.mxu1 %v5602_v22  ;;  %3577 = vpow2.f32 %v2194_v46  ;;  %v2084_v46 = vsub.f32 %v4840_v44, %v5509_v27  ;;  %v2186_v58 = vmul.f32 1.442695, %v2101_v10 }
 0x26e   : > { %v5612_v0 = vpop.eup %3567  ;;  %2363 = vmatpush.msrb.mxu2 %v5607_v55  ;;  %3579 = vpow2.f32 %v2226_v39  ;;  %v2100_v39 = vsub.f32 %v5407_v26, %v5509_v27  ;;  %v2218_v44 = vmul.f32 1.442695, %v2117_v7 }
 0x26f   : > { %v5617_v19 = vpop.eup %3569  ;;  %2386 = vmatpush.msrb.mxu3 %v5612_v0  ;;  %3581 = vpow2.f32 %v2160_v18  ;;  %v2116_v18 = vsub.f32 %v5010_v50, %v5509_v27  ;;  %v2152_v26 = vmul.f32 1.442695, %v2084_v46 }
 0x270   : > { %v5622_v33 = vpop.eup %3571  ;;  %2341 = vmatpush.msrb.mxu1 %v5617_v19  ;;  %3583 = vpow2.f32 %v2192_v20  ;;  %v2083_v20 = vsub.f32 %v4836_v43, %v5509_v27  ;;  %v2184_v50 = vmul.f32 1.442695, %v2100_v39 }
 0x271   : > { %v5627_v30 = vpop.eup %3573  ;;  %2364 = vmatpush.msrb.mxu2 %v5622_v33  ;;  %3585 = vpow2.f32 %v2224_v48  ;;  %v2099_v48 = vsub.f32 %v5368_v51, %v5509_v27  ;;  %v2216_v43 = vmul.f32 1.442695, %v2116_v18 }
 0x272   : > { %v5632_v24 = vpop.eup %3575  ;;  %2387 = vmatpush.msrb.mxu3 %v5627_v30  ;;  %3587 = vpow2.f32 %v2158_v23  ;;  %v2115_v23 = vsub.f32 %v4971_v52, %v5509_v27  ;;  %v2150_v51 = vmul.f32 1.442695, %v2083_v20 }
 0x273   : > { %v5637_v12 = vpop.eup %3577  ;;  %2342 = vmatpush.msrb.mxu1 %v5632_v24  ;;  %3589 = vpow2.f32 %v2190_v3  ;;  %v2082_v3 = vsub.f32 %v4821_v37, %v5509_v27  ;;  %v2182_v52 = vmul.f32 1.442695, %v2099_v48 }
 0x274   : > { %v5642_v17 = vpop.eup %3579  ;;  %2365 = vmatpush.msrb.mxu2 %v5637_v12  ;;  %3591 = vpow2.f32 %v2222_v63  ;;  %v2098_v63 = vsub.f32 %v5338_v56, %v5509_v27  ;;  %v2214_v37 = vmul.f32 1.442695, %v2115_v23 }
 0x275   : > { %v5647_v11 = vpop.eup %3581  ;;  %2388 = vmatpush.msrb.mxu3 %v5642_v17  ;;  %3593 = vpow2.f32 %v2156_v38  ;;  %v2114_v38 = vsub.f32 %v4934_v15, %v5509_v27  ;;  %v2148_v56 = vmul.f32 1.442695, %v2082_v3 }
 0x276   : > { %v5652_v31 = vpop.eup %3583  ;;  %2343 = vmatpush.msrb.mxu1 %v5647_v11  ;;  %3595 = vpow2.f32 %v2188_v57  ;;  %v2081_v57 = vsub.f32 %v4832_v42, %v5509_v27  ;;  %v2180_v15 = vmul.f32 1.442695, %v2098_v63 }
 0x277   : > { %v5657_v32 = vpop.eup %3585  ;;  %2366 = vmatpush.msrb.mxu2 %v5652_v31  ;;  %3597 = vpow2.f32 %v2220_v49  ;;  %v2097_v49 = vsub.f32 %v5291_v29, %v5509_v27  ;;  %v2212_v42 = vmul.f32 1.442695, %v2114_v38 }
 0x278   : > { %v5662_v45 = vpop.eup %3587  ;;  %2389 = vmatpush.msrb.mxu3 %v5657_v32  ;;  %3599 = vpow2.f32 %v2154_v34  ;;  %v2113_v34 = vsub.f32 %v4901_v40, %v5509_v27  ;;  %v2146_v29 = vmul.f32 1.442695, %v2081_v57  ;;  %v6461_v57 = vld [vmem:[#allocation94_spill] sm:$0xff] }
 0x279   : > { %v5667_v47 = vpop.eup %3589  ;;  %2344 = vmatpush.msrb.mxu1 %v5662_v45  ;;  %3601 = vpow2.f32 %v2186_v58  ;;  %v2080_v58 = vsub.f32 %v4828_v41, %v5509_v27  ;;  %v2178_v40 = vmul.f32 1.442695, %v2097_v49  ;;  %v6457_v41 = vld [vmem:[#allocation106_spill] sm:$0xff] }
 0x27a   : > { %v5672_v62 = vpop.eup %3591  ;;  %2367 = vmatpush.msrb.mxu2 %v5667_v47  ;;  %3603 = vpow2.f32 %v2218_v44  ;;  %v2096_v44 = vsub.f32 %v5261_v25, %v5509_v27  ;;  %v2210_v23 = vmul.f32 1.442695, %v2113_v34 }
 0x27b   : > { %v5677_v5 = vpop.eup %3593  ;;  %2390 = vmatpush.msrb.mxu3 %v5672_v62  ;;  %3605 = vpow2.f32 %v2152_v26  ;;  %v2112_v26 = vsub.f32 %v4864_v1, %v5509_v27  ;;  %v2144_v25 = vmul.f32 1.442695, %v2080_v58 }
 0x27c   : > { %v5682_v10 = vpop.eup %3595  ;;  %2345 = vmatpush.msrb.mxu1 %v5677_v5  ;;  %3607 = vpow2.f32 %v2184_v50  ;;  %v2142_v50 = vsub.f32 %v6457_v41, %v5509_v27  ;;  %v2176_v63 = vmul.f32 1.442695, %v2096_v44 }
 0x27d   : > { %v5687_v7 = vpop.eup %3597  ;;  %2368 = vmatpush.msrb.mxu2 %v5682_v10  ;;  %3609 = vpow2.f32 %v2216_v43  ;;  %v2208_v38 = vmul.f32 1.442695, %v2112_v26  ;;  %v6464_v26 = vld [vmem:[#allocation82_spill] sm:$0xff] }
 0x27e   : > { %v5692_v46 = vpop.eup %3599  ;;  %2391 = vmatpush.msrb.mxu3 %v5687_v7  ;;  %3611 = vpow2.f32 %v2150_v51  ;;  %v6459_v51 = vld [vmem:[#allocation98_spill] sm:$0xff]  ;;  %v2268_v49 = vmul.f32 1.442695, %v2142_v50  ;;  %v2138_v41 = vsub.f32 %v6464_v26, %v5509_v27  ;;  %v6468_v26 = vld [vmem:[#allocation83_spill] sm:$0xff] }
 0x27f   : > { %v5697_v39 = vpop.eup %3601  ;;  %2346 = vmatpush.msrb.mxu1 %v5692_v46  ;;  %3613 = vpow2.f32 %v2182_v52  ;;  %v2141_v1 = vsub.f32 %v6459_v51, %v5509_v27  ;;  %v6466_v51 = vld [vmem:[#allocation78_spill] sm:$0xff]  ;;  %v2287_v8 = vmul.f32 %v5517_v14, %v6468_v26  ;;  %v5781_v14 = vld [vmem:[%s6228_s4] sm:$0xf] }
 0x280   : > { %v5702_v18 = vpop.eup %3603  ;;  %2369 = vmatpush.msrb.mxu2 %v5697_v39  ;;  %3615 = vpow2.f32 %v2214_v37 }
 0x281   : > { %v5707_v20 = vpop.eup %3605  ;;  %2392 = vmatpush.msrb.mxu3 %v5702_v18  ;;  %3617 = vpow2.f32 %v2148_v56  ;;  %v2140_v56 = vsub.f32 %v6461_v57, %v5509_v27 }
 0x282   : > { %v5712_v48 = vpop.eup %3607  ;;  %2347 = vmatpush.msrb.mxu1 %v5707_v20  ;;  %3619 = vpow2.f32 %v2180_v15 }
 0x283   : > { %v5717_v43 = vpop.eup %3609  ;;  %2370 = vmatpush.msrb.mxu2 %v5712_v48  ;;  %3621 = vpow2.f32 %v2212_v42  ;;  %v6462_v42 = vld [vmem:[#allocation86_spill] sm:$0xff]  ;;  %v2264_v50 = vmul.f32 1.442695, %v2140_v56 }
 0x284   : > { %6458 = vst [vmem:[#allocation106_spill] sm:$0xff] %v5717_v43  ;;  %v5720_v3 = vpop.eup %3611  ;;  %2393 = vmatpush.msrb.mxu3 %v5717_v43  ;;  %3623 = vpow2.f32 %v2146_v29  ;;  %v2139_v58 = vsub.f32 %v6462_v42, %v5509_v27  ;;  %v2266_v29 = vmul.f32 1.442695, %v2141_v1  ;;  %v2137_v1 = vsub.f32 %v6466_v51, %v5509_v27  ;;  %v6467_v56 = vld [vmem:[#allocation74_spill] sm:$0xff] }
 0x285   : > { %v5725_v52 = vpop.eup %3613  ;;  %2348 = vmatpush.msrb.mxu1 %v5720_v3  ;;  %3625 = vpow2.f32 %v2178_v40  ;;  %v2260_v42 = vmul.f32 1.442695, %v2138_v41 }
 0x286   : > { %v5728_v37 = vpop.eup %3615  ;;  %2371 = vmatpush.msrb.mxu2 %v5725_v52  ;;  %3627 = vpow2.f32 %v2210_v23  ;;  %v2258_v26 = vmul.f32 1.442695, %v2137_v1 }
 0x287   : > { %6460 = vst [vmem:[#allocation98_spill] sm:$0xff] %v5728_v37  ;;  %v5733_v15 = vpop.eup %3617  ;;  %2394 = vmatpush.msrb.mxu3 %v5728_v37  ;;  %3629 = vpow2.f32 %v2144_v25 }
 0x288   : > { %v5736_v34 = vpop.eup %3619  ;;  %2349 = vmatpush.msrb.mxu1 %v5733_v15  ;;  %3631 = vpow2.f32 %v2176_v63  ;;  %v2262_v63 = vmul.f32 1.442695, %v2139_v58 }
 0x289   : > { %v5741_v44 = vpop.eup %3621  ;;  %2372 = vmatpush.msrb.mxu2 %v5736_v34  ;;  %3633 = vpow2.f32 %v2208_v38 }
 0x28a   : > { %6463 = vst [vmem:[#allocation94_spill] sm:$0xff] %v5741_v44  ;;  %v5744_v40 = vpop.eup %3623  ;;  %3635 = vpow2.f32 %v2268_v49  ;;  %2395 = vmatpush.msrb.mxu3 %v5741_v44  ;;  %v2136_v49 = vsub.f32 %v6467_v56, %v5509_v27  ;;  %v6471_v56 = vlaneseq  ;;  %v6474_v44 = vld [vmem:[#allocation96_spill] sm:$0xff] }
 0x28b   : > { %v5749_v23 = vpop.eup %3625  ;;  %2350 = vmatpush.msrb.mxu1 %v5744_v40  ;;  %3637 = vpow2.f32 %v2266_v29  ;;  %v6469_v29 = vld [vmem:[#allocation70_spill] sm:$0xff]  ;;  %v2302_v37 = vmul.f32 %v5562_v21, %v6474_v44 }
 0x28c   : > { %v5752_v25 = vpop.eup %3627  ;;  %2373 = vmatpush.msrb.mxu2 %v5749_v23  ;;  %3639 = vpow2.f32 %v2264_v50  ;;  %v2135_v51 = vsub.f32 %v6469_v29, %v5509_v27  ;;  %v5776_v41 = vshrl.u32 %v6471_v56, 7  ;;  %v1978_v29 = vperm.slane %v5781_v14, 0  ;;  %v6473_v56 = vld [vmem:[#allocation67_spill] sm:$0xff] }
 0x28d   : > { %6465 = vst [vmem:[#allocation86_spill] sm:$0xff] %v5752_v25  ;;  %v5757_v38 = vpop.eup %3629  ;;  %2396 = vmatpush.msrb.mxu3 %v5752_v25  ;;  %3641 = vpow2.f32 %v2262_v63  ;;  %v2134_v25 = vsub.f32 %v6473_v56, %v5509_v27  ;;  %v2256_v1 = vmul.f32 1.442695, %v2136_v49  ;;  %v6479_v49 = vld [vmem:[#allocation63_spill] sm:$0xff]  ;;  %v4036_v56 = vmov 1.0  }
 0x28e   : > { %v5760_v57 = vpop.eup %3631  ;;  %2351 = vmatpush.msrb.mxu1 %v5757_v38  ;;  %3643 = vpow2.f32 %v2260_v42  ;;  %vm5801_vm7 = vcmp.eq.s32.totalorder %v5776_v41, %v1978_v29  ;;  %v2133_v42 = vsub.f32 %v6479_v49, %v5509_v27  ;;  %v2254_v2 = vmul.f32 1.442695, %v2135_v51  ;;  %v6482_v51 = vld [vmem:[#allocation59_spill] sm:$0xff] }
 0x28f   : > { %v5767_v58 = vpop.eup %3633  ;;  %2374 = vmatpush.msrb.mxu2 %v5760_v57  ;;  %3645 = vpow2.f32 %v2258_v26  ;;  %3365 = vmatmul.msk.f32.vlgmr.msrb.gmra.mxu1 %vm5801_vm7, %v4036_v56  ;;  %v2132_v26 = vsub.f32 %v6482_v51, %v5509_v27 }
 0x290   : > { %2405 = vmatpush.msra.mxu1 %v5554_v36  ;;  %v5783_v50 = vpop.eup %3635  ;;  %2397 = vmatpush.msrb.mxu3 %v5767_v58  ;;  %3647 = vpow2.f32 %v2256_v1 }
 0x291   : > { %2428 = vmatpush.msra.mxu2 %v2287_v8  ;;  %v5794_v43 = vpop.eup %3637  ;;  %v6475_v8 = vld [vmem:[#allocation75_spill] sm:$0xff]  ;;  %3649 = vpow2.f32 %v2254_v2  ;;  %v2248_v51 = vmul.f32 1.442695, %v2132_v26  ;;  %v6491_v26 = vld [vmem:[#allocation54_spill] sm:$0xff] }
 0x292   : > { %2451 = vmatpush.msra.mxu3 %v2303_v16  ;;  %2406 = vmatpush.msra.mxu1 %v5783_v50  ;;  %v2285_v63 = vmul.f32 %v5572_v13, %v6475_v8  ;;  %v6478_v16 = vld [vmem:[#allocation91_spill] sm:$0xff]  ;;  %v5808_v44 = vpop.eup %3639 }
 0x293   : > { %2429 = vmatpush.msra.mxu2 %v2286_v61  ;;  %v2301_v21 = vmul.f32 %v5577_v60, %v6478_v16  ;;  %v6480_v13 = vld [vmem:[#allocation71_spill] sm:$0xff]  ;;  %v6481_v60 = vld [vmem:[#allocation88_spill] sm:$0xff]  ;;  %v5820_v8 = vpop.eup %3641 }
 0x294   : > { %2452 = vmatpush.msra.mxu3 %v2302_v37  ;;  %2407 = vmatpush.msra.mxu1 %v5794_v43  ;;  %v2284_v61 = vmul.f32 %v5587_v54, %v6480_v13  ;;  %v2300_v37 = vmul.f32 %v5592_v53, %v6481_v60  ;;  %v6483_v54 = vld [vmem:[#allocation66_spill] sm:$0xff]  ;;  %v5829_v49 = vpop.eup %3643  ;;  %v6484_v53 = vld [vmem:[#allocation55_spill] sm:$0xff]  ;;  %v2250_v60 = vmul.f32 1.442695, %v2133_v42 }
 0x295   : > { %2430 = vmatpush.msra.mxu2 %v2285_v63  ;;  %v2252_v63 = vmul.f32 1.442695, %v2134_v25  ;;  %v2283_v16 = vmul.f32 %v5602_v22, %v6483_v54  ;;  %v2131_v13 = vsub.f32 %v6484_v53, %v5509_v27  ;;  %v6485_v25 = vld [vmem:[#allocation62_spill] sm:$0xff]  ;;  %v6486_v22 = vld [vmem:[#allocation112_spill] sm:$0xff] }
 0x296   : > { %2453 = vmatpush.msra.mxu3 %v2301_v21  ;;  %2408 = vmatpush.msra.mxu1 %v5808_v44  ;;  %v2299_v21 = vmul.f32 %v5607_v55, %v5494_v6  ;;  %v2282_v1 = vmul.f32 %v5617_v19, %v6485_v25  ;;  %v6487_v6 = vld [vmem:[#allocation51_spill] sm:$0xff]  ;;  %v6488_v42 = vld [vmem:[#allocation58_spill] sm:$0xff] }
 0x297   : > { %2431 = vmatpush.msra.mxu2 %v2284_v61  ;;  %v2298_v61 = vmul.f32 %v5622_v33, %v6486_v22  ;;  %v2130_v55 = vsub.f32 %v6487_v6, %v5509_v27  ;;  %3651 = vpow2.f32 %v2252_v63  ;;  %v2281_v2 = vmul.f32 %v5632_v24, %v6488_v42  ;;  %v6489_v19 = vld [vmem:[#allocation111_spill] sm:$0xff]  ;;  %v6492_v24 = vld [vmem:[#allocation110_spill] sm:$0xff] }
 0x298   : > { %2454 = vmatpush.msra.mxu3 %v2300_v37  ;;  %2409 = vmatpush.msra.mxu1 %v5820_v8  ;;  %v5838_v37 = vpop.eup %3645  ;;  %v2297_v54 = vmul.f32 %v5637_v12, %v6489_v19  ;;  %v6490_v33 = vld [vmem:[#allocation47_spill] sm:$0xff]  ;;  %v2246_v53 = vmul.f32 1.442695, %v2131_v13  ;;  %3653 = vpow2.f32 %v2250_v60  ;;  %v2280_v63 = vmul.f32 %v5647_v11, %v6491_v26  ;;  %v6494_v13 = vld [vmem:[#allocation50_spill] sm:$0xff]  ;;  %v6495_v11 = vld [vmem:[#allocation109_spill] sm:$0xff] }
 0x299   : > { %2432 = vmatpush.msra.mxu2 %v2283_v16  ;;  %v5847_v16 = vpop.eup %3647  ;;  %v2296_v25 = vmul.f32 %v5652_v31, %v6492_v24  ;;  %v6493_v12 = vld [vmem:[#allocation43_spill] sm:$0xff]  ;;  %3655 = vpow2.f32 %v2248_v51  ;;  %v2279_v60 = vmul.f32 %v5662_v45, %v6494_v13  ;;  %v2295_v6 = vmul.f32 %v5667_v47, %v6495_v11  ;;  %v6498_v47 = vld [vmem:[#allocation42_spill] sm:$0xff]  ;;  %v6506_v11 = vld [vmem:[#allocation37_spill] sm:$0xff] }
 0x29a   : > { %2455 = vmatpush.msra.mxu3 %v2299_v21  ;;  %2410 = vmatpush.msra.mxu1 %v5829_v49  ;;  %v2129_v21 = vsub.f32 %v6490_v33, %v5509_v27  ;;  %v2128_v22 = vsub.f32 %v6493_v12, %v5509_v27  ;;  %3657 = vpow2.f32 %v2246_v53  ;;  %v6499_v33 = vld [vmem:[#allocation105_spill] sm:$0xff]  ;;  %v6500_v53 = vld [vmem:[#allocation39_spill] sm:$0xff]  ;;  %v6501_v26 = vld [vmem:[#allocation102_spill] sm:$0xff] }
 0x29b   : > { %2433 = vmatpush.msra.mxu2 %v2282_v1  ;;  %v5856_v1 = vpop.eup %3649  ;;  %v6502_v24 = vld [vmem:[#allocation38_spill] sm:$0xff]  ;;  %v6505_v13 = vld [vmem:[#allocation95_spill] sm:$0xff] }
 0x29c   : > { %2456 = vmatpush.msra.mxu3 %v2298_v61  ;;  %2411 = vmatpush.msra.mxu1 %v5838_v37  ;;  %v2244_v61 = vmul.f32 1.442695, %v2130_v55  ;;  %v2242_v31 = vmul.f32 1.442695, %v2129_v21  ;;  %v6497_v55 = vld [vmem:[#allocation108_spill] sm:$0xff] }
 0x29d   : > { %2434 = vmatpush.msra.mxu2 %v2281_v2  ;;  %v5865_v42 = vpop.eup %3651  ;;  %v6496_v2 = vld [vmem:[#allocation46_spill] sm:$0xff]  ;;  %v2294_v45 = vmul.f32 %v5682_v10, %v6497_v55  ;;  %v2240_v19 = vmul.f32 1.442695, %v2128_v22  ;;  %v2276_v10 = vmul.f32 %v5707_v20, %v6500_v53  ;;  %v6504_v22 = vld [vmem:[#allocation35_spill] sm:$0xff]  ;;  %v6520_v53 = vld [vmem:[#allocation92_spill] sm:$0xff] }
 0x29e   : > { %2457 = vmatpush.msra.mxu3 %v2297_v54  ;;  %2412 = vmatpush.msra.mxu1 %v5847_v16  ;;  %v2278_v27 = vmul.f32 %v5677_v5, %v6496_v2  ;;  %v5872_v51 = vpop.eup %3653  ;;  %3659 = vpow2.f32 %v2244_v61  ;;  %v2277_v54 = vmul.f32 %v5692_v46, %v6498_v47  ;;  %v2293_v5 = vmul.f32 %v5697_v39, %v6499_v33  ;;  %v6512_v47 = vld [vmem:[#allocation107_spill] sm:$0xff] }
 0x29f   : > { %2435 = vmatpush.msra.mxu2 %v2280_v63  ;;  %v5879_v21 = vpop.eup %3655  ;;  %3661 = vpow2.f32 %v2242_v31  ;;  %v2292_v63 = vmul.f32 %v5712_v48, %v6501_v26  ;;  %v2275_v39 = vmul.f32 %v5720_v3, %v6502_v24  ;;  %v2274_v61 = vmul.f32 %v5733_v15, %v6504_v22  ;;  %v6507_v15 = vld [vmem:[#allocation90_spill] sm:$0xff] }
 0x2a0   : > { %2458 = vmatpush.msra.mxu3 %v2296_v25  ;;  %2413 = vmatpush.msra.mxu1 %v5856_v1  ;;  %v5886_v46 = vpop.eup %3657  ;;  %3663 = vpow2.f32 %v2240_v19  ;;  %v6503_v25 = vld [vmem:[#allocation99_spill] sm:$0xff]  ;;  %v1979_v48 = vperm.slane %v5781_v14, 1  ;;  %v2290_v3 = vmul.f32 %v5736_v34, %v6505_v13  ;;  %v1980_v31 = vperm.slane %v5781_v14, 2  ;;  %v6551_v19 = vld [vmem:[#allocation53_spill] sm:$0xff] }
 0x2a1   : > { %2436 = vmatpush.msra.mxu2 %v2279_v60  ;;  %v2291_v12 = vmul.f32 %v5725_v52, %v6503_v25  ;;  %v2273_v52 = vmul.f32 %v5744_v40, %v6506_v11  ;;  %v2289_v2 = vmul.f32 %v5749_v23, %v6507_v15  ;;  %v6508_v34 = vld [vmem:[#allocation103_spill] sm:$0xff]  ;;  %v6524_v25 = vld [vmem:[#allocation84_spill] sm:$0xff] }
 0x2a2   : > { %2459 = vmatpush.msra.mxu3 %v2295_v6  ;;  %2414 = vmatpush.msra.mxu1 %v5865_v42  ;;  %v5906_v6 = vadd.s32 8, %v5776_v41  ;;  %v2319_v55 = vmul.f32 %v5522_v4, %v6508_v34  ;;  %vm5919_vm8 = vcmp.eq.s32.totalorder %v5776_v41, %v1979_v48  ;;  %v6513_v23 = vld [vmem:[#allocation87_spill] sm:$0xff]  ;;  %v6514_v4 = vld [vmem:[#allocation101_spill] sm:$0xff]  ;;  %vm5938_vm10 = vcmp.eq.s32.totalorder %v5776_v41, %v1980_v31 }
 0x2a3   : > { %2437 = vmatpush.msra.mxu2 %v2278_v27  ;;  %v2288_v33 = vmul.f32 %v5760_v57, %v6513_v23  ;;  %3369 = vmatmul.msk.f32.vlgmr.msrb.gmra.mxu3 %vm5938_vm10, %v4036_v56 }
 0x2a4   : > { %2460 = vmatpush.msra.mxu3 %v2294_v45  ;;  %2415 = vmatpush.msra.mxu1 %v5872_v51  ;;  %v5893_v20 = vpop.eup %3659  ;;  %v6509_v45 = vld [vmem:[#allocation36_spill] sm:$0xff]  ;;  %vm5933_vm9 = vcmp.eq.s32.totalorder %v5906_v6, %v1978_v29  ;;  %v2317_v29 = vmul.f32 %v5582_v28, %v6520_v53  ;;  %v6523_v28 = vld [vmem:[#allocation93_spill] sm:$0xff]  ;;  %vm5965_vm11 = vcmp.eq.s32.totalorder %v5906_v6, %v1979_v48 }
 0x2a5   : > { %2438 = vmatpush.msra.mxu2 %v2277_v54  ;;  %v5901_v60 = vpop.eup %3661  ;;  %v2272_v40 = vmul.f32 %v5757_v38, %v6509_v45  ;;  %v2335_v54 = vmul.f32 %v5554_v36, %v6512_v47  ;;  %3366 = vmatmul.msk.f32.gmra.mxu1 %vm5933_vm9, %v4036_v56  ;;  %vm5974_vm12 = vcmp.eq.s32.totalorder %v5906_v6, %v1980_v31  ;;  %v6535_v31 = vld [vmem:[#allocation77_spill] sm:$0xff]  ;;  %v6538_v45 = vld [vmem:[#allocation68_spill] sm:$0xff] }
 0x2a6   : > { %2461 = vmatpush.msra.mxu3 %v2293_v5  ;;  %2416 = vmatpush.msra.mxu1 %v5879_v21  ;;  %v5912_v27 = vpop.eup %3663  ;;  %v2318_v5 = vmul.f32 %v5567_v9, %v6514_v4  ;;  %v6519_v9 = vld [vmem:[#allocation104_spill] sm:$0xff]  ;;  %v2329_v15 = vmul.f32 %v5838_v37, %v6535_v31 }
 0x2a7   : > { %2439 = vmatpush.msra.mxu2 %v2276_v10  ;;  %v2334_v57 = vmul.f32 %v5783_v50, %v6519_v9  ;;  %v6521_v10 = vld [vmem:[#allocation97_spill] sm:$0xff]  ;;  %v1981_v50 = vperm.slane %v5781_v14, 3 }
 0x2a8   : > { %2462 = vmatpush.msra.mxu3 %v2292_v63  ;;  %2417 = vmatpush.msra.mxu1 %v5886_v46  ;;  %v2333_v26 = vmul.f32 %v5794_v43, %v6521_v10  ;;  %v6522_v63 = vld [vmem:[#allocation89_spill] sm:$0xff]  ;;  %v6550_v10 = vld [vmem:[#allocation98_spill] sm:$0xff] }
 0x2a9   : > { %2440 = vmatpush.msra.mxu2 %v2275_v39  ;;  %v2316_v24 = vmul.f32 %v5597_v35, %v6522_v63  ;;  %v2332_v39 = vmul.f32 %v5808_v44, %v6523_v28  ;;  %v6528_v35 = vld [vmem:[#allocation80_spill] sm:$0xff]  ;;  %vm5979_vm13 = vcmp.eq.s32.totalorder %v5776_v41, %v1981_v50  ;;  %vm6009_vm14 = vcmp.eq.s32.totalorder %v5906_v6, %v1981_v50  ;;  %v6553_v50 = vld [vmem:[#allocation94_spill] sm:$0xff]  ;;  %v6554_v28 = vld [vmem:[#allocation49_spill] sm:$0xff] }
 0x2aa   : > { %2463 = vmatpush.msra.mxu3 %v2291_v12  ;;  %2418 = vmatpush.msra.mxu1 %v5893_v20  ;;  %v2315_v12 = vmul.f32 %v5612_v0, %v6524_v25  ;;  %v2314_v14 = vmul.f32 %v5627_v30, %v6528_v35  ;;  %v6546_v6 = vld [vmem:[#allocation56_spill] sm:$0xff]  ;;  %v2323_v63 = vmul.f32 %v5886_v46, %v6551_v19  ;;  %v6556_v25 = vld [vmem:[#allocation86_spill] sm:$0xff]  ;;  %v6557_v46 = vld [vmem:[#allocation45_spill] sm:$0xff] }
 0x2ab   : > { %2441 = vmatpush.msra.mxu2 %v2274_v61  ;;  %v6527_v61 = vld [vmem:[#allocation85_spill] sm:$0xff]  ;;  %3370 = vmatmul.msk.f32.gmra.mxu3 %vm5974_vm12, %v4036_v56 }
 0x2ac   : > { %2464 = vmatpush.msra.mxu3 %v2290_v3  ;;  %2419 = vmatpush.msra.mxu1 %v5901_v60  ;;  %v2331_v43 = vmul.f32 %v5820_v8, %v6527_v61  ;;  %v6533_v8 = vld [vmem:[#allocation81_spill] sm:$0xff]  ;;  %v6534_v3 = vld [vmem:[#allocation76_spill] sm:$0xff]  ;;  %v2321_v61 = vmul.f32 %v5901_v60, %v6557_v46 }
 0x2ad   : > { %2442 = vmatpush.msra.mxu2 %v2273_v52  ;;  %v2330_v30 = vmul.f32 %v5829_v49, %v6533_v8  ;;  %v2313_v11 = vmul.f32 %v5642_v17, %v6534_v3  ;;  %v6537_v17 = vld [vmem:[#allocation73_spill] sm:$0xff] }
 0x2ae   : > { %2465 = vmatpush.msra.mxu3 %v2289_v2  ;;  %2420 = vmatpush.msra.mxu1 %v5912_v27  ;;  %v6536_v2 = vld [vmem:[#allocation72_spill] sm:$0xff]  ;;  %v6559_v35 = vld [vmem:[#allocation41_spill] sm:$0xff] }
 0x2af   : > { %2443 = vmatpush.msra.mxu2 %v2272_v40  ;;  %3371 = vmatmul.msk.f32.vlgmr.msra.gmra.mxu1 %vm5979_vm13, %v4036_v56  ;;  %v2312_v49 = vmul.f32 %v5657_v32, %v6536_v2  ;;  %v2311_v40 = vmul.f32 %v5672_v62, %v6538_v45  ;;  %v6543_v62 = vld [vmem:[#allocation65_spill] sm:$0xff] }
 0x2b0   : > { %2474 = vmatpush.msrb.mxu1 %v2319_v55  ;;  %2466 = vmatpush.msra.mxu3 %v2288_v33  ;;  %v2328_v55 = vmul.f32 %v5847_v16, %v6537_v17  ;;  %v6540_v33 = vld [vmem:[#allocation64_spill] sm:$0xff]  ;;  %v2326_v16 = vmul.f32 %v5865_v42, %v6543_v62 }
 0x2b1   : > { %3367 = vmatmul.msk.f32.vlgmr.msrb.gmra.mxu2 %vm5919_vm8, %v4036_v56  ;;  %v2310_v37 = vmul.f32 %v5687_v7, %v6540_v33  ;;  %v6545_v7 = vld [vmem:[#allocation61_spill] sm:$0xff] }
 0x2b2   : > { %2497 = vmatpush.msrb.mxu2 %v2335_v54  ;;  %2475 = vmatpush.msrb.mxu1 %v2318_v5  ;;  %v6539_v54 = vld [vmem:[#allocation69_spill] sm:$0xff]  ;;  %v6544_v5 = vld [vmem:[#allocation60_spill] sm:$0xff]  ;;  %v2325_v59 = vmul.f32 %v5872_v51, %v6545_v7 }
 0x2b3   : > { %v2327_v23 = vmul.f32 %v5856_v1, %v6539_v54  ;;  %v2309_v1 = vmul.f32 %v5702_v18, %v6544_v5  ;;  %3375 = vmatmul.msk.f32.vlgmr.msra.gmra.mxu3 %vm5919_vm8, %v4036_v56  ;;  %v6548_v18 = vld [vmem:[#allocation57_spill] sm:$0xff] }
 0x2b4   : > { %2498 = vmatpush.msrb.mxu2 %v2334_v57  ;;  %2476 = vmatpush.msrb.mxu1 %v2317_v29  ;;  %v6547_v57 = vld [vmem:[#allocation106_spill] sm:$0xff]  ;;  %v2324_v53 = vmul.f32 %v5879_v21, %v6548_v18  ;;  %v6549_v29 = vld [vmem:[#allocation52_spill] sm:$0xff]  ;;  %v2322_v21 = vmul.f32 %v5893_v20, %v6554_v28  ;;  %v2320_v20 = vmul.f32 %v5912_v27, %v6559_v35 }
 0x2b5   : > { %v2308_v42 = vmul.f32 %v6547_v57, %v6546_v6 }
 0x2b6   : > { %2499 = vmatpush.msrb.mxu2 %v2333_v26  ;;  %2477 = vmatpush.msrb.mxu1 %v2316_v24  ;;  %v2307_v26 = vmul.f32 %v6550_v10, %v6549_v29  ;;  %v6552_v24 = vld [vmem:[#allocation48_spill] sm:$0xff] }
 0x2b7   : > { %3372 = vmatmul.msk.f32.gmra.mxu1 %vm6009_vm14, %v4036_v56  ;;  %v2306_v51 = vmul.f32 %v6553_v50, %v6552_v24 }
 0x2b8   : > { %2500 = vmatpush.msrb.mxu2 %v2332_v39  ;;  %2478 = vmatpush.msrb.mxu1 %v2315_v12  ;;  %v6555_v39 = vld [vmem:[#allocation44_spill] sm:$0xff] }
 0x2b9   : > { %3368 = vmatmul.msk.f32.gmra.mxu2 %vm5965_vm11, %v4036_v56  ;;  %v2305_v12 = vmul.f32 %v6556_v25, %v6555_v39 }
 0x2ba   : > { %2501 = vmatpush.msrb.mxu2 %v2331_v43  ;;  %2479 = vmatpush.msrb.mxu1 %v2314_v14  ;;  %v6558_v43 = vld [vmem:[#allocation40_spill] sm:$0xff] }
 0x2bb   : > { %3376 = vmatmul.msk.f32.gmra.mxu3 %vm5965_vm11, %v4036_v56  ;;  %v2304_v38 = vmul.f32 %v5767_v58, %v6558_v43 }
 0x2bc   : > { %2502 = vmatpush.msrb.mxu2 %v2330_v30  ;;  %2480 = vmatpush.msrb.mxu1 %v2313_v11 }
 0x2be   : > { %2503 = vmatpush.msrb.mxu2 %v2329_v15  ;;  %2481 = vmatpush.msrb.mxu1 %v2312_v49 }
 0x2c0   : > { %2504 = vmatpush.msrb.mxu2 %v2328_v55  ;;  %2482 = vmatpush.msrb.mxu1 %v2311_v40 }
 0x2c1   : > { %3373 = vmatmul.msk.f32.vlgmr.msra.gmra.mxu2 %vm5801_vm7, %v4036_v56 }
 0x2c2   : > { %2505 = vmatpush.msrb.mxu2 %v2327_v23  ;;  %2483 = vmatpush.msrb.mxu1 %v2310_v37 }
 0x2c4   : > { %2506 = vmatpush.msrb.mxu2 %v2326_v16  ;;  %2484 = vmatpush.msrb.mxu1 %v2309_v1 }
 0x2c6   : > { %2507 = vmatpush.msrb.mxu2 %v2325_v59  ;;  %2485 = vmatpush.msrb.mxu1 %v2308_v42 }
 0x2c7   : > { %v2524_v13 = vpop.xlane.xlu1 %2523 }
 0x2c8   : > { %v2525_v48 = vrot.slane %v2524_v13, 4  ;;  %2508 = vmatpush.msrb.mxu2 %v2324_v53  ;;  %2486 = vmatpush.msrb.mxu1 %v2307_v26 }
 0x2c9   : > { %3374 = vmatmul.msk.f32.gmra.mxu2 %vm5933_vm9, %v4036_v56 }
 0x2ca   : > { %v2526_v52 = vmax.f32 %v2524_v13, %v2525_v48  ;;  %2509 = vmatpush.msrb.mxu2 %v2323_v63  ;;  %2487 = vmatpush.msrb.mxu1 %v2306_v51 }
 0x2cc   : > { %v2527_v34 = vrot.slane %v2526_v52, 2  ;;  %2510 = vmatpush.msrb.mxu2 %v2322_v21  ;;  %2488 = vmatpush.msrb.mxu1 %v2305_v12 }
 0x2ce   : > { %v2528_v47 = vmax.f32 %v2526_v52, %v2527_v34  ;;  %2511 = vmatpush.msrb.mxu2 %v2321_v61  ;;  %2489 = vmatpush.msrb.mxu1 %v2304_v38 }
 0x2cf   : > { %3377 = vmatmul.msk.f32.vlgmr.msrb.gmra.mxu1 %vm5938_vm10, %v4036_v56 }
 0x2d0   : > { %v2529_v4 = vrot.slane %v2528_v47, 1  ;;  %2512 = vmatpush.msrb.mxu2 %v2320_v20 }
 0x2d1   : > { %3379 = vmatmul.msk.f32.vlgmr.msrb.gmra.mxu2 %vm5979_vm13, %v4036_v56 }
 0x2d2   : > { %v2530_v9 = vmax.f32 %v2528_v47, %v2529_v4 }
 0x2d4   : > { %3408 = vpush %v2530_v9 }
 0x2d7   : > { %3378 = vmatmul.msk.f32.gmra.mxu1 %vm5974_vm12, %v4036_v56 }
 0x2d9   : > { %3380 = vmatmul.msk.f32.gmra.mxu2 %vm6009_vm14, %v4036_v56 }
 0x305   : > { %s6066_s6 = spop %3408 }
 0x306   : > { %p2532_p3 = scmp.gt.f32.partialorder %s6066_s6, 0.0 }
 0x307   : > { %v6560_v33 = vld [vmem:[#allocation114_spill] sm:$0xff] (%p2532_p3)  ;;  %v6561_v37 = vld [vmem:[#allocation113_spill] sm:$0xff] (%p2532_p3)  ;;  %v2542_v9 = vld [vmem:[#allocation4 + $0x18] sm:$0xff] (%p2532_p3) }
 0x308   : > { %v2536_v32 = vsub.f32 (%p2532_p3), %v6561_v37, %v6560_v33  ;;  %2556 = vst [vmem:[#allocation5] sm:$0x1] (%p2532_p3), %v6560_v33  ;;  %v2539_v62 = vld [vmem:[#allocation4 + $0x8] sm:$0xff] (%p2532_p3)  ;;  %v2540_v5 = vld [vmem:[#allocation4 + $0x10] sm:$0xff] (%p2532_p3)  ;;  %v2541_v1 = vld [vmem:[#allocation4] sm:$0xff] (%p2532_p3) }
 0x30a   : > { %v2537_v4 = vmul.f32 (%p2532_p3), 1.442695, %v2536_v32 }
 0x30c   : > { %v2353_v58 = vpop.f32.mrf.mxu1  ;;  %3665 = vpow2.f32 (%p2532_p3), %v2537_v4 }
 0x312   : > { %v3666_v16 = vpop.eup (%p2532_p3), %3665 }
 0x313   : > { %v2543_v7 = vperm.slane (%p2532_p3), %v3666_v16, 0 }
 0x315   : > { %v2544_v59 = vmul.f32 (%p2532_p3), %v2543_v7, %v2539_v62  ;;  %v2545_v6 = vmul.f32 (%p2532_p3), %v2543_v7, %v2540_v5  ;;  %v2546_v57 = vmul.f32 (%p2532_p3), %v2543_v7, %v2541_v1  ;;  %v2547_v42 = vmul.f32 (%p2532_p3), %v2543_v7, %v2542_v9 }
 0x322   : > { %v2356_v60 = vpop.f32.mrf.mxu1 }
 0x326   : > { %v2399_v22 = vpop.f32.mrf.mxu3 }
 0x32c   : > { %v2422_v13 = vpop.f32.mrf.mxu1 }
 0x32e   : > { %v2402_v44 = vpop.f32.mrf.mxu3 }
 0x334   : > { %v2376_v27 = vpop.f32.mrf.mxu2  ;;  %v2425_v3 = vpop.f32.mrf.mxu1 }
 0x335   : > { %v2377_v36 = vadd.f32 %v2376_v27, %v2353_v58 }
 0x336   : > { %v2468_v31 = vpop.f32.mrf.mxu3 }
 0x337   : > { %v2400_v14 = vadd.f32 %v2399_v22, %v2377_v36 }
 0x339   : > { %v2423_v0 = vadd.f32 %v2422_v13, %v2400_v14 }
 0x33b   : > { %v2548_v18 = vadd.f32 (%p2532_p3), %v2544_v59, %v2423_v0 }
 0x33c   : > { %v2379_v48 = vpop.f32.mrf.mxu2 }
 0x33d   : > { %v2380_v8 = vadd.f32 %v2379_v48, %v2356_v60  ;;  %2552 = vst [vmem:[#allocation4 + $0x8] sm:$0xff] (%p2532_p3), %v2548_v18 }
 0x33e   : > { %v2471_v55 = vpop.f32.mrf.mxu3 }
 0x33f   : > { %v2403_v30 = vadd.f32 %v2402_v44, %v2380_v8 }
 0x341   : > { %v2426_v11 = vadd.f32 %v2425_v3, %v2403_v30 }
 0x343   : > { %v2550_v29 = vadd.f32 (%p2532_p3), %v2546_v57, %v2426_v11 }
 0x344   : > { %v2445_v52 = vpop.f32.mrf.mxu2 }
 0x345   : > { %v2469_v2 = vadd.f32 %v2468_v31, %v2445_v52  ;;  %2554 = vst [vmem:[#allocation4] sm:$0xff] (%p2532_p3), %v2550_v29 }
 0x34c   : > { %v2448_v56 = vpop.f32.mrf.mxu2  ;;  %v2491_v15 = vpop.f32.mrf.mxu1 }
 0x34d   : > { %v2492_v49 = vadd.f32 %v2491_v15, %v2469_v2  ;;  %v2472_v40 = vadd.f32 %v2471_v55, %v2448_v56 }
 0x354   : > { %v2514_v34 = vpop.f32.mrf.mxu2  ;;  %v2494_v45 = vpop.f32.mrf.mxu1 }
 0x355   : > { %v2515_v17 = vadd.f32 %v2514_v34, %v2492_v49  ;;  %v2495_v47 = vadd.f32 %v2494_v45, %v2472_v40 }
 0x357   : > { %v2549_v53 = vadd.f32 (%p2532_p3), %v2545_v6, %v2515_v17 }
 0x359   : > { %2535 = sbr.rel (!%p2532_p3) target bundleno = 866 (0x362), region = 132  ;;  %2553 = vst [vmem:[#allocation4 + $0x10] sm:$0xff] (%p2532_p3), %v2549_v53 }
 0x35c   : > { %v2517_v54 = vpop.f32.mrf.mxu2 }
 0x35d   : > { %v2518_v23 = vadd.f32 %v2517_v54, %v2495_v47 }
 0x35f   : > { %v2551_v10 = vadd.f32 %v2547_v42, %v2518_v23 }
 0x361   : > { %2555 = vst [vmem:[#allocation4 + $0x18] sm:$0xff] %v2551_v10 }
 0x362 PF: > { %2559 = sbr.rel (%p2532_p3) target bundleno = 878 (0x36e), region = 136 }
 0x367   : > { %v2560_v26 = vld [vmem:[#allocation4 + $0x8] sm:$0xff]  ;;  %v2561_v19 = vld [vmem:[#allocation4 + $0x10] sm:$0xff]  ;;  %v2562_v63 = vld [vmem:[#allocation4] sm:$0xff] }
 0x368   : > { %v2564_v24 = vadd.f32 %v2560_v26, %v2423_v0  ;;  %v2565_v50 = vadd.f32 %v2561_v19, %v2515_v17  ;;  %v2566_v51 = vadd.f32 %v2562_v63, %v2426_v11  ;;  %v2563_v28 = vld [vmem:[#allocation4 + $0x18] sm:$0xff] }
 0x369   : > { %v2567_v21 = vadd.f32 %v2563_v28, %v2518_v23 }
 0x36a   : > { %2568 = vst [vmem:[#allocation4 + $0x8] sm:$0xff] %v2564_v24 }
 0x36b   : > { %2569 = vst [vmem:[#allocation4 + $0x10] sm:$0xff] %v2565_v50 }
 0x36c   : > { %2570 = vst [vmem:[#allocation4] sm:$0xff] %v2566_v51 }
 0x36d   : > { %2571 = vst [vmem:[#allocation4 + $0x18] sm:$0xff] %v2567_v21 }
 0x36e PF: > { %v6076_v39 = vld [vmem:[#allocation2 + $0x8] sm:$0xff]  ;;  %v6078_v25 = vld [vmem:[#allocation2] sm:$0xff]  ;;  %v2669_v8 = vld [vmem:[%s4291_s22 + $0x68] sm:$0xff]  ;;  %p3382_p4 = scmp.ne.s32.totalorder %s4018_s21, 1 }
 0x36f   : > { %v2620_v46 = vmul.f32 %v6076_v39, %v6076_v39  ;;  %v2619_v61 = vmul.f32 %v6078_v25, %v6078_v25  ;;  %v2671_v0 = vld [vmem:[%s4291_s22 + $0x78] sm:$0xff]  ;;  %v2670_v48 = vld [vmem:[%s4291_s22 + $0x70] sm:$0xff]  ;;  %v2668_v44 = vld [vmem:[%s4291_s22 + $0x60] sm:$0xff]  ;;  %s6565_s21 = sld [smem:[#allocation119_spill]] (!%p3382_p4) }
 0x370   : > { %2676 = vmatpush.msrb.mxu3 %v2671_v0  ;;  %v2667_v30 = vld [vmem:[%s4291_s22 + $0x58] sm:$0xff]  ;;  %v2666_v3 = vld [vmem:[%s4291_s22 + $0x50] sm:$0xff]  ;;  %v2665_v11 = vld [vmem:[%s4291_s22 + $0x48] sm:$0xff]  ;;  %s6567_s3 = sld [smem:[#allocation123_spill]] (!%p3382_p4) }
 0x371   : > { %v2577_v38 = vld [vmem:[#allocation4 + $0x8] sm:$0xff]  ;;  %2623 = vadd.xlane.f32.xlu1 %v2620_v46  ;;  %2621 = vadd.xlane.f32.xlu0 %v2619_v61  ;;  %v2664_v52 = vld [vmem:[%s4291_s22 + $0x40] sm:$0xff]  ;;  %v2661_v15 = vld [vmem:[%s4291_s22 + $0x28] sm:$0xff]  ;;  %s6568_s14 = sld [smem:[#allocation125_spill]] (!%p3382_p4) }
 0x372   : > { %v2581_v35 = vadd.f32 1e-16, %v2577_v38  ;;  %v2578_v58 = vld [vmem:[#allocation4 + $0x10] sm:$0xff]  ;;  %2677 = vmatpush.msrb.mxu3 %v2670_v48  ;;  %v2662_v31 = vld [vmem:[%s4291_s22 + $0x30] sm:$0xff]  ;;  %v2657_v45 = vld [vmem:[%s4291_s22 + $0x8] sm:$0xff]  ;;  %s6569_s6 = sld [smem:[#allocation126_spill]] (!%p3382_p4) }
 0x373   : > { %v2579_v12 = vld [vmem:[#allocation4] sm:$0xff]  ;;  %v2663_v56 = vld [vmem:[%s4291_s22 + $0x38] sm:$0xff]  ;;  %v2660_v2 = vld [vmem:[%s4291_s22 + $0x20] sm:$0xff] }
 0x374   : > { %v2582_v43 = vadd.f32 1e-16, %v2579_v12  ;;  %v2580_v20 = vld [vmem:[#allocation4 + $0x18] sm:$0xff]  ;;  %2678 = vmatpush.msrb.mxu3 %v2669_v8  ;;  %v2659_v49 = vld [vmem:[%s4291_s22 + $0x18] sm:$0xff]  ;;  %v2658_v34 = vld [vmem:[%s4291_s22 + $0x10] sm:$0xff] }
 0x375   : > { %v2656_v40 = vld [vmem:[%s4291_s22] sm:$0xff]  ;;  %s2575_s22 = sadd.s32 1, %s3255_s20  ;;  %s6570_s20 = sld [smem:[#allocation127_spill]] (!%p3382_p4) }
 0x376   : > { %3671 = vrcp.f32 %v2582_v43  ;;  %2679 = vmatpush.msrb.mxu3 %v2668_v44  ;;  %s6114_s18 = sld [smem:[#allocation6 + %s2575_s22]] }
 0x377   : > { %3673 = vrcp.f32 %v2581_v35 }
 0x378   : > { %2680 = vmatpush.msrb.mxu3 %v2667_v30 }
 0x37a   : > { %2681 = vmatpush.msrb.mxu3 %v2666_v3  ;;  %v3667_v3 = vld [vmem:[%s863_s0] ss:$0 sm:$0xff] }
 0x37c   : > { %v3672_v60 = vpop.eup %3671  ;;  %2682 = vmatpush.msrb.mxu3 %v2665_v11  ;;  %v2649_v12 = vstv %s6114_s18 }
 0x37d   : > { %v3674_v27 = vpop.eup %3673  ;;  %v6084_v36 = vmul.f32 %v3672_v60, %v2580_v20 }
 0x37e   : > { %v6086_v22 = vmul.f32 %v3674_v27, %v2578_v58  ;;  %2683 = vmatpush.msrb.mxu3 %v2664_v52 }
 0x37f   : > { %v2590_v14 = vmul.f32 %v6084_v36, %v6084_v36 }
 0x380   : > { %v2589_v13 = vmul.f32 %v6086_v22, %v6086_v22  ;;  %2684 = vmatpush.msrb.mxu3 %v2663_v56 }
 0x381   : > { %2593 = vadd.xlane.f32.xlu1 %v2590_v14 }
 0x382   : > { %2591 = vadd.xlane.f32.xlu0 %v2589_v13  ;;  %2685 = vmatpush.msrb.mxu3 %v2662_v31 }
 0x384   : > { %2686 = vmatpush.msrb.mxu3 %v2661_v15 }
 0x386   : > { %2687 = vmatpush.msrb.mxu3 %v2660_v2  ;;  %v6563_v2 = vmov 0.0  }
 0x388   : > { %2688 = vmatpush.msrb.mxu3 %v2659_v49 }
 0x38a   : > { %2689 = vmatpush.msrb.mxu3 %v2658_v34 }
 0x38c   : > { %2690 = vmatpush.msrb.mxu3 %v2657_v45 }
 0x38e   : > { %2691 = vmatpush.msrb.mxu3 %v2656_v40 }
 0x3e4   : > { %v6106_v17 = vpop.xlane.xlu1 %2623  ;;  %v2622_v55 = vpop.xlane.xlu0 %2621 }
 0x3e5   : > { %3675 = vrsqrt.f32 %v6106_v17  ;;  %vm2632_vm15 = vcmp.eq.f32.partialorder %v2622_v55, inf  ;;  %v2635_v21 = vand.u32 2147483648, %v2622_v55  ;;  %vm2634_vm4 = vcmp.eq.f32.partialorder %v2622_v55, 0.0 }
 0x3e6   : > { %3677 = vrsqrt.f32 %v2622_v55  ;;  %vm2644_vm7 = vcmp.eq.f32.partialorder %v6106_v17, inf  ;;  %v2647_v14 = vand.u32 2147483648, %v6106_v17  ;;  %vm2646_vm9 = vcmp.eq.f32.partialorder %v6106_v17, 0.0 }
 0x3eb   : > { %v3676_v47 = vpop.eup %3675 }
 0x3ec   : > { %v3678_v54 = vpop.eup %3677  ;;  %v2638_v23 = vmul.f32 %v3676_v47, %v6106_v17 }
 0x3ed   : > { %v2626_v33 = vmul.f32 %v3678_v54, %v2622_v55 }
 0x3ee   : > { %v2639_v16 = vmul.f32 %v3676_v47, %v2638_v23 }
 0x3ef   : > { %v2627_v37 = vmul.f32 %v3678_v54, %v2626_v33  ;;  %v2772_v33 = vld [vmem:[%s4298_s16 + $0x70] sm:$0xff] }
 0x3f0   : > { %v2640_v7 = vmul.f32 0.5, %v2639_v16  ;;  %v2767_v16 = vld [vmem:[%s4298_s16 + $0x48] sm:$0xff] }
 0x3f1   : > { %v2628_v1 = vmul.f32 0.5, %v2627_v37  ;;  %v2771_v37 = vld [vmem:[%s4298_s16 + $0x68] sm:$0xff] }
 0x3f2   : > { %v2641_v18 = vsub.f32 1.5, %v2640_v7  ;;  %v2763_v7 = vld [vmem:[%s4298_s16 + $0x28] sm:$0xff] }
 0x3f3   : > { %v2629_v9 = vsub.f32 1.5, %v2628_v1  ;;  %v2765_v1 = vld [vmem:[%s4298_s16 + $0x38] sm:$0xff] }
 0x3f4   : > { %v2594_v32 = vpop.xlane.xlu1 %2593  ;;  %v2642_v63 = vmul.f32 %v3676_v47, %v2641_v18  ;;  %v2758_v18 = vld [vmem:[%s4298_s16] sm:$0xff] }
 0x3f5   : > { %v2596_v4 = vmax.f32 %v2594_v32, 1e-24  ;;  %v2592_v62 = vpop.xlane.xlu0 %2591  ;;  %v2630_v59 = vmul.f32 %v3678_v54, %v2629_v9  ;;  %v2770_v32 = vld [vmem:[%s4298_s16 + $0x60] sm:$0xff]  ;;  %v2764_v9 = vld [vmem:[%s4298_s16 + $0x30] sm:$0xff] }
 0x3f6   : > { %v2595_v5 = vmax.f32 %v2592_v62, 1e-24  ;;  %v2643_v46 = vmul.f32 %v2642_v63, %v6106_v17  ;;  %v2768_v62 = vld [vmem:[%s4298_s16 + $0x50] sm:$0xff] }
 0x3f7   : > { %3679 = vrsqrt.f32 %v2596_v4  ;;  %v2631_v10 = vmul.f32 %v2630_v59, %v2622_v55  ;;  %vm2613_vm1 = vweird.f32 %v2596_v4  ;;  %v2762_v59 = vld [vmem:[%s4298_s16 + $0x20] sm:$0xff] }
 0x3f8   : > { %3681 = vrsqrt.f32 %v2595_v5  ;;  %vm2603_vm3 = vweird.f32 %v2595_v5  ;;  %v2645_v60 = vsel %vm2644_vm7, %v6106_v17, %v2643_v46 }
 0x3f9   : > { %v2633_v51 = vsel %vm2632_vm15, %v2622_v55, %v2631_v10  ;;  %v2648_v0 = vsel %vm2646_vm9, %v2647_v14, %v2645_v60 }
 0x3fa   : > { %v2636_v38 = vsel %vm2634_vm4, %v2635_v21, %v2633_v51  ;;  %v2651_v44 = vmul.f32 %v2649_v12, %v2648_v0 }
 0x3fb   : > { %v2650_v58 = vmul.f32 %v2649_v12, %v2636_v38 }
 0x3fd   : > { %v3680_v6 = vpop.eup %3679 }
 0x3fe   : > { %v3682_v57 = vpop.eup %3681  ;;  %v2608_v42 = vmul.f32 %v3680_v6, %v2596_v4  ;;  %vm2614_vm5 = vweird.f32 %v3680_v6  ;;  %v2769_v4 = vld [vmem:[%s4298_s16 + $0x58] sm:$0xff] }
 0x3ff   : > { %v2598_v53 = vmul.f32 %v3682_v57, %v2595_v5  ;;  %vm2604_vm0 = vweird.f32 %v3682_v57  ;;  %vm2615_vm8 = vmor %vm2613_vm1, %vm2614_vm5  ;;  %v2766_v5 = vld [vmem:[%s4298_s16 + $0x40] sm:$0xff] }
 0x400   : > { %v2609_v29 = vmul.f32 %v3680_v6, %v2608_v42  ;;  %vm2605_vm6 = vmor %vm2603_vm3, %vm2604_vm0  ;;  %v2759_v42 = vld [vmem:[%s4298_s16 + $0x8] sm:$0xff] }
 0x401   : > { %v2599_v26 = vmul.f32 %v3682_v57, %v2598_v53 }
 0x402   : > { %v2610_v19 = vmul.f32 0.5, %v2609_v29 }
 0x403   : > { %v2600_v24 = vmul.f32 0.5, %v2599_v26 }
 0x404   : > { %v2611_v50 = vsub.f32 1.5, %v2610_v19 }
 0x405   : > { %v2601_v28 = vsub.f32 1.5, %v2600_v24 }
 0x406   : > { %v2612_v61 = vmul.f32 %v3680_v6, %v2611_v50 }
 0x407   : > { %v2602_v43 = vmul.f32 %v3682_v57, %v2601_v28 }
 0x408   : > { %v2616_v27 = vsel %vm2615_vm8, %v3680_v6, %v2612_v61  ;;  %v2761_v6 = vld [vmem:[%s4298_s16 + $0x18] sm:$0xff] }
 0x409   : > { %v2606_v35 = vsel %vm2605_vm6, %v3682_v57, %v2602_v43  ;;  %v2618_v8 = vmul.f32 %v2616_v27, %v6084_v36  ;;  %v6562_v36 = vld [vmem:[#allocation33_spill] sm:$0xff] }
 0x40a   : > { %v2617_v20 = vmul.f32 %v2606_v35, %v6086_v22  ;;  %vm2709_vm10 = vcmp.lt.s32.totalorder %v6562_v36, 64  ;;  %v2760_v57 = vld [vmem:[%s4298_s16 + $0x10] sm:$0xff] }
 0x40b   : > { %v2653_v30 = vmul.f32 %v2651_v44, %v2618_v8  ;;  %v3381_v49 = vsel %vm2709_vm10, 1.0, %v6563_v2  ;;  %v3668_v43 = vld [vmem:[%s866_s19] ss:$0 sm:$0xff]  ;;  %s6566_s19 = sld [smem:[#allocation122_spill]] (!%p3382_p4) }
 0x40c   : > { %v2652_v13 = vmul.f32 %v2650_v58, %v2617_v20  ;;  %v3669_v58 = vld [vmem:[%s735_s26] ss:$0 sm:$0xff] }
 0x40d   : > { %v2655_v22 = vadd.f32 %v2653_v30, %v6076_v39 }
 0x40e   : > { %v2654_v48 = vadd.f32 %v2652_v13, %v6078_v25  ;;  %v2773_v25 = vld [vmem:[%s4298_s16 + $0x78] sm:$0xff] }
 0x40f   : > { %2778 = vmatpush.msra.mxu1 %v2773_v25 }
 0x410   : > { %2692 = vmatmul.f32.vlgmr.msrb.gmra.mxu3 %v2654_v48 }
 0x411   : > { %2779 = vmatpush.msra.mxu1 %v2772_v33 }
 0x413   : > { %2780 = vmatpush.msra.mxu1 %v2771_v37 }
 0x415   : > { %2781 = vmatpush.msra.mxu1 %v2770_v32 }
 0x417   : > { %2782 = vmatpush.msra.mxu1 %v2769_v4 }
 0x418   : > { %2695 = vmatmul.f32.gmra.mxu3 %v2655_v22 }
 0x419   : > { %2783 = vmatpush.msra.mxu1 %v2768_v62 }
 0x41b   : > { %2784 = vmatpush.msra.mxu1 %v2767_v16 }
 0x41d   : > { %2785 = vmatpush.msra.mxu1 %v2766_v5 }
 0x41f   : > { %2786 = vmatpush.msra.mxu1 %v2765_v1 }
 0x421   : > { %2787 = vmatpush.msra.mxu1 %v2764_v9 }
 0x423   : > { %2788 = vmatpush.msra.mxu1 %v2763_v7 }
 0x425   : > { %2789 = vmatpush.msra.mxu1 %v2762_v59 }
 0x427   : > { %2790 = vmatpush.msra.mxu1 %v2761_v6 }
 0x429   : > { %2791 = vmatpush.msra.mxu1 %v2760_v57 }
 0x42b   : > { %2792 = vmatpush.msra.mxu1 %v2759_v42 }
 0x42d   : > { %2793 = vmatpush.msra.mxu1 %v2758_v18 }
 0x493   : > { %v2693_v11 = vpop.f32.mrf.mxu3 }
 0x494   : > { %v2694_v52 = vadd.f32 %v3667_v3, %v2693_v11  ;;  %v3670_v11 = vld [vmem:[%s754_s2] ss:$0 sm:$0xff] }
 0x496   : > { %2701 = vadd.xlane.f32.xlu2 %v2694_v52 }
 0x49b   : > { %v2696_v56 = vpop.f32.mrf.mxu3 }
 0x49c   : > { %v2697_v31 = vadd.f32 %v3667_v3, %v2696_v56 }
 0x49e   : > { %2703 = vadd.xlane.f32.xlu2 %v2697_v31 }
 0x509   : > { %v2702_v15 = vpop.xlane.xlu2 %2701 }
 0x50a   : > { %v2705_v39 = vmul.f32 0.015625, %v2702_v15 }
 0x50c   : > { %v2707_v34 = vsub.f32 %v2694_v52, %v2705_v39 }
 0x50e   : > { %v2712_v17 = vmul.f32 %v3381_v49, %v2707_v34 }
 0x510   : > { %v2714_v55 = vmul.f32 %v2712_v17, %v2712_v17 }
 0x511   : > { %v2704_v45 = vpop.xlane.xlu2 %2703 }
 0x512   : > { %v2706_v40 = vmul.f32 0.015625, %v2704_v45  ;;  %2716 = vadd.xlane.f32.xlu0 %v2714_v55 }
 0x514   : > { %v2708_v47 = vsub.f32 %v2697_v31, %v2706_v40 }
 0x516   : > { %v6134_v54 = vmul.f32 %v3381_v49, %v2708_v47 }
 0x518   : > { %v2715_v23 = vmul.f32 %v6134_v54, %v6134_v54 }
 0x51a   : > { %2718 = vadd.xlane.f32.xlu1 %v2715_v23 }
 0x585   : > { %v2717_v53 = vpop.xlane.xlu0 %2716 }
 0x586   : > { %v2720_v29 = vmul.f32 0.015625, %v2717_v53 }
 0x588   : > { %v2722_v10 = vadd.f32 1e-05, %v2720_v29 }
 0x58a   : > { %3683 = vrsqrt.f32 %v2722_v10  ;;  %vm2730_vm12 = vweird.f32 %v2722_v10 }
 0x58d   : > { %v2719_v26 = vpop.xlane.xlu1 %2718 }
 0x58e   : > { %v2721_v19 = vmul.f32 0.015625, %v2719_v26 }
 0x590   : > { %v3684_v63 = vpop.eup %3683  ;;  %v2723_v24 = vadd.f32 1e-05, %v2721_v19 }
 0x591   : > { %v2725_v50 = vmul.f32 %v3684_v63, %v2722_v10  ;;  %vm2731_vm11 = vweird.f32 %v3684_v63 }
 0x592   : > { %3685 = vrsqrt.f32 %v2723_v24  ;;  %vm2732_vm13 = vmor %vm2730_vm12, %vm2731_vm11  ;;  %vm2740_vm15 = vweird.f32 %v2723_v24 }
 0x593   : > { %v2726_v51 = vmul.f32 %v3684_v63, %v2725_v50 }
 0x595   : > { %v2727_v28 = vmul.f32 0.5, %v2726_v51 }
 0x597   : > { %v2728_v21 = vsub.f32 1.5, %v2727_v28 }
 0x598   : > { %v3686_v12 = vpop.eup %3685 }
 0x599   : > { %v2729_v46 = vmul.f32 %v3684_v63, %v2728_v21  ;;  %v2735_v61 = vmul.f32 %v3686_v12, %v2723_v24  ;;  %vm2741_vm14 = vweird.f32 %v3686_v12 }
 0x59a   : > { %vm2742_vm0 = vmor %vm2740_vm15, %vm2741_vm14 }
 0x59b   : > { %v2736_v38 = vmul.f32 %v3686_v12, %v2735_v61  ;;  %v2733_v35 = vsel %vm2732_vm13, %v3684_v63, %v2729_v46 }
 0x59c   : > { %v2744_v20 = vmul.f32 %v2733_v35, %v2712_v17 }
 0x59d   : > { %v2737_v60 = vmul.f32 0.5, %v2736_v38 }
 0x59e   : > { %v2749_v27 = vmul.f32 %v3668_v43, %v2744_v20 }
 0x59f   : > { %v2738_v14 = vsub.f32 1.5, %v2737_v60 }
 0x5a0   : > { %v2754_v13 = vadd.f32 %v3669_v58, %v2749_v27 }
 0x5a1   : > { %v2739_v0 = vmul.f32 %v3686_v12, %v2738_v14 }
 0x5a2   : > { %v2756_v48 = vmax.f32 %v2754_v13, 0.0 }
 0x5a3   : > { %v2743_v8 = vsel %vm2742_vm0, %v3686_v12, %v2739_v0 }
 0x5a4   : > { %2794 = vmatmul.f32.vlgmr.msra.gmra.mxu1 %v2756_v48  ;;  %v2745_v44 = vmul.f32 %v2743_v8, %v6134_v54 }
 0x5a6   : > { %v2750_v30 = vmul.f32 %v3668_v43, %v2745_v44 }
 0x5a8   : > { %v2755_v22 = vadd.f32 %v3669_v58, %v2750_v30 }
 0x5aa   : > { %v2757_v3 = vmax.f32 %v2755_v22, 0.0 }
 0x5ac   : > { %2797 = vmatmul.f32.gmra.mxu1 %v2757_v3 }
 0x621   : > { %v2795_v52 = vpop.f32.mrf.mxu1 }
 0x622   : > { %v2796_v56 = vadd.f32 %v3670_v11, %v2795_v52 }
 0x624   : > { %2801 = vst [vmem:[#allocation2] sm:$0xff] %v2796_v56 }
 0x629   : > { %v2798_v31 = vpop.f32.mrf.mxu1 }
 0x62a   : > { %v2799_v25 = vadd.f32 %v3670_v11, %v2798_v31  ;;  %2810 = sbr.rel (%p3382_p4) target bundleno = 2387 (0x953), region = 144 }
 0x62c   : > { %2802 = vst [vmem:[#allocation2 + $0x8] sm:$0xff] %v2799_v25  ;;  %v3403_v36 = vpack.c.bf16 %v2799_v25, %v2796_v56 }
 0x62e   : > { %3404 = vst [vmem:[#allocation3] sm:$0xff] %v3403_v36  }
 0x62f   : > { %2815 = vadd.xlane.f32.xlu0 %v2799_v25  ;;  %v6564_v49 = vld [vmem:[#allocation34_spill] sm:$0xff]  ;;  %v3687_v23 = vld [vmem:[%s6565_s21] ss:$0 sm:$0xff]  ;;  %v4037_v33 = vmov 0.0   ;;  %vm2872_vm3 = vcmask 123904   ;;  %v2928_v20 = vld [vmem:[#allocation17 + $0x68] sm:$0xff] }
 0x630   : > { %vm2869_vm1 = vcmp.eq.s32.totalorder %v5776_v41, %v3687_v23  ;;  %v3688_v29 = vld [vmem:[%s6566_s19] ss:$0 sm:$0xff]  ;;  %v2930_v38 = vld [vmem:[#allocation17 + $0x78] sm:$0xff]  ;;  %v2927_v58 = vld [vmem:[#allocation17 + $0x60] sm:$0xff]  ;;  %vm2957_vm13 = vcmask 1041408  }
 0x631   : > { %v3383_v37 = vsel %vm2869_vm1, 1.0, %v4037_v33  ;;  %v3689_v63 = vld [vmem:[%s6567_s3] ss:$0 sm:$0xff]  ;;  %2935 = vmatpush.msra.mxu1 %v2930_v38  ;;  %v2926_v60 = vld [vmem:[#allocation17 + $0x58] sm:$0xff]  ;;  %v2924_v14 = vld [vmem:[#allocation17 + $0x48] sm:$0xff] }
 0x632   : > { %v2873_v32 = vsel %vm2872_vm3, %v3383_v37, 0.0  ;;  %v2929_v35 = vld [vmem:[#allocation17 + $0x70] sm:$0xff]  ;;  %v2923_v13 = vld [vmem:[#allocation17 + $0x40] sm:$0xff]  ;;  %v2922_v0 = vld [vmem:[#allocation17 + $0x38] sm:$0xff] }
 0x633   : > { %2874 = vadd.xlane.f32.xlu2 %v2873_v32  ;;  %2936 = vmatpush.msra.mxu1 %v2929_v35  ;;  %v2925_v27 = vld [vmem:[#allocation17 + $0x50] sm:$0xff]  ;;  %v2920_v8 = vld [vmem:[#allocation17 + $0x28] sm:$0xff]  ;;  %v2919_v44 = vld [vmem:[#allocation17 + $0x20] sm:$0xff] }
 0x634   : > { %v2921_v48 = vld [vmem:[#allocation17 + $0x30] sm:$0xff]  ;;  %v2918_v30 = vld [vmem:[#allocation17 + $0x18] sm:$0xff]  ;;  %v2916_v11 = vld [vmem:[#allocation17 + $0x8] sm:$0xff] }
 0x635   : > { %2937 = vmatpush.msra.mxu1 %v2928_v20  ;;  %v2917_v22 = vld [vmem:[#allocation17 + $0x10] sm:$0xff] }
 0x637   : > { %2813 = vadd.xlane.f32.xlu0 %v2796_v56  ;;  %2938 = vmatpush.msra.mxu1 %v2927_v58 }
 0x639   : > { %2939 = vmatpush.msra.mxu1 %v2926_v60 }
 0x63b   : > { %2940 = vmatpush.msra.mxu1 %v2925_v27 }
 0x63d   : > { %2941 = vmatpush.msra.mxu1 %v2924_v14 }
 0x63f   : > { %2942 = vmatpush.msra.mxu1 %v2923_v13 }
 0x641   : > { %2943 = vmatpush.msra.mxu1 %v2922_v0 }
 0x643   : > { %2944 = vmatpush.msra.mxu1 %v2921_v48 }
 0x645   : > { %2945 = vmatpush.msra.mxu1 %v2920_v8 }
 0x647   : > { %2946 = vmatpush.msra.mxu1 %v2919_v44 }
 0x649   : > { %2947 = vmatpush.msra.mxu1 %v2918_v30 }
 0x64b   : > { %2948 = vmatpush.msra.mxu1 %v2917_v22 }
 0x64d   : > { %2949 = vmatpush.msra.mxu1 %v2916_v11 }
 0x6a2   : > { %v2816_v15 = vpop.xlane.xlu0 %2815 }
 0x6a3   : > { %v2818_v39 = vmul.f32 0.03125, %v2816_v15 }
 0x6a5   : > { %v2820_v2 = vsub.f32 %v2799_v25, %v2818_v39 }
 0x6a6   : > { %v2875_v3 = vpop.xlane.xlu2 %2874 }
 0x6a7   : > { %v2822_v34 = vmul.f32 %v6564_v49, %v2820_v2  ;;  %v2899_v52 = vmax.f32 %v2875_v3, 1.0 }
 0x6a9   : > { %v2824_v17 = vmul.f32 %v2822_v34, %v2822_v34  ;;  %v2911_v39 = vand.u32 2147483648, %v2899_v52 }
 0x6aa   : > { %v2814_v55 = vpop.xlane.xlu0 %2813 }
 0x6ab   : > { %v2817_v45 = vmul.f32 0.03125, %v2814_v55  ;;  %2827 = vadd.xlane.f32.xlu1 %v2824_v17  ;;  %v2912_v17 = vor.u32 1.1754944e-38, %v2911_v39 }
 0x6ad   : > { %v2819_v40 = vsub.f32 %v2796_v56, %v2817_v45  ;;  %v2915_v56 = vld [vmem:[#allocation17] sm:$0xff] }
 0x6ae   : > { %2950 = vmatpush.msra.mxu1 %v2915_v56 }
 0x6af   : > { %v2821_v47 = vmul.f32 %v6564_v49, %v2819_v40 }
 0x6b1   : > { %v2823_v54 = vmul.f32 %v2821_v47, %v2821_v47 }
 0x6b3   : > { %2825 = vadd.xlane.f32.xlu1 %v2823_v54  ;;  %v3690_v54 = vld [vmem:[%s6568_s14] ss:$0 sm:$0xff] }
 0x71e   : > { %v2828_v4 = vpop.xlane.xlu1 %2827 }
 0x71f   : > { %v2830_v62 = vmul.f32 0.03125, %v2828_v4 }
 0x721   : > { %v2832_v16 = vadd.f32 1e-05, %v2830_v62 }
 0x723   : > { %3693 = vrsqrt.f32 %v2832_v16  ;;  %vm2849_vm5 = vweird.f32 %v2832_v16 }
 0x726   : > { %v2826_v5 = vpop.xlane.xlu1 %2825 }
 0x727   : > { %v2829_v1 = vmul.f32 0.03125, %v2826_v5 }
 0x729   : > { %v3694_v9 = vpop.eup %3693  ;;  %v2831_v7 = vadd.f32 1e-05, %v2829_v1 }
 0x72a   : > { %v2844_v59 = vmul.f32 %v3694_v9, %v2832_v16  ;;  %vm2850_vm4 = vweird.f32 %v3694_v9 }
 0x72b   : > { %3695 = vrsqrt.f32 %v2831_v7  ;;  %vm2851_vm6 = vmor %vm2849_vm5, %vm2850_vm4  ;;  %vm2839_vm8 = vweird.f32 %v2831_v7 }
 0x72c   : > { %v2845_v6 = vmul.f32 %v3694_v9, %v2844_v59  ;;  %3697 = vrcp.f32 %v2899_v52 }
 0x72e   : > { %v2846_v57 = vmul.f32 0.5, %v2845_v6 }
 0x730   : > { %v2847_v42 = vsub.f32 1.5, %v2846_v57 }
 0x731   : > { %v3696_v41 = vpop.eup %3695 }
 0x732   : > { %v2848_v18 = vmul.f32 %v3694_v9, %v2847_v42  ;;  %v2834_v53 = vmul.f32 %v3696_v41, %v2831_v7  ;;  %vm2840_vm7 = vweird.f32 %v3696_v41  ;;  %v3698_v31 = vpop.eup %3697 }
 0x733   : > { %vm2841_vm9 = vmor %vm2839_vm8, %vm2840_vm7  ;;  %v2901_v25 = vmul.f32 %v3698_v31, %v2899_v52  ;;  %vm2906_vm10 = vweird.f32 %v3698_v31 }
 0x734   : > { %v2835_v10 = vmul.f32 %v3696_v41, %v2834_v53  ;;  %v2852_v26 = vsel %vm2851_vm6, %v3694_v9, %v2848_v18 }
 0x735   : > { %v2854_v19 = vmul.f32 %v2852_v26, %v2822_v34  ;;  %v2902_v36 = vsub.f32 1.0, %v2901_v25  ;;  %v2909_v34 = vand.u32 2147483647, %v2899_v52 }
 0x736   : > { %v2836_v24 = vmul.f32 0.5, %v2835_v10  ;;  %v3692_v10 = vld [vmem:[%s6570_s20] ss:$0 sm:$0xff] }
 0x737   : > { %v2859_v50 = vmul.f32 %v3688_v29, %v2854_v19  ;;  %v2903_v15 = vmul.f32 %v3698_v31, %v2902_v36  ;;  %vm2910_vm12 = vcmp.eq.f32.partialorder %v2909_v34, 8.507059e+37 }
 0x738   : > { %v2837_v51 = vsub.f32 1.5, %v2836_v24 }
 0x739   : > { %v2864_v28 = vadd.f32 %v3689_v63, %v2859_v50  ;;  %v2904_v2 = vadd.f32 %v3698_v31, %v2903_v15 }
 0x73a   : > { %v2838_v21 = vmul.f32 %v3696_v41, %v2837_v51 }
 0x73b   : > { %2866 = vst [vmem:[#allocation19 + $0x8] sm:$0xff] %v2864_v28  ;;  %2893 = vmatpush.msra.mxu0 %v2864_v28 }
 0x73c   : > { %v2842_v12 = vsel %vm2841_vm9, %v3696_v41, %v2838_v21 }
 0x73d   : > { %v2853_v46 = vmul.f32 %v2842_v12, %v2821_v47 }
 0x73f   : > { %v2858_v61 = vmul.f32 %v3688_v29, %v2853_v46  ;;  %v3691_v29 = vld [vmem:[%s6569_s6] ss:$0 sm:$0xff] }
 0x741   : > { %v2863_v43 = vadd.f32 %v3689_v63, %v2858_v61 }
 0x743   : > { %2865 = vst [vmem:[#allocation19] sm:$0xff] %v2863_v43  ;;  %2894 = vmatpush.msra.mxu0 %v2863_v43 }
 0x744   : > { %3384 = vmatmul.msk.f32.vlgmr.msra.gmra.mxu0 %vm1448_vm2, %v3383_v37  ;;  %vm2905_vm2 = vweird.f32 %v2899_v52 }
 0x745   : > { %vm2907_vm11 = vmor %vm2905_vm2, %vm2906_vm10 }
 0x746   : > { %v2908_v55 = vsel %vm2907_vm11, %v3698_v31, %v2904_v2 }
 0x747   : > { %v2913_v40 = vsel %vm2910_vm12, %v2912_v17, %v2908_v55 }
 0x7c1   : > { %v2896_v45 = vpop.f32.mrf.mxu0 }
 0x7c2   : > { %v2914_v47 = vmul.f32 %v2913_v40, %v2896_v45 }
 0x7c4   : > { %2951 = vmatmul.f32.vlgmr.msra.gmra.mxu1 %v2914_v47 }
 0x841   : > { %v2952_v23 = vpop.f32.mrf.mxu1 }
 0x842   : > { %v2953_v33 = vadd.f32 %v3690_v54, %v2952_v23 }
 0x844   : > { %v2958_v37 = vsel %vm2957_vm13, %v2953_v33, 0.0 }
 0x845   : > { %2959 = vadd.xlane.f32.xlu2 %v2958_v37 }
 0x8b8   : > { %v2960_v32 = vpop.xlane.xlu2 %2959 }
 0x8b9   : > { %v2961_v4 = vmul.f32 0.03125, %v2960_v32 }
 0x8bb   : > { %v2962_v62 = vsub.f32 %v2953_v33, %v2961_v4 }
 0x8bd   : > { %v2963_v16 = vmul.f32 %v6564_v49, %v2962_v62 }
 0x8bf   : > { %v2964_v5 = vmul.f32 %v2963_v16, %v2963_v16 }
 0x8c1   : > { %v2965_v1 = vsel %vm2957_vm13, %v2964_v5, 0.0 }
 0x8c2   : > { %2966 = vadd.xlane.f32.xlu0 %v2965_v1 }
 0x935   : > { %v2967_v9 = vpop.xlane.xlu0 %2966 }
 0x936   : > { %v2968_v7 = vmul.f32 0.03125, %v2967_v9 }
 0x938   : > { %v2969_v59 = vadd.f32 1e-05, %v2968_v7 }
 0x93a   : > { %3699 = vrsqrt.f32 %v2969_v59  ;;  %vm2976_vm15 = vweird.f32 %v2969_v59 }
 0x940   : > { %v3700_v6 = vpop.eup %3699 }
 0x941   : > { %v2971_v57 = vmul.f32 %v3700_v6, %v2969_v59  ;;  %vm2977_vm14 = vweird.f32 %v3700_v6 }
 0x942   : > { %vm2978_vm0 = vmor %vm2976_vm15, %vm2977_vm14 }
 0x943   : > { %v2972_v42 = vmul.f32 %v3700_v6, %v2971_v57 }
 0x945   : > { %v2973_v41 = vmul.f32 0.5, %v2972_v42 }
 0x947   : > { %v2974_v18 = vsub.f32 1.5, %v2973_v41 }
 0x949   : > { %v2975_v53 = vmul.f32 %v3700_v6, %v2974_v18 }
 0x94b   : > { %v2979_v49 = vsel %vm2978_vm0, %v3700_v6, %v2975_v53 }
 0x94c   : > { %v2980_v26 = vmul.f32 %v2979_v49, %v2963_v16 }
 0x94e   : > { %v2984_v19 = vmul.f32 %v3691_v29, %v2980_v26 }
 0x950   : > { %v2988_v63 = vadd.f32 %v3692_v10, %v2984_v19 }
 0x952   : > { %2989 = vst [vmem:[#allocation20] sm:$0x3] %v2988_v63 }
 0x953 PF: > { %p3468_p5 = scmp.eq.s32.totalorder %s4224_s29, 1  ;;  %s6571_s0 = sld [smem:[#allocation128_spill]] }
 0x954   : > { %s4038_s26 = smov [#allocation19]   ;;  %s4039_s2 = smov 128  }
 0x955   : > { %s2995_s21 = sshll.u32 %s4038_s26, 4  ;;  %s4040_s27 = smov 8   ;;  %s2996_s21 = int_to_ptr.vmem [resolvable:$true] %s2995_s21 }
 0x956   : > { %s4041_s19 = smov [#allocation20]   ;;  %s6572_s23 = sld [smem:[#allocation129_spill]] }
 0x957   : > { %s3010_s28 = sshll.u32 %s4041_s19, 4  ;;  %s3011_s28 = int_to_ptr.vmem [resolvable:$true] %s3010_s28 }
 0x959   : > { %s2997_s5 = sshll.u32 %s6571_s0, 4  ;;  %s2998_s5 = int_to_ptr.hbm [resolvable:$true] %s2997_s5 }
 0x95a   : > { %3431 = dma.vmem_to_hbm [thread:$0]  (%p3468_p5), %s2996_s21, 256, %s2998_s5, [#allocation8], %s4039_s2, %s4039_s2, %s4040_s27  }
 0x95c   : > { %s3012_s12 = sshll.u32 %s6572_s23, 4  ;;  %s3013_s12 = int_to_ptr.hbm [resolvable:$true] %s3012_s12 }
 0x95d   : > { %3433 = dma.vmem_to_hbm [thread:$0]  (%p3468_p5), %s3011_s28, 32, %s3013_s12, [#allocation21]  }
 0x95e   : > { %3997 = dma.done.wait (%p3468_p5), [#allocation8], 256  }
 0x95f   : > { %3999 = vsyncadd (%p3468_p5), [#allocation8], 4294967040 }
 0x960   : > { %4001 = dma.done.wait (%p3468_p5), [#allocation21], 32  }
 0x961   : > { %4003 = vsyncadd (%p3468_p5), [#allocation21], 4294967264 }
 0x962 PF: > { %s6573_s14 = sld [smem:[#allocation30_spill]]  ;;  %s6577_s0 = smov %s4010_s30 }
 0x963   : > { %s6574_s25 = sld [smem:[#allocation29_spill]]  ;;  %s6579_s21 = smov %s4022_s1 }
 0x964   : > { %s6575_s20 = sld [smem:[#allocation32_spill]] }
 0x965   : > { %s6576_s13 = sld [smem:[#allocation31_spill]] }
 0x968   : > { %s41_s22 = sadd.s32 1, %s6573_s14  }
 0x969   : > { %p38_p6 = scmp.ge.s32.totalorder %s41_s22, 4   ;;  %s6578_s30 = smov %s6574_s25 }
 0x96b   : > { %s6580_s1 = smov %s6576_s13  ;;  %40 = sbr.rel (!%p38_p6) target bundleno = 27 (0x1b), region = 225 }
 0x970   :  { %3031 = vsyncpa [#allocation7], 1 }
 0x971   :  { %3033 = vsyncpa [#allocation7 + $0x1], 1 }
 0x972   :  { %3034 = vsyncpa [#allocation12], 1 }
 0x973   :  { %3036 = vsyncpa [#allocation12 + $0x1], 1 }
 0x974   :  { %3037 = vsyncpa [#allocation15], 1 }
 0x975   :  { %3039 = vsyncpa [#allocation15 + $0x1], 1 }
 0x976   :  { %3040 = vsyncpa [#allocation18], 1 }
 0x977   :  { %3041 = vsyncpa [#allocation8], 1 }
 0x978   :  { %3043 = vsyncpa [#allocation8 + $0x1], 1 }
 0x979   :  { %3044 = vsyncpa [#allocation21], 1 }
 0x97a   :  { %3045 = vsyncpa [#allocation9], 1 }
 0x97b   :  { %3047 = vsyncpa [#allocation9 + $0x1], 1 }

</bundles_post_ra>
